<compile_context>
chip_gen: v7x
topology: tpu7x:2x2x1
jax: 0.10.0
libtpu: 0.0.40
codegen_flags: <defaults>
</compile_context>

<pallas_src>
import functools

import jax
import jax.numpy as jnp
from jax.experimental import pallas as pl
from jax.experimental.pallas import tpu as pltpu

PMAX = 3              # padding of the largest (7x7) conv
KTAP = 2 * PMAX + 1   # 7: shared tap grid for all three branches


def _spatial_gate_kernel(x_ref, wc_ref, b_ref, wf_ref, c0_ref, o_ref, *, wp, l_out):
    # x_ref : (1, C, Lp)    zero-padded input, spatial flattened with row stride wp
    # wc_ref: (49, 3R, C)   per-tap combined conv weights               (VMEM)
    # b_ref : (3R, 1)       conv biases, concat order [3x3 | 5x5 | 7x7] (VMEM)
    # wf_ref: (1, 3R)       1x1 fusion weights with BN scale folded in  (VMEM)
    # c0_ref: (1,)          folded scalar: fusion_bias*bn_scale + bn_shift (SMEM)
    # o_ref : (1, C, l_out) gated output in the same flattened (stride-wp) layout
    r3 = wc_ref.shape[1]

    acc = jnp.zeros((r3, l_out), jnp.float32)
    for ky in range(KTAP):
        for kx in range(KTAP):
            off = ky * wp + kx
            xs = x_ref[0, :, off:off + l_out]                  # (C, L) shifted window
            acc = acc + jnp.dot(wc_ref[ky * KTAP + kx], xs,    # MXU: (3R,C)@(C,L)
                                preferred_element_type=jnp.float32)

    # relu(conv_k(x) + b_k) for all three branches (rows of `feats`),
    # then the 1x1 fusion conv == (1,3R)@(3R,L), with BN folded in.
    feats = jnp.maximum(acc + b_ref[...], 0.0)                 # (3R, L)
    s = jnp.dot(wf_ref[...], feats,
                preferred_element_type=jnp.float32) + c0_ref[0]   # (1, L)
    attn = 1.0 / (1.0 + jnp.exp(-s))                           # sigmoid

    # Original (unpadded) x recovered as a static lane slice of the padded input.
    xin = x_ref[0, :, PMAX * wp + PMAX: PMAX * wp + PMAX + l_out]  # (C, L)
    o_ref[0] = (xin * attn).astype(o_ref.dtype)


def _combine_conv_weights(w3, w5, w7, dtype):
    """Embed 3x3/5x5 kernels into the 7x7 tap grid and stack the branches.

    Returns (49, 3R, C): for tap (ky, kx), a (3R, C) matrix whose row blocks
    [0:R], [R:2R], [2R:3R] hold the 3x3, 5x5, 7x7 branch weights (zero where a
    branch has no such tap) -- matching torch.cat([feat_1, feat_3, feat_5]).
    """
    w3e = jnp.pad(w3, ((0, 0), (0, 0), (2, 2), (2, 2)))
    w5e = jnp.pad(w5, ((0, 0), (0, 0), (1, 1), (1, 1)))
    wc = jnp.concatenate([w3e, w5e, w7], axis=0)          # (3R, C, 7, 7)
    wc = jnp.transpose(wc, (2, 3, 0, 1))                  # (7, 7, 3R, C)
    return wc.reshape(KTAP * KTAP, wc.shape[2], wc.shape[3]).astype(dtype)


def spatial_gate(x, params, eps=1e-5):
    B, C, H, W = x.shape
    R = params['w3'].shape[0]
    R3 = 3 * R

    # Flattened-spatial geometry: round the padded row width up to a multiple
    # of 8 (sublane-aligned rows; for H % 16 == 0 the flat length is a multiple
    # of 128 -> fully unmasked lane-dense stores).  One extra zero row at the
    # bottom keeps every tap's lane slice in bounds.
    wp = ((W + 2 * PMAX + 7) // 8) * 8
    hp = H + 2 * PMAX + 1
    lp = hp * wp
    l_out = H * wp

    mm_dtype = x.dtype if x.dtype == jnp.bfloat16 else jnp.float32

    # Single padded copy of the input (the unpadded x is NOT passed separately;
    # the kernel recovers it by slicing).
    # TODO(synk): for large C*H*W (v7x's 64 MiB VMEM) add an H-tile grid axis
    # with a 3-row halo handled via the index_map instead of whole-image blocks
    # and this host-side jnp.pad.
    xpf = jnp.pad(
        x, ((0, 0), (0, 0), (PMAX, hp - H - PMAX), (PMAX, wp - W - PMAX))
    ).reshape(B, C, lp)

    wc = _combine_conv_weights(params['w3'], params['w5'], params['w7'], mm_dtype)
    bc = jnp.concatenate([params['b3'], params['b5'], params['b7']]
                         ).reshape(R3, 1).astype(jnp.float32)

    # Fold eval-mode BatchNorm into the 1x1 fusion conv.
    scale = params['bn_gamma'] / jnp.sqrt(params['bn_var'] + eps)   # (1,)
    shift = params['bn_beta'] - params['bn_mean'] * scale           # (1,)
    wf_s = (params['wf'].reshape(1, R3) * scale[0]).astype(jnp.float32)
    c0 = (params['bf'] * scale + shift).astype(jnp.float32)         # (1,)

    kernel = functools.partial(_spatial_gate_kernel, wp=wp, l_out=l_out)
    out_flat = pl.pallas_call(
        kernel,
        out_shape=jax.ShapeDtypeStruct((B, C, l_out), x.dtype),
        grid=(B,),
        in_specs=[
            pl.BlockSpec((1, C, lp), lambda b: (b, 0, 0)),             # padded input
            pl.BlockSpec((KTAP * KTAP, R3, C), lambda b: (0, 0, 0)),   # conv weights (VMEM)
            pl.BlockSpec((R3, 1), lambda b: (0, 0)),                   # conv biases  (VMEM)
            pl.BlockSpec((1, R3), lambda b: (0, 0)),                   # fusion w     (VMEM)
            pl.BlockSpec(memory_space=pltpu.MemorySpace.SMEM),         # folded scalar
        ],
        out_specs=pl.BlockSpec((1, C, l_out), lambda b: (b, 0, 0)),
        compiler_params=pltpu.CompilerParams(
            dimension_semantics=("parallel",)),
    )(xpf, wc, bc, wf_s, c0)

    # Drop the (zero) row padding: flattened rows have stride wp, keep first W.
    return out_flat.reshape(B, C, H, wp)[..., :W]


def init_params(key, in_channels, reduction_ratio=16):
    """Deterministic synthetic parameters matching the PyTorch module shapes."""
    R = max(1, in_channels // reduction_ratio)
    ks = jax.random.split(key, 8)

    def u(k, shape, fan_in):
        bound = 1.0 / (fan_in ** 0.5)
        return jax.random.uniform(k, shape, jnp.float32, -bound, bound)

    return dict(
        w3=u(ks[0], (R, in_channels, 3, 3), in_channels * 9),
        b3=u(ks[1], (R,), in_channels * 9),
        w5=u(ks[2], (R, in_channels, 5, 5), in_channels * 25),
        b5=u(ks[3], (R,), in_channels * 25),
        w7=u(ks[4], (R, in_channels, 7, 7), in_channels * 49),
        b7=u(ks[5], (R,), in_channels * 49),
        wf=u(ks[6], (1, 3 * R, 1, 1), 3 * R),
        bf=u(ks[7], (1,), 3 * R),
        bn_gamma=jnp.ones((1,), jnp.float32),
        bn_beta=jnp.zeros((1,), jnp.float32),
        bn_mean=jnp.zeros((1,), jnp.float32),
        bn_var=jnp.ones((1,), jnp.float32),
    )


def reference(x, params, eps=1e-5):
    """Pure-JAX reference mirroring the PyTorch forward (eval-mode BN)."""
    def conv(inp, w, b, pad):
        y = jax.lax.conv_general_dilated(
            inp, w, window_strides=(1, 1), padding=[(pad, pad), (pad, pad)],
            dimension_numbers=('NCHW', 'OIHW', 'NCHW'))
        return y + b[None, :, None, None]

    f1 = jax.nn.relu(conv(x, params['w3'], params['b3'], 1))
    f3 = jax.nn.relu(conv(x, params['w5'], params['b5'], 2))
    f5 = jax.nn.relu(conv(x, params['w7'], params['b7'], 3))
    feat = jnp.concatenate([f1, f3, f5], axis=1)
    s = conv(feat, params['wf'], params['bf'], 0)
    s = (s - params['bn_mean'][None, :, None, None]) / jnp.sqrt(
        params['bn_var'][None, :, None, None] + eps)
    s = (s * params['bn_gamma'][None, :, None, None]
         + params['bn_beta'][None, :, None, None])
    return x * jax.nn.sigmoid(s)


if __name__ == "__main__":
    key = jax.random.PRNGKey(0)
    kx, kp = jax.random.split(key)
    B, C, H, W = 2, 4, 16, 16
    x = jax.random.normal(kx, (B, C, H, W), jnp.float32)
    params = init_params(kp, C, reduction_ratio=16)

    out = jax.block_until_ready(spatial_gate(x, params))
    ref = reference(x, params)

    assert out.shape == x.shape and out.dtype == x.dtype
    err = float(jnp.max(jnp.abs(out - ref)))
    if err > 1e-4:
        raise AssertionError(f"kernel/reference mismatch, max abs err = {err}")
    print("KERNEL_OK")
</pallas_src>

<mosaic_0001>
module attributes {stable_mosaic.version = 11 : i64} {
  func.func @_spatial_gate_kernel(%arg0: i32, %arg1: memref<1x4x552xf32, #tpu.memory_space<vmem>>, %arg2: memref<49x3x4xf32, #tpu.memory_space<vmem>>, %arg3: memref<3x1xf32, #tpu.memory_space<vmem>>, %arg4: memref<1x3xf32, #tpu.memory_space<vmem>>, %arg5: memref<1xf32, #tpu.memory_space<smem>>, %arg6: memref<1x4x384xf32, #tpu.memory_space<vmem>>) attributes {dimension_semantics = [#tpu.dimension_semantics<parallel>], iteration_bounds = array<i64: 2>, scalar_prefetch = 0 : i64, scratch_operands = 0 : i64, tpu.core_type = #tpu.core_type<tc>, window_params = [{transform_indices = @transform_0, window_bounds = array<i64: 1, 4, 552>}, {pipeline_mode = #tpu.pipeline_mode<synchronous>, transform_indices = @transform_1, window_bounds = array<i64: 49, 3, 4>}, {pipeline_mode = #tpu.pipeline_mode<synchronous>, transform_indices = @transform_2, window_bounds = array<i64: 3, 1>}, {pipeline_mode = #tpu.pipeline_mode<synchronous>, transform_indices = @transform_3, window_bounds = array<i64: 1, 3>}, {transform_indices = @transform_4, window_bounds = array<i64: 1>}, {transform_indices = @transform_5, window_bounds = array<i64: 1, 4, 384>}]} {
    %cst = arith.constant 0.000000e+00 : f32
    %0 = vector.broadcast %cst : f32 to vector<3x384xf32>
    %c0 = arith.constant 0 : index
    %c0_0 = arith.constant 0 : index
    %c0_1 = arith.constant 0 : index
    %1 = vector.load %arg1[%c0, %c0_0, %c0_1] : memref<1x4x552xf32, #tpu.memory_space<vmem>>, vector<1x4x384xf32>
    %2 = vector.shape_cast %1 : vector<1x4x384xf32> to vector<4x384xf32>
    %c0_2 = arith.constant 0 : index
    %c0_3 = arith.constant 0 : index
    %c0_4 = arith.constant 0 : index
    %3 = vector.load %arg2[%c0_2, %c0_3, %c0_4] : memref<49x3x4xf32, #tpu.memory_space<vmem>>, vector<1x3x4xf32>
    %4 = vector.shape_cast %3 : vector<1x3x4xf32> to vector<3x4xf32>
    %cst_5 = arith.constant dense<0.000000e+00> : vector<3x384xf32>
    %5 = tpu.matmul %4, %2, %cst_5 {dimension_numbers = #tpu.dot_dimension_numbers<[1], [0], [0], [1], [0, 0, 1, 1], [], []>} : vector<3x4xf32>, vector<4x384xf32>, vector<3x384xf32> -> vector<3x384xf32>
    %6 = arith.addf %0, %5 : vector<3x384xf32>
    %c0_6 = arith.constant 0 : index
    %c0_7 = arith.constant 0 : index
    %c1 = arith.constant 1 : index
    %7 = vector.load %arg1[%c0_6, %c0_7, %c1] : memref<1x4x552xf32, #tpu.memory_space<vmem>>, vector<1x4x384xf32>
    %8 = vector.shape_cast %7 : vector<1x4x384xf32> to vector<4x384xf32>
    %c1_8 = arith.constant 1 : index
    %c0_9 = arith.constant 0 : index
    %c0_10 = arith.constant 0 : index
    %9 = vector.load %arg2[%c1_8, %c0_9, %c0_10] : memref<49x3x4xf32, #tpu.memory_space<vmem>>, vector<1x3x4xf32>
    %10 = vector.shape_cast %9 : vector<1x3x4xf32> to vector<3x4xf32>
    %cst_11 = arith.constant dense<0.000000e+00> : vector<3x384xf32>
    %11 = tpu.matmul %10, %8, %cst_11 {dimension_numbers = #tpu.dot_dimension_numbers<[1], [0], [0], [1], [0, 0, 1, 1], [], []>} : vector<3x4xf32>, vector<4x384xf32>, vector<3x384xf32> -> vector<3x384xf32>
    %12 = arith.addf %6, %11 : vector<3x384xf32>
    %c0_12 = arith.constant 0 : index
    %c0_13 = arith.constant 0 : index
    %c2 = arith.constant 2 : index
    %13 = vector.load %arg1[%c0_12, %c0_13, %c2] : memref<1x4x552xf32, #tpu.memory_space<vmem>>, vector<1x4x384xf32>
    %14 = vector.shape_cast %13 : vector<1x4x384xf32> to vector<4x384xf32>
    %c2_14 = arith.constant 2 : index
    %c0_15 = arith.constant 0 : index
    %c0_16 = arith.constant 0 : index
    %15 = vector.load %arg2[%c2_14, %c0_15, %c0_16] : memref<49x3x4xf32, #tpu.memory_space<vmem>>, vector<1x3x4xf32>
    %16 = vector.shape_cast %15 : vector<1x3x4xf32> to vector<3x4xf32>
    %cst_17 = arith.constant dense<0.000000e+00> : vector<3x384xf32>
    %17 = tpu.matmul %16, %14, %cst_17 {dimension_numbers = #tpu.dot_dimension_numbers<[1], [0], [0], [1], [0, 0, 1, 1], [], []>} : vector<3x4xf32>, vector<4x384xf32>, vector<3x384xf32> -> vector<3x384xf32>
    %18 = arith.addf %12, %17 : vector<3x384xf32>
    %c0_18 = arith.constant 0 : index
    %c0_19 = arith.constant 0 : index
    %c3 = arith.constant 3 : index
    %19 = vector.load %arg1[%c0_18, %c0_19, %c3] : memref<1x4x552xf32, #tpu.memory_space<vmem>>, vector<1x4x384xf32>
    %20 = vector.shape_cast %19 : vector<1x4x384xf32> to vector<4x384xf32>
    %c3_20 = arith.constant 3 : index
    %c0_21 = arith.constant 0 : index
    %c0_22 = arith.constant 0 : index
    %21 = vector.load %arg2[%c3_20, %c0_21, %c0_22] : memref<49x3x4xf32, #tpu.memory_space<vmem>>, vector<1x3x4xf32>
    %22 = vector.shape_cast %21 : vector<1x3x4xf32> to vector<3x4xf32>
    %cst_23 = arith.constant dense<0.000000e+00> : vector<3x384xf32>
    %23 = tpu.matmul %22, %20, %cst_23 {dimension_numbers = #tpu.dot_dimension_numbers<[1], [0], [0], [1], [0, 0, 1, 1], [], []>} : vector<3x4xf32>, vector<4x384xf32>, vector<3x384xf32> -> vector<3x384xf32>
    %24 = arith.addf %18, %23 : vector<3x384xf32>
    %c0_24 = arith.constant 0 : index
    %c0_25 = arith.constant 0 : index
    %c4 = arith.constant 4 : index
    %25 = vector.load %arg1[%c0_24, %c0_25, %c4] : memref<1x4x552xf32, #tpu.memory_space<vmem>>, vector<1x4x384xf32>
    %26 = vector.shape_cast %25 : vector<1x4x384xf32> to vector<4x384xf32>
    %c4_26 = arith.constant 4 : index
    %c0_27 = arith.constant 0 : index
    %c0_28 = arith.constant 0 : index
    %27 = vector.load %arg2[%c4_26, %c0_27, %c0_28] : memref<49x3x4xf32, #tpu.memory_space<vmem>>, vector<1x3x4xf32>
    %28 = vector.shape_cast %27 : vector<1x3x4xf32> to vector<3x4xf32>
    %cst_29 = arith.constant dense<0.000000e+00> : vector<3x384xf32>
    %29 = tpu.matmul %28, %26, %cst_29 {dimension_numbers = #tpu.dot_dimension_numbers<[1], [0], [0], [1], [0, 0, 1, 1], [], []>} : vector<3x4xf32>, vector<4x384xf32>, vector<3x384xf32> -> vector<3x384xf32>
    %30 = arith.addf %24, %29 : vector<3x384xf32>
    %c0_30 = arith.constant 0 : index
    %c0_31 = arith.constant 0 : index
    %c5 = arith.constant 5 : index
    %31 = vector.load %arg1[%c0_30, %c0_31, %c5] : memref<1x4x552xf32, #tpu.memory_space<vmem>>, vector<1x4x384xf32>
    %32 = vector.shape_cast %31 : vector<1x4x384xf32> to vector<4x384xf32>
    %c5_32 = arith.constant 5 : index
    %c0_33 = arith.constant 0 : index
    %c0_34 = arith.constant 0 : index
    %33 = vector.load %arg2[%c5_32, %c0_33, %c0_34] : memref<49x3x4xf32, #tpu.memory_space<vmem>>, vector<1x3x4xf32>
    %34 = vector.shape_cast %33 : vector<1x3x4xf32> to vector<3x4xf32>
    %cst_35 = arith.constant dense<0.000000e+00> : vector<3x384xf32>
    %35 = tpu.matmul %34, %32, %cst_35 {dimension_numbers = #tpu.dot_dimension_numbers<[1], [0], [0], [1], [0, 0, 1, 1], [], []>} : vector<3x4xf32>, vector<4x384xf32>, vector<3x384xf32> -> vector<3x384xf32>
    %36 = arith.addf %30, %35 : vector<3x384xf32>
    %c0_36 = arith.constant 0 : index
    %c0_37 = arith.constant 0 : index
    %c6 = arith.constant 6 : index
    %37 = vector.load %arg1[%c0_36, %c0_37, %c6] : memref<1x4x552xf32, #tpu.memory_space<vmem>>, vector<1x4x384xf32>
    %38 = vector.shape_cast %37 : vector<1x4x384xf32> to vector<4x384xf32>
    %c6_38 = arith.constant 6 : index
    %c0_39 = arith.constant 0 : index
    %c0_40 = arith.constant 0 : index
    %39 = vector.load %arg2[%c6_38, %c0_39, %c0_40] : memref<49x3x4xf32, #tpu.memory_space<vmem>>, vector<1x3x4xf32>
    %40 = vector.shape_cast %39 : vector<1x3x4xf32> to vector<3x4xf32>
    %cst_41 = arith.constant dense<0.000000e+00> : vector<3x384xf32>
    %41 = tpu.matmul %40, %38, %cst_41 {dimension_numbers = #tpu.dot_dimension_numbers<[1], [0], [0], [1], [0, 0, 1, 1], [], []>} : vector<3x4xf32>, vector<4x384xf32>, vector<3x384xf32> -> vector<3x384xf32>
    %42 = arith.addf %36, %41 : vector<3x384xf32>
    %c0_42 = arith.constant 0 : index
    %c0_43 = arith.constant 0 : index
    %c24 = arith.constant 24 : index
    %43 = vector.load %arg1[%c0_42, %c0_43, %c24] : memref<1x4x552xf32, #tpu.memory_space<vmem>>, vector<1x4x384xf32>
    %44 = vector.shape_cast %43 : vector<1x4x384xf32> to vector<4x384xf32>
    %c7 = arith.constant 7 : index
    %c0_44 = arith.constant 0 : index
    %c0_45 = arith.constant 0 : index
    %45 = vector.load %arg2[%c7, %c0_44, %c0_45] : memref<49x3x4xf32, #tpu.memory_space<vmem>>, vector<1x3x4xf32>
    %46 = vector.shape_cast %45 : vector<1x3x4xf32> to vector<3x4xf32>
    %cst_46 = arith.constant dense<0.000000e+00> : vector<3x384xf32>
    %47 = tpu.matmul %46, %44, %cst_46 {dimension_numbers = #tpu.dot_dimension_numbers<[1], [0], [0], [1], [0, 0, 1, 1], [], []>} : vector<3x4xf32>, vector<4x384xf32>, vector<3x384xf32> -> vector<3x384xf32>
    %48 = arith.addf %42, %47 : vector<3x384xf32>
    %c0_47 = arith.constant 0 : index
    %c0_48 = arith.constant 0 : index
    %c25 = arith.constant 25 : index
    %49 = vector.load %arg1[%c0_47, %c0_48, %c25] : memref<1x4x552xf32, #tpu.memory_space<vmem>>, vector<1x4x384xf32>
    %50 = vector.shape_cast %49 : vector<1x4x384xf32> to vector<4x384xf32>
    %c8 = arith.constant 8 : index
    %c0_49 = arith.constant 0 : index
    %c0_50 = arith.constant 0 : index
    %51 = vector.load %arg2[%c8, %c0_49, %c0_50] : memref<49x3x4xf32, #tpu.memory_space<vmem>>, vector<1x3x4xf32>
    %52 = vector.shape_cast %51 : vector<1x3x4xf32> to vector<3x4xf32>
    %cst_51 = arith.constant dense<0.000000e+00> : vector<3x384xf32>
    %53 = tpu.matmul %52, %50, %cst_51 {dimension_numbers = #tpu.dot_dimension_numbers<[1], [0], [0], [1], [0, 0, 1, 1], [], []>} : vector<3x4xf32>, vector<4x384xf32>, vector<3x384xf32> -> vector<3x384xf32>
    %54 = arith.addf %48, %53 : vector<3x384xf32>
    %c0_52 = arith.constant 0 : index
    %c0_53 = arith.constant 0 : index
    %c26 = arith.constant 26 : index
    %55 = vector.load %arg1[%c0_52, %c0_53, %c26] : memref<1x4x552xf32, #tpu.memory_space<vmem>>, vector<1x4x384xf32>
    %56 = vector.shape_cast %55 : vector<1x4x384xf32> to vector<4x384xf32>
    %c9 = arith.constant 9 : index
    %c0_54 = arith.constant 0 : index
    %c0_55 = arith.constant 0 : index
    %57 = vector.load %arg2[%c9, %c0_54, %c0_55] : memref<49x3x4xf32, #tpu.memory_space<vmem>>, vector<1x3x4xf32>
    %58 = vector.shape_cast %57 : vector<1x3x4xf32> to vector<3x4xf32>
    %cst_56 = arith.constant dense<0.000000e+00> : vector<3x384xf32>
    %59 = tpu.matmul %58, %56, %cst_56 {dimension_numbers = #tpu.dot_dimension_numbers<[1], [0], [0], [1], [0, 0, 1, 1], [], []>} : vector<3x4xf32>, vector<4x384xf32>, vector<3x384xf32> -> vector<3x384xf32>
    %60 = arith.addf %54, %59 : vector<3x384xf32>
    %c0_57 = arith.constant 0 : index
    %c0_58 = arith.constant 0 : index
    %c27 = arith.constant 27 : index
    %61 = vector.load %arg1[%c0_57, %c0_58, %c27] : memref<1x4x552xf32, #tpu.memory_space<vmem>>, vector<1x4x384xf32>
    %62 = vector.shape_cast %61 : vector<1x4x384xf32> to vector<4x384xf32>
    %c10 = arith.constant 10 : index
    %c0_59 = arith.constant 0 : index
    %c0_60 = arith.constant 0 : index
    %63 = vector.load %arg2[%c10, %c0_59, %c0_60] : memref<49x3x4xf32, #tpu.memory_space<vmem>>, vector<1x3x4xf32>
    %64 = vector.shape_cast %63 : vector<1x3x4xf32> to vector<3x4xf32>
    %cst_61 = arith.constant dense<0.000000e+00> : vector<3x384xf32>
    %65 = tpu.matmul %64, %62, %cst_61 {dimension_numbers = #tpu.dot_dimension_numbers<[1], [0], [0], [1], [0, 0, 1, 1], [], []>} : vector<3x4xf32>, vector<4x384xf32>, vector<3x384xf32> -> vector<3x384xf32>
    %66 = arith.addf %60, %65 : vector<3x384xf32>
    %c0_62 = arith.constant 0 : index
    %c0_63 = arith.constant 0 : index
    %c28 = arith.constant 28 : index
    %67 = vector.load %arg1[%c0_62, %c0_63, %c28] : memref<1x4x552xf32, #tpu.memory_space<vmem>>, vector<1x4x384xf32>
    %68 = vector.shape_cast %67 : vector<1x4x384xf32> to vector<4x384xf32>
    %c11 = arith.constant 11 : index
    %c0_64 = arith.constant 0 : index
    %c0_65 = arith.constant 0 : index
    %69 = vector.load %arg2[%c11, %c0_64, %c0_65] : memref<49x3x4xf32, #tpu.memory_space<vmem>>, vector<1x3x4xf32>
    %70 = vector.shape_cast %69 : vector<1x3x4xf32> to vector<3x4xf32>
    %cst_66 = arith.constant dense<0.000000e+00> : vector<3x384xf32>
    %71 = tpu.matmul %70, %68, %cst_66 {dimension_numbers = #tpu.dot_dimension_numbers<[1], [0], [0], [1], [0, 0, 1, 1], [], []>} : vector<3x4xf32>, vector<4x384xf32>, vector<3x384xf32> -> vector<3x384xf32>
    %72 = arith.addf %66, %71 : vector<3x384xf32>
    %c0_67 = arith.constant 0 : index
    %c0_68 = arith.constant 0 : index
    %c29 = arith.constant 29 : index
    %73 = vector.load %arg1[%c0_67, %c0_68, %c29] : memref<1x4x552xf32, #tpu.memory_space<vmem>>, vector<1x4x384xf32>
    %74 = vector.shape_cast %73 : vector<1x4x384xf32> to vector<4x384xf32>
    %c12 = arith.constant 12 : index
    %c0_69 = arith.constant 0 : index
    %c0_70 = arith.constant 0 : index
    %75 = vector.load %arg2[%c12, %c0_69, %c0_70] : memref<49x3x4xf32, #tpu.memory_space<vmem>>, vector<1x3x4xf32>
    %76 = vector.shape_cast %75 : vector<1x3x4xf32> to vector<3x4xf32>
    %cst_71 = arith.constant dense<0.000000e+00> : vector<3x384xf32>
    %77 = tpu.matmul %76, %74, %cst_71 {dimension_numbers = #tpu.dot_dimension_numbers<[1], [0], [0], [1], [0, 0, 1, 1], [], []>} : vector<3x4xf32>, vector<4x384xf32>, vector<3x384xf32> -> vector<3x384xf32>
    %78 = arith.addf %72, %77 : vector<3x384xf32>
    %c0_72 = arith.constant 0 : index
    %c0_73 = arith.constant 0 : index
    %c30 = arith.constant 30 : index
    %79 = vector.load %arg1[%c0_72, %c0_73, %c30] : memref<1x4x552xf32, #tpu.memory_space<vmem>>, vector<1x4x384xf32>
    %80 = vector.shape_cast %79 : vector<1x4x384xf32> to vector<4x384xf32>
    %c13 = arith.constant 13 : index
    %c0_74 = arith.constant 0 : index
    %c0_75 = arith.constant 0 : index
    %81 = vector.load %arg2[%c13, %c0_74, %c0_75] : memref<49x3x4xf32, #tpu.memory_space<vmem>>, vector<1x3x4xf32>
    %82 = vector.shape_cast %81 : vector<1x3x4xf32> to vector<3x4xf32>
    %cst_76 = arith.constant dense<0.000000e+00> : vector<3x384xf32>
    %83 = tpu.matmul %82, %80, %cst_76 {dimension_numbers = #tpu.dot_dimension_numbers<[1], [0], [0], [1], [0, 0, 1, 1], [], []>} : vector<3x4xf32>, vector<4x384xf32>, vector<3x384xf32> -> vector<3x384xf32>
    %84 = arith.addf %78, %83 : vector<3x384xf32>
    %c0_77 = arith.constant 0 : index
    %c0_78 = arith.constant 0 : index
    %c48 = arith.constant 48 : index
    %85 = vector.load %arg1[%c0_77, %c0_78, %c48] : memref<1x4x552xf32, #tpu.memory_space<vmem>>, vector<1x4x384xf32>
    %86 = vector.shape_cast %85 : vector<1x4x384xf32> to vector<4x384xf32>
    %c14 = arith.constant 14 : index
    %c0_79 = arith.constant 0 : index
    %c0_80 = arith.constant 0 : index
    %87 = vector.load %arg2[%c14, %c0_79, %c0_80] : memref<49x3x4xf32, #tpu.memory_space<vmem>>, vector<1x3x4xf32>
    %88 = vector.shape_cast %87 : vector<1x3x4xf32> to vector<3x4xf32>
    %cst_81 = arith.constant dense<0.000000e+00> : vector<3x384xf32>
    %89 = tpu.matmul %88, %86, %cst_81 {dimension_numbers = #tpu.dot_dimension_numbers<[1], [0], [0], [1], [0, 0, 1, 1], [], []>} : vector<3x4xf32>, vector<4x384xf32>, vector<3x384xf32> -> vector<3x384xf32>
    %90 = arith.addf %84, %89 : vector<3x384xf32>
    %c0_82 = arith.constant 0 : index
    %c0_83 = arith.constant 0 : index
    %c49 = arith.constant 49 : index
    %91 = vector.load %arg1[%c0_82, %c0_83, %c49] : memref<1x4x552xf32, #tpu.memory_space<vmem>>, vector<1x4x384xf32>
    %92 = vector.shape_cast %91 : vector<1x4x384xf32> to vector<4x384xf32>
    %c15 = arith.constant 15 : index
    %c0_84 = arith.constant 0 : index
    %c0_85 = arith.constant 0 : index
    %93 = vector.load %arg2[%c15, %c0_84, %c0_85] : memref<49x3x4xf32, #tpu.memory_space<vmem>>, vector<1x3x4xf32>
    %94 = vector.shape_cast %93 : vector<1x3x4xf32> to vector<3x4xf32>
    %cst_86 = arith.constant dense<0.000000e+00> : vector<3x384xf32>
    %95 = tpu.matmul %94, %92, %cst_86 {dimension_numbers = #tpu.dot_dimension_numbers<[1], [0], [0], [1], [0, 0, 1, 1], [], []>} : vector<3x4xf32>, vector<4x384xf32>, vector<3x384xf32> -> vector<3x384xf32>
    %96 = arith.addf %90, %95 : vector<3x384xf32>
    %c0_87 = arith.constant 0 : index
    %c0_88 = arith.constant 0 : index
    %c50 = arith.constant 50 : index
    %97 = vector.load %arg1[%c0_87, %c0_88, %c50] : memref<1x4x552xf32, #tpu.memory_space<vmem>>, vector<1x4x384xf32>
    %98 = vector.shape_cast %97 : vector<1x4x384xf32> to vector<4x384xf32>
    %c16 = arith.constant 16 : index
    %c0_89 = arith.constant 0 : index
    %c0_90 = arith.constant 0 : index
    %99 = vector.load %arg2[%c16, %c0_89, %c0_90] : memref<49x3x4xf32, #tpu.memory_space<vmem>>, vector<1x3x4xf32>
    %100 = vector.shape_cast %99 : vector<1x3x4xf32> to vector<3x4xf32>
    %cst_91 = arith.constant dense<0.000000e+00> : vector<3x384xf32>
    %101 = tpu.matmul %100, %98, %cst_91 {dimension_numbers = #tpu.dot_dimension_numbers<[1], [0], [0], [1], [0, 0, 1, 1], [], []>} : vector<3x4xf32>, vector<4x384xf32>, vector<3x384xf32> -> vector<3x384xf32>
    %102 = arith.addf %96, %101 : vector<3x384xf32>
    %c0_92 = arith.constant 0 : index
    %c0_93 = arith.constant 0 : index
    %c51 = arith.constant 51 : index
    %103 = vector.load %arg1[%c0_92, %c0_93, %c51] : memref<1x4x552xf32, #tpu.memory_space<vmem>>, vector<1x4x384xf32>
    %104 = vector.shape_cast %103 : vector<1x4x384xf32> to vector<4x384xf32>
    %c17 = arith.constant 17 : index
    %c0_94 = arith.constant 0 : index
    %c0_95 = arith.constant 0 : index
    %105 = vector.load %arg2[%c17, %c0_94, %c0_95] : memref<49x3x4xf32, #tpu.memory_space<vmem>>, vector<1x3x4xf32>
    %106 = vector.shape_cast %105 : vector<1x3x4xf32> to vector<3x4xf32>
    %cst_96 = arith.constant dense<0.000000e+00> : vector<3x384xf32>
    %107 = tpu.matmul %106, %104, %cst_96 {dimension_numbers = #tpu.dot_dimension_numbers<[1], [0], [0], [1], [0, 0, 1, 1], [], []>} : vector<3x4xf32>, vector<4x384xf32>, vector<3x384xf32> -> vector<3x384xf32>
    %108 = arith.addf %102, %107 : vector<3x384xf32>
    %c0_97 = arith.constant 0 : index
    %c0_98 = arith.constant 0 : index
    %c52 = arith.constant 52 : index
    %109 = vector.load %arg1[%c0_97, %c0_98, %c52] : memref<1x4x552xf32, #tpu.memory_space<vmem>>, vector<1x4x384xf32>
    %110 = vector.shape_cast %109 : vector<1x4x384xf32> to vector<4x384xf32>
    %c18 = arith.constant 18 : index
    %c0_99 = arith.constant 0 : index
    %c0_100 = arith.constant 0 : index
    %111 = vector.load %arg2[%c18, %c0_99, %c0_100] : memref<49x3x4xf32, #tpu.memory_space<vmem>>, vector<1x3x4xf32>
    %112 = vector.shape_cast %111 : vector<1x3x4xf32> to vector<3x4xf32>
    %cst_101 = arith.constant dense<0.000000e+00> : vector<3x384xf32>
    %113 = tpu.matmul %112, %110, %cst_101 {dimension_numbers = #tpu.dot_dimension_numbers<[1], [0], [0], [1], [0, 0, 1, 1], [], []>} : vector<3x4xf32>, vector<4x384xf32>, vector<3x384xf32> -> vector<3x384xf32>
    %114 = arith.addf %108, %113 : vector<3x384xf32>
    %c0_102 = arith.constant 0 : index
    %c0_103 = arith.constant 0 : index
    %c53 = arith.constant 53 : index
    %115 = vector.load %arg1[%c0_102, %c0_103, %c53] : memref<1x4x552xf32, #tpu.memory_space<vmem>>, vector<1x4x384xf32>
    %116 = vector.shape_cast %115 : vector<1x4x384xf32> to vector<4x384xf32>
    %c19 = arith.constant 19 : index
    %c0_104 = arith.constant 0 : index
    %c0_105 = arith.constant 0 : index
    %117 = vector.load %arg2[%c19, %c0_104, %c0_105] : memref<49x3x4xf32, #tpu.memory_space<vmem>>, vector<1x3x4xf32>
    %118 = vector.shape_cast %117 : vector<1x3x4xf32> to vector<3x4xf32>
    %cst_106 = arith.constant dense<0.000000e+00> : vector<3x384xf32>
    %119 = tpu.matmul %118, %116, %cst_106 {dimension_numbers = #tpu.dot_dimension_numbers<[1], [0], [0], [1], [0, 0, 1, 1], [], []>} : vector<3x4xf32>, vector<4x384xf32>, vector<3x384xf32> -> vector<3x384xf32>
    %120 = arith.addf %114, %119 : vector<3x384xf32>
    %c0_107 = arith.constant 0 : index
    %c0_108 = arith.constant 0 : index
    %c54 = arith.constant 54 : index
    %121 = vector.load %arg1[%c0_107, %c0_108, %c54] : memref<1x4x552xf32, #tpu.memory_space<vmem>>, vector<1x4x384xf32>
    %122 = vector.shape_cast %121 : vector<1x4x384xf32> to vector<4x384xf32>
    %c20 = arith.constant 20 : index
    %c0_109 = arith.constant 0 : index
    %c0_110 = arith.constant 0 : index
    %123 = vector.load %arg2[%c20, %c0_109, %c0_110] : memref<49x3x4xf32, #tpu.memory_space<vmem>>, vector<1x3x4xf32>
    %124 = vector.shape_cast %123 : vector<1x3x4xf32> to vector<3x4xf32>
    %cst_111 = arith.constant dense<0.000000e+00> : vector<3x384xf32>
    %125 = tpu.matmul %124, %122, %cst_111 {dimension_numbers = #tpu.dot_dimension_numbers<[1], [0], [0], [1], [0, 0, 1, 1], [], []>} : vector<3x4xf32>, vector<4x384xf32>, vector<3x384xf32> -> vector<3x384xf32>
    %126 = arith.addf %120, %125 : vector<3x384xf32>
    %c0_112 = arith.constant 0 : index
    %c0_113 = arith.constant 0 : index
    %c72 = arith.constant 72 : index
    %127 = vector.load %arg1[%c0_112, %c0_113, %c72] : memref<1x4x552xf32, #tpu.memory_space<vmem>>, vector<1x4x384xf32>
    %128 = vector.shape_cast %127 : vector<1x4x384xf32> to vector<4x384xf32>
    %c21 = arith.constant 21 : index
    %c0_114 = arith.constant 0 : index
    %c0_115 = arith.constant 0 : index
    %129 = vector.load %arg2[%c21, %c0_114, %c0_115] : memref<49x3x4xf32, #tpu.memory_space<vmem>>, vector<1x3x4xf32>
    %130 = vector.shape_cast %129 : vector<1x3x4xf32> to vector<3x4xf32>
    %cst_116 = arith.constant dense<0.000000e+00> : vector<3x384xf32>
    %131 = tpu.matmul %130, %128, %cst_116 {dimension_numbers = #tpu.dot_dimension_numbers<[1], [0], [0], [1], [0, 0, 1, 1], [], []>} : vector<3x4xf32>, vector<4x384xf32>, vector<3x384xf32> -> vector<3x384xf32>
    %132 = arith.addf %126, %131 : vector<3x384xf32>
    %c0_117 = arith.constant 0 : index
    %c0_118 = arith.constant 0 : index
    %c73 = arith.constant 73 : index
    %133 = vector.load %arg1[%c0_117, %c0_118, %c73] : memref<1x4x552xf32, #tpu.memory_space<vmem>>, vector<1x4x384xf32>
    %134 = vector.shape_cast %133 : vector<1x4x384xf32> to vector<4x384xf32>
    %c22 = arith.constant 22 : index
    %c0_119 = arith.constant 0 : index
    %c0_120 = arith.constant 0 : index
    %135 = vector.load %arg2[%c22, %c0_119, %c0_120] : memref<49x3x4xf32, #tpu.memory_space<vmem>>, vector<1x3x4xf32>
    %136 = vector.shape_cast %135 : vector<1x3x4xf32> to vector<3x4xf32>
    %cst_121 = arith.constant dense<0.000000e+00> : vector<3x384xf32>
    %137 = tpu.matmul %136, %134, %cst_121 {dimension_numbers = #tpu.dot_dimension_numbers<[1], [0], [0], [1], [0, 0, 1, 1], [], []>} : vector<3x4xf32>, vector<4x384xf32>, vector<3x384xf32> -> vector<3x384xf32>
    %138 = arith.addf %132, %137 : vector<3x384xf32>
    %c0_122 = arith.constant 0 : index
    %c0_123 = arith.constant 0 : index
    %c74 = arith.constant 74 : index
    %139 = vector.load %arg1[%c0_122, %c0_123, %c74] : memref<1x4x552xf32, #tpu.memory_space<vmem>>, vector<1x4x384xf32>
    %140 = vector.shape_cast %139 : vector<1x4x384xf32> to vector<4x384xf32>
    %c23 = arith.constant 23 : index
    %c0_124 = arith.constant 0 : index
    %c0_125 = arith.constant 0 : index
    %141 = vector.load %arg2[%c23, %c0_124, %c0_125] : memref<49x3x4xf32, #tpu.memory_space<vmem>>, vector<1x3x4xf32>
    %142 = vector.shape_cast %141 : vector<1x3x4xf32> to vector<3x4xf32>
    %cst_126 = arith.constant dense<0.000000e+00> : vector<3x384xf32>
    %143 = tpu.matmul %142, %140, %cst_126 {dimension_numbers = #tpu.dot_dimension_numbers<[1], [0], [0], [1], [0, 0, 1, 1], [], []>} : vector<3x4xf32>, vector<4x384xf32>, vector<3x384xf32> -> vector<3x384xf32>
    %144 = arith.addf %138, %143 : vector<3x384xf32>
    %c0_127 = arith.constant 0 : index
    %c0_128 = arith.constant 0 : index
    %c75 = arith.constant 75 : index
    %145 = vector.load %arg1[%c0_127, %c0_128, %c75] : memref<1x4x552xf32, #tpu.memory_space<vmem>>, vector<1x4x384xf32>
    %146 = vector.shape_cast %145 : vector<1x4x384xf32> to vector<4x384xf32>
    %c24_129 = arith.constant 24 : index
    %c0_130 = arith.constant 0 : index
    %c0_131 = arith.constant 0 : index
    %147 = vector.load %arg2[%c24_129, %c0_130, %c0_131] : memref<49x3x4xf32, #tpu.memory_space<vmem>>, vector<1x3x4xf32>
    %148 = vector.shape_cast %147 : vector<1x3x4xf32> to vector<3x4xf32>
    %cst_132 = arith.constant dense<0.000000e+00> : vector<3x384xf32>
    %149 = tpu.matmul %148, %146, %cst_132 {dimension_numbers = #tpu.dot_dimension_numbers<[1], [0], [0], [1], [0, 0, 1, 1], [], []>} : vector<3x4xf32>, vector<4x384xf32>, vector<3x384xf32> -> vector<3x384xf32>
    %150 = arith.addf %144, %149 : vector<3x384xf32>
    %c0_133 = arith.constant 0 : index
    %c0_134 = arith.constant 0 : index
    %c76 = arith.constant 76 : index
    %151 = vector.load %arg1[%c0_133, %c0_134, %c76] : memref<1x4x552xf32, #tpu.memory_space<vmem>>, vector<1x4x384xf32>
    %152 = vector.shape_cast %151 : vector<1x4x384xf32> to vector<4x384xf32>
    %c25_135 = arith.constant 25 : index
    %c0_136 = arith.constant 0 : index
    %c0_137 = arith.constant 0 : index
    %153 = vector.load %arg2[%c25_135, %c0_136, %c0_137] : memref<49x3x4xf32, #tpu.memory_space<vmem>>, vector<1x3x4xf32>
    %154 = vector.shape_cast %153 : vector<1x3x4xf32> to vector<3x4xf32>
    %cst_138 = arith.constant dense<0.000000e+00> : vector<3x384xf32>
    %155 = tpu.matmul %154, %152, %cst_138 {dimension_numbers = #tpu.dot_dimension_numbers<[1], [0], [0], [1], [0, 0, 1, 1], [], []>} : vector<3x4xf32>, vector<4x384xf32>, vector<3x384xf32> -> vector<3x384xf32>
    %156 = arith.addf %150, %155 : vector<3x384xf32>
    %c0_139 = arith.constant 0 : index
    %c0_140 = arith.constant 0 : index
    %c77 = arith.constant 77 : index
    %157 = vector.load %arg1[%c0_139, %c0_140, %c77] : memref<1x4x552xf32, #tpu.memory_space<vmem>>, vector<1x4x384xf32>
    %158 = vector.shape_cast %157 : vector<1x4x384xf32> to vector<4x384xf32>
    %c26_141 = arith.constant 26 : index
    %c0_142 = arith.constant 0 : index
    %c0_143 = arith.constant 0 : index
    %159 = vector.load %arg2[%c26_141, %c0_142, %c0_143] : memref<49x3x4xf32, #tpu.memory_space<vmem>>, vector<1x3x4xf32>
    %160 = vector.shape_cast %159 : vector<1x3x4xf32> to vector<3x4xf32>
    %cst_144 = arith.constant dense<0.000000e+00> : vector<3x384xf32>
    %161 = tpu.matmul %160, %158, %cst_144 {dimension_numbers = #tpu.dot_dimension_numbers<[1], [0], [0], [1], [0, 0, 1, 1], [], []>} : vector<3x4xf32>, vector<4x384xf32>, vector<3x384xf32> -> vector<3x384xf32>
    %162 = arith.addf %156, %161 : vector<3x384xf32>
    %c0_145 = arith.constant 0 : index
    %c0_146 = arith.constant 0 : index
    %c78 = arith.constant 78 : index
    %163 = vector.load %arg1[%c0_145, %c0_146, %c78] : memref<1x4x552xf32, #tpu.memory_space<vmem>>, vector<1x4x384xf32>
    %164 = vector.shape_cast %163 : vector<1x4x384xf32> to vector<4x384xf32>
    %c27_147 = arith.constant 27 : index
    %c0_148 = arith.constant 0 : index
    %c0_149 = arith.constant 0 : index
    %165 = vector.load %arg2[%c27_147, %c0_148, %c0_149] : memref<49x3x4xf32, #tpu.memory_space<vmem>>, vector<1x3x4xf32>
    %166 = vector.shape_cast %165 : vector<1x3x4xf32> to vector<3x4xf32>
    %cst_150 = arith.constant dense<0.000000e+00> : vector<3x384xf32>
    %167 = tpu.matmul %166, %164, %cst_150 {dimension_numbers = #tpu.dot_dimension_numbers<[1], [0], [0], [1], [0, 0, 1, 1], [], []>} : vector<3x4xf32>, vector<4x384xf32>, vector<3x384xf32> -> vector<3x384xf32>
    %168 = arith.addf %162, %167 : vector<3x384xf32>
    %c0_151 = arith.constant 0 : index
    %c0_152 = arith.constant 0 : index
    %c96 = arith.constant 96 : index
    %169 = vector.load %arg1[%c0_151, %c0_152, %c96] : memref<1x4x552xf32, #tpu.memory_space<vmem>>, vector<1x4x384xf32>
    %170 = vector.shape_cast %169 : vector<1x4x384xf32> to vector<4x384xf32>
    %c28_153 = arith.constant 28 : index
    %c0_154 = arith.constant 0 : index
    %c0_155 = arith.constant 0 : index
    %171 = vector.load %arg2[%c28_153, %c0_154, %c0_155] : memref<49x3x4xf32, #tpu.memory_space<vmem>>, vector<1x3x4xf32>
    %172 = vector.shape_cast %171 : vector<1x3x4xf32> to vector<3x4xf32>
    %cst_156 = arith.constant dense<0.000000e+00> : vector<3x384xf32>
    %173 = tpu.matmul %172, %170, %cst_156 {dimension_numbers = #tpu.dot_dimension_numbers<[1], [0], [0], [1], [0, 0, 1, 1], [], []>} : vector<3x4xf32>, vector<4x384xf32>, vector<3x384xf32> -> vector<3x384xf32>
    %174 = arith.addf %168, %173 : vector<3x384xf32>
    %c0_157 = arith.constant 0 : index
    %c0_158 = arith.constant 0 : index
    %c97 = arith.constant 97 : index
    %175 = vector.load %arg1[%c0_157, %c0_158, %c97] : memref<1x4x552xf32, #tpu.memory_space<vmem>>, vector<1x4x384xf32>
    %176 = vector.shape_cast %175 : vector<1x4x384xf32> to vector<4x384xf32>
    %c29_159 = arith.constant 29 : index
    %c0_160 = arith.constant 0 : index
    %c0_161 = arith.constant 0 : index
    %177 = vector.load %arg2[%c29_159, %c0_160, %c0_161] : memref<49x3x4xf32, #tpu.memory_space<vmem>>, vector<1x3x4xf32>
    %178 = vector.shape_cast %177 : vector<1x3x4xf32> to vector<3x4xf32>
    %cst_162 = arith.constant dense<0.000000e+00> : vector<3x384xf32>
    %179 = tpu.matmul %178, %176, %cst_162 {dimension_numbers = #tpu.dot_dimension_numbers<[1], [0], [0], [1], [0, 0, 1, 1], [], []>} : vector<3x4xf32>, vector<4x384xf32>, vector<3x384xf32> -> vector<3x384xf32>
    %180 = arith.addf %174, %179 : vector<3x384xf32>
    %c0_163 = arith.constant 0 : index
    %c0_164 = arith.constant 0 : index
    %c98 = arith.constant 98 : index
    %181 = vector.load %arg1[%c0_163, %c0_164, %c98] : memref<1x4x552xf32, #tpu.memory_space<vmem>>, vector<1x4x384xf32>
    %182 = vector.shape_cast %181 : vector<1x4x384xf32> to vector<4x384xf32>
    %c30_165 = arith.constant 30 : index
    %c0_166 = arith.constant 0 : index
    %c0_167 = arith.constant 0 : index
    %183 = vector.load %arg2[%c30_165, %c0_166, %c0_167] : memref<49x3x4xf32, #tpu.memory_space<vmem>>, vector<1x3x4xf32>
    %184 = vector.shape_cast %183 : vector<1x3x4xf32> to vector<3x4xf32>
    %cst_168 = arith.constant dense<0.000000e+00> : vector<3x384xf32>
    %185 = tpu.matmul %184, %182, %cst_168 {dimension_numbers = #tpu.dot_dimension_numbers<[1], [0], [0], [1], [0, 0, 1, 1], [], []>} : vector<3x4xf32>, vector<4x384xf32>, vector<3x384xf32> -> vector<3x384xf32>
    %186 = arith.addf %180, %185 : vector<3x384xf32>
    %c0_169 = arith.constant 0 : index
    %c0_170 = arith.constant 0 : index
    %c99 = arith.constant 99 : index
    %187 = vector.load %arg1[%c0_169, %c0_170, %c99] : memref<1x4x552xf32, #tpu.memory_space<vmem>>, vector<1x4x384xf32>
    %188 = vector.shape_cast %187 : vector<1x4x384xf32> to vector<4x384xf32>
    %c31 = arith.constant 31 : index
    %c0_171 = arith.constant 0 : index
    %c0_172 = arith.constant 0 : index
    %189 = vector.load %arg2[%c31, %c0_171, %c0_172] : memref<49x3x4xf32, #tpu.memory_space<vmem>>, vector<1x3x4xf32>
    %190 = vector.shape_cast %189 : vector<1x3x4xf32> to vector<3x4xf32>
    %cst_173 = arith.constant dense<0.000000e+00> : vector<3x384xf32>
    %191 = tpu.matmul %190, %188, %cst_173 {dimension_numbers = #tpu.dot_dimension_numbers<[1], [0], [0], [1], [0, 0, 1, 1], [], []>} : vector<3x4xf32>, vector<4x384xf32>, vector<3x384xf32> -> vector<3x384xf32>
    %192 = arith.addf %186, %191 : vector<3x384xf32>
    %c0_174 = arith.constant 0 : index
    %c0_175 = arith.constant 0 : index
    %c100 = arith.constant 100 : index
    %193 = vector.load %arg1[%c0_174, %c0_175, %c100] : memref<1x4x552xf32, #tpu.memory_space<vmem>>, vector<1x4x384xf32>
    %194 = vector.shape_cast %193 : vector<1x4x384xf32> to vector<4x384xf32>
    %c32 = arith.constant 32 : index
    %c0_176 = arith.constant 0 : index
    %c0_177 = arith.constant 0 : index
    %195 = vector.load %arg2[%c32, %c0_176, %c0_177] : memref<49x3x4xf32, #tpu.memory_space<vmem>>, vector<1x3x4xf32>
    %196 = vector.shape_cast %195 : vector<1x3x4xf32> to vector<3x4xf32>
    %cst_178 = arith.constant dense<0.000000e+00> : vector<3x384xf32>
    %197 = tpu.matmul %196, %194, %cst_178 {dimension_numbers = #tpu.dot_dimension_numbers<[1], [0], [0], [1], [0, 0, 1, 1], [], []>} : vector<3x4xf32>, vector<4x384xf32>, vector<3x384xf32> -> vector<3x384xf32>
    %198 = arith.addf %192, %197 : vector<3x384xf32>
    %c0_179 = arith.constant 0 : index
    %c0_180 = arith.constant 0 : index
    %c101 = arith.constant 101 : index
    %199 = vector.load %arg1[%c0_179, %c0_180, %c101] : memref<1x4x552xf32, #tpu.memory_space<vmem>>, vector<1x4x384xf32>
    %200 = vector.shape_cast %199 : vector<1x4x384xf32> to vector<4x384xf32>
    %c33 = arith.constant 33 : index
    %c0_181 = arith.constant 0 : index
    %c0_182 = arith.constant 0 : index
    %201 = vector.load %arg2[%c33, %c0_181, %c0_182] : memref<49x3x4xf32, #tpu.memory_space<vmem>>, vector<1x3x4xf32>
    %202 = vector.shape_cast %201 : vector<1x3x4xf32> to vector<3x4xf32>
    %cst_183 = arith.constant dense<0.000000e+00> : vector<3x384xf32>
    %203 = tpu.matmul %202, %200, %cst_183 {dimension_numbers = #tpu.dot_dimension_numbers<[1], [0], [0], [1], [0, 0, 1, 1], [], []>} : vector<3x4xf32>, vector<4x384xf32>, vector<3x384xf32> -> vector<3x384xf32>
    %204 = arith.addf %198, %203 : vector<3x384xf32>
    %c0_184 = arith.constant 0 : index
    %c0_185 = arith.constant 0 : index
    %c102 = arith.constant 102 : index
    %205 = vector.load %arg1[%c0_184, %c0_185, %c102] : memref<1x4x552xf32, #tpu.memory_space<vmem>>, vector<1x4x384xf32>
    %206 = vector.shape_cast %205 : vector<1x4x384xf32> to vector<4x384xf32>
    %c34 = arith.constant 34 : index
    %c0_186 = arith.constant 0 : index
    %c0_187 = arith.constant 0 : index
    %207 = vector.load %arg2[%c34, %c0_186, %c0_187] : memref<49x3x4xf32, #tpu.memory_space<vmem>>, vector<1x3x4xf32>
    %208 = vector.shape_cast %207 : vector<1x3x4xf32> to vector<3x4xf32>
    %cst_188 = arith.constant dense<0.000000e+00> : vector<3x384xf32>
    %209 = tpu.matmul %208, %206, %cst_188 {dimension_numbers = #tpu.dot_dimension_numbers<[1], [0], [0], [1], [0, 0, 1, 1], [], []>} : vector<3x4xf32>, vector<4x384xf32>, vector<3x384xf32> -> vector<3x384xf32>
    %210 = arith.addf %204, %209 : vector<3x384xf32>
    %c0_189 = arith.constant 0 : index
    %c0_190 = arith.constant 0 : index
    %c120 = arith.constant 120 : index
    %211 = vector.load %arg1[%c0_189, %c0_190, %c120] : memref<1x4x552xf32, #tpu.memory_space<vmem>>, vector<1x4x384xf32>
    %212 = vector.shape_cast %211 : vector<1x4x384xf32> to vector<4x384xf32>
    %c35 = arith.constant 35 : index
    %c0_191 = arith.constant 0 : index
    %c0_192 = arith.constant 0 : index
    %213 = vector.load %arg2[%c35, %c0_191, %c0_192] : memref<49x3x4xf32, #tpu.memory_space<vmem>>, vector<1x3x4xf32>
    %214 = vector.shape_cast %213 : vector<1x3x4xf32> to vector<3x4xf32>
    %cst_193 = arith.constant dense<0.000000e+00> : vector<3x384xf32>
    %215 = tpu.matmul %214, %212, %cst_193 {dimension_numbers = #tpu.dot_dimension_numbers<[1], [0], [0], [1], [0, 0, 1, 1], [], []>} : vector<3x4xf32>, vector<4x384xf32>, vector<3x384xf32> -> vector<3x384xf32>
    %216 = arith.addf %210, %215 : vector<3x384xf32>
    %c0_194 = arith.constant 0 : index
    %c0_195 = arith.constant 0 : index
    %c121 = arith.constant 121 : index
    %217 = vector.load %arg1[%c0_194, %c0_195, %c121] : memref<1x4x552xf32, #tpu.memory_space<vmem>>, vector<1x4x384xf32>
    %218 = vector.shape_cast %217 : vector<1x4x384xf32> to vector<4x384xf32>
    %c36 = arith.constant 36 : index
    %c0_196 = arith.constant 0 : index
    %c0_197 = arith.constant 0 : index
    %219 = vector.load %arg2[%c36, %c0_196, %c0_197] : memref<49x3x4xf32, #tpu.memory_space<vmem>>, vector<1x3x4xf32>
    %220 = vector.shape_cast %219 : vector<1x3x4xf32> to vector<3x4xf32>
    %cst_198 = arith.constant dense<0.000000e+00> : vector<3x384xf32>
    %221 = tpu.matmul %220, %218, %cst_198 {dimension_numbers = #tpu.dot_dimension_numbers<[1], [0], [0], [1], [0, 0, 1, 1], [], []>} : vector<3x4xf32>, vector<4x384xf32>, vector<3x384xf32> -> vector<3x384xf32>
    %222 = arith.addf %216, %221 : vector<3x384xf32>
    %c0_199 = arith.constant 0 : index
    %c0_200 = arith.constant 0 : index
    %c122 = arith.constant 122 : index
    %223 = vector.load %arg1[%c0_199, %c0_200, %c122] : memref<1x4x552xf32, #tpu.memory_space<vmem>>, vector<1x4x384xf32>
    %224 = vector.shape_cast %223 : vector<1x4x384xf32> to vector<4x384xf32>
    %c37 = arith.constant 37 : index
    %c0_201 = arith.constant 0 : index
    %c0_202 = arith.constant 0 : index
    %225 = vector.load %arg2[%c37, %c0_201, %c0_202] : memref<49x3x4xf32, #tpu.memory_space<vmem>>, vector<1x3x4xf32>
    %226 = vector.shape_cast %225 : vector<1x3x4xf32> to vector<3x4xf32>
    %cst_203 = arith.constant dense<0.000000e+00> : vector<3x384xf32>
    %227 = tpu.matmul %226, %224, %cst_203 {dimension_numbers = #tpu.dot_dimension_numbers<[1], [0], [0], [1], [0, 0, 1, 1], [], []>} : vector<3x4xf32>, vector<4x384xf32>, vector<3x384xf32> -> vector<3x384xf32>
    %228 = arith.addf %222, %227 : vector<3x384xf32>
    %c0_204 = arith.constant 0 : index
    %c0_205 = arith.constant 0 : index
    %c123 = arith.constant 123 : index
    %229 = vector.load %arg1[%c0_204, %c0_205, %c123] : memref<1x4x552xf32, #tpu.memory_space<vmem>>, vector<1x4x384xf32>
    %230 = vector.shape_cast %229 : vector<1x4x384xf32> to vector<4x384xf32>
    %c38 = arith.constant 38 : index
    %c0_206 = arith.constant 0 : index
    %c0_207 = arith.constant 0 : index
    %231 = vector.load %arg2[%c38, %c0_206, %c0_207] : memref<49x3x4xf32, #tpu.memory_space<vmem>>, vector<1x3x4xf32>
    %232 = vector.shape_cast %231 : vector<1x3x4xf32> to vector<3x4xf32>
    %cst_208 = arith.constant dense<0.000000e+00> : vector<3x384xf32>
    %233 = tpu.matmul %232, %230, %cst_208 {dimension_numbers = #tpu.dot_dimension_numbers<[1], [0], [0], [1], [0, 0, 1, 1], [], []>} : vector<3x4xf32>, vector<4x384xf32>, vector<3x384xf32> -> vector<3x384xf32>
    %234 = arith.addf %228, %233 : vector<3x384xf32>
    %c0_209 = arith.constant 0 : index
    %c0_210 = arith.constant 0 : index
    %c124 = arith.constant 124 : index
    %235 = vector.load %arg1[%c0_209, %c0_210, %c124] : memref<1x4x552xf32, #tpu.memory_space<vmem>>, vector<1x4x384xf32>
    %236 = vector.shape_cast %235 : vector<1x4x384xf32> to vector<4x384xf32>
    %c39 = arith.constant 39 : index
    %c0_211 = arith.constant 0 : index
    %c0_212 = arith.constant 0 : index
    %237 = vector.load %arg2[%c39, %c0_211, %c0_212] : memref<49x3x4xf32, #tpu.memory_space<vmem>>, vector<1x3x4xf32>
    %238 = vector.shape_cast %237 : vector<1x3x4xf32> to vector<3x4xf32>
    %cst_213 = arith.constant dense<0.000000e+00> : vector<3x384xf32>
    %239 = tpu.matmul %238, %236, %cst_213 {dimension_numbers = #tpu.dot_dimension_numbers<[1], [0], [0], [1], [0, 0, 1, 1], [], []>} : vector<3x4xf32>, vector<4x384xf32>, vector<3x384xf32> -> vector<3x384xf32>
    %240 = arith.addf %234, %239 : vector<3x384xf32>
    %c0_214 = arith.constant 0 : index
    %c0_215 = arith.constant 0 : index
    %c125 = arith.constant 125 : index
    %241 = vector.load %arg1[%c0_214, %c0_215, %c125] : memref<1x4x552xf32, #tpu.memory_space<vmem>>, vector<1x4x384xf32>
    %242 = vector.shape_cast %241 : vector<1x4x384xf32> to vector<4x384xf32>
    %c40 = arith.constant 40 : index
    %c0_216 = arith.constant 0 : index
    %c0_217 = arith.constant 0 : index
    %243 = vector.load %arg2[%c40, %c0_216, %c0_217] : memref<49x3x4xf32, #tpu.memory_space<vmem>>, vector<1x3x4xf32>
    %244 = vector.shape_cast %243 : vector<1x3x4xf32> to vector<3x4xf32>
    %cst_218 = arith.constant dense<0.000000e+00> : vector<3x384xf32>
    %245 = tpu.matmul %244, %242, %cst_218 {dimension_numbers = #tpu.dot_dimension_numbers<[1], [0], [0], [1], [0, 0, 1, 1], [], []>} : vector<3x4xf32>, vector<4x384xf32>, vector<3x384xf32> -> vector<3x384xf32>
    %246 = arith.addf %240, %245 : vector<3x384xf32>
    %c0_219 = arith.constant 0 : index
    %c0_220 = arith.constant 0 : index
    %c126 = arith.constant 126 : index
    %247 = vector.load %arg1[%c0_219, %c0_220, %c126] : memref<1x4x552xf32, #tpu.memory_space<vmem>>, vector<1x4x384xf32>
    %248 = vector.shape_cast %247 : vector<1x4x384xf32> to vector<4x384xf32>
    %c41 = arith.constant 41 : index
    %c0_221 = arith.constant 0 : index
    %c0_222 = arith.constant 0 : index
    %249 = vector.load %arg2[%c41, %c0_221, %c0_222] : memref<49x3x4xf32, #tpu.memory_space<vmem>>, vector<1x3x4xf32>
    %250 = vector.shape_cast %249 : vector<1x3x4xf32> to vector<3x4xf32>
    %cst_223 = arith.constant dense<0.000000e+00> : vector<3x384xf32>
    %251 = tpu.matmul %250, %248, %cst_223 {dimension_numbers = #tpu.dot_dimension_numbers<[1], [0], [0], [1], [0, 0, 1, 1], [], []>} : vector<3x4xf32>, vector<4x384xf32>, vector<3x384xf32> -> vector<3x384xf32>
    %252 = arith.addf %246, %251 : vector<3x384xf32>
    %c0_224 = arith.constant 0 : index
    %c0_225 = arith.constant 0 : index
    %c144 = arith.constant 144 : index
    %253 = vector.load %arg1[%c0_224, %c0_225, %c144] : memref<1x4x552xf32, #tpu.memory_space<vmem>>, vector<1x4x384xf32>
    %254 = vector.shape_cast %253 : vector<1x4x384xf32> to vector<4x384xf32>
    %c42 = arith.constant 42 : index
    %c0_226 = arith.constant 0 : index
    %c0_227 = arith.constant 0 : index
    %255 = vector.load %arg2[%c42, %c0_226, %c0_227] : memref<49x3x4xf32, #tpu.memory_space<vmem>>, vector<1x3x4xf32>
    %256 = vector.shape_cast %255 : vector<1x3x4xf32> to vector<3x4xf32>
    %cst_228 = arith.constant dense<0.000000e+00> : vector<3x384xf32>
    %257 = tpu.matmul %256, %254, %cst_228 {dimension_numbers = #tpu.dot_dimension_numbers<[1], [0], [0], [1], [0, 0, 1, 1], [], []>} : vector<3x4xf32>, vector<4x384xf32>, vector<3x384xf32> -> vector<3x384xf32>
    %258 = arith.addf %252, %257 : vector<3x384xf32>
    %c0_229 = arith.constant 0 : index
    %c0_230 = arith.constant 0 : index
    %c145 = arith.constant 145 : index
    %259 = vector.load %arg1[%c0_229, %c0_230, %c145] : memref<1x4x552xf32, #tpu.memory_space<vmem>>, vector<1x4x384xf32>
    %260 = vector.shape_cast %259 : vector<1x4x384xf32> to vector<4x384xf32>
    %c43 = arith.constant 43 : index
    %c0_231 = arith.constant 0 : index
    %c0_232 = arith.constant 0 : index
    %261 = vector.load %arg2[%c43, %c0_231, %c0_232] : memref<49x3x4xf32, #tpu.memory_space<vmem>>, vector<1x3x4xf32>
    %262 = vector.shape_cast %261 : vector<1x3x4xf32> to vector<3x4xf32>
    %cst_233 = arith.constant dense<0.000000e+00> : vector<3x384xf32>
    %263 = tpu.matmul %262, %260, %cst_233 {dimension_numbers = #tpu.dot_dimension_numbers<[1], [0], [0], [1], [0, 0, 1, 1], [], []>} : vector<3x4xf32>, vector<4x384xf32>, vector<3x384xf32> -> vector<3x384xf32>
    %264 = arith.addf %258, %263 : vector<3x384xf32>
    %c0_234 = arith.constant 0 : index
    %c0_235 = arith.constant 0 : index
    %c146 = arith.constant 146 : index
    %265 = vector.load %arg1[%c0_234, %c0_235, %c146] : memref<1x4x552xf32, #tpu.memory_space<vmem>>, vector<1x4x384xf32>
    %266 = vector.shape_cast %265 : vector<1x4x384xf32> to vector<4x384xf32>
    %c44 = arith.constant 44 : index
    %c0_236 = arith.constant 0 : index
    %c0_237 = arith.constant 0 : index
    %267 = vector.load %arg2[%c44, %c0_236, %c0_237] : memref<49x3x4xf32, #tpu.memory_space<vmem>>, vector<1x3x4xf32>
    %268 = vector.shape_cast %267 : vector<1x3x4xf32> to vector<3x4xf32>
    %cst_238 = arith.constant dense<0.000000e+00> : vector<3x384xf32>
    %269 = tpu.matmul %268, %266, %cst_238 {dimension_numbers = #tpu.dot_dimension_numbers<[1], [0], [0], [1], [0, 0, 1, 1], [], []>} : vector<3x4xf32>, vector<4x384xf32>, vector<3x384xf32> -> vector<3x384xf32>
    %270 = arith.addf %264, %269 : vector<3x384xf32>
    %c0_239 = arith.constant 0 : index
    %c0_240 = arith.constant 0 : index
    %c147 = arith.constant 147 : index
    %271 = vector.load %arg1[%c0_239, %c0_240, %c147] : memref<1x4x552xf32, #tpu.memory_space<vmem>>, vector<1x4x384xf32>
    %272 = vector.shape_cast %271 : vector<1x4x384xf32> to vector<4x384xf32>
    %c45 = arith.constant 45 : index
    %c0_241 = arith.constant 0 : index
    %c0_242 = arith.constant 0 : index
    %273 = vector.load %arg2[%c45, %c0_241, %c0_242] : memref<49x3x4xf32, #tpu.memory_space<vmem>>, vector<1x3x4xf32>
    %274 = vector.shape_cast %273 : vector<1x3x4xf32> to vector<3x4xf32>
    %cst_243 = arith.constant dense<0.000000e+00> : vector<3x384xf32>
    %275 = tpu.matmul %274, %272, %cst_243 {dimension_numbers = #tpu.dot_dimension_numbers<[1], [0], [0], [1], [0, 0, 1, 1], [], []>} : vector<3x4xf32>, vector<4x384xf32>, vector<3x384xf32> -> vector<3x384xf32>
    %276 = arith.addf %270, %275 : vector<3x384xf32>
    %c0_244 = arith.constant 0 : index
    %c0_245 = arith.constant 0 : index
    %c148 = arith.constant 148 : index
    %277 = vector.load %arg1[%c0_244, %c0_245, %c148] : memref<1x4x552xf32, #tpu.memory_space<vmem>>, vector<1x4x384xf32>
    %278 = vector.shape_cast %277 : vector<1x4x384xf32> to vector<4x384xf32>
    %c46 = arith.constant 46 : index
    %c0_246 = arith.constant 0 : index
    %c0_247 = arith.constant 0 : index
    %279 = vector.load %arg2[%c46, %c0_246, %c0_247] : memref<49x3x4xf32, #tpu.memory_space<vmem>>, vector<1x3x4xf32>
    %280 = vector.shape_cast %279 : vector<1x3x4xf32> to vector<3x4xf32>
    %cst_248 = arith.constant dense<0.000000e+00> : vector<3x384xf32>
    %281 = tpu.matmul %280, %278, %cst_248 {dimension_numbers = #tpu.dot_dimension_numbers<[1], [0], [0], [1], [0, 0, 1, 1], [], []>} : vector<3x4xf32>, vector<4x384xf32>, vector<3x384xf32> -> vector<3x384xf32>
    %282 = arith.addf %276, %281 : vector<3x384xf32>
    %c0_249 = arith.constant 0 : index
    %c0_250 = arith.constant 0 : index
    %c149 = arith.constant 149 : index
    %283 = vector.load %arg1[%c0_249, %c0_250, %c149] : memref<1x4x552xf32, #tpu.memory_space<vmem>>, vector<1x4x384xf32>
    %284 = vector.shape_cast %283 : vector<1x4x384xf32> to vector<4x384xf32>
    %c47 = arith.constant 47 : index
    %c0_251 = arith.constant 0 : index
    %c0_252 = arith.constant 0 : index
    %285 = vector.load %arg2[%c47, %c0_251, %c0_252] : memref<49x3x4xf32, #tpu.memory_space<vmem>>, vector<1x3x4xf32>
    %286 = vector.shape_cast %285 : vector<1x3x4xf32> to vector<3x4xf32>
    %cst_253 = arith.constant dense<0.000000e+00> : vector<3x384xf32>
    %287 = tpu.matmul %286, %284, %cst_253 {dimension_numbers = #tpu.dot_dimension_numbers<[1], [0], [0], [1], [0, 0, 1, 1], [], []>} : vector<3x4xf32>, vector<4x384xf32>, vector<3x384xf32> -> vector<3x384xf32>
    %288 = arith.addf %282, %287 : vector<3x384xf32>
    %c0_254 = arith.constant 0 : index
    %c0_255 = arith.constant 0 : index
    %c150 = arith.constant 150 : index
    %289 = vector.load %arg1[%c0_254, %c0_255, %c150] : memref<1x4x552xf32, #tpu.memory_space<vmem>>, vector<1x4x384xf32>
    %290 = vector.shape_cast %289 : vector<1x4x384xf32> to vector<4x384xf32>
    %c48_256 = arith.constant 48 : index
    %c0_257 = arith.constant 0 : index
    %c0_258 = arith.constant 0 : index
    %291 = vector.load %arg2[%c48_256, %c0_257, %c0_258] : memref<49x3x4xf32, #tpu.memory_space<vmem>>, vector<1x3x4xf32>
    %292 = vector.shape_cast %291 : vector<1x3x4xf32> to vector<3x4xf32>
    %cst_259 = arith.constant dense<0.000000e+00> : vector<3x384xf32>
    %293 = tpu.matmul %292, %290, %cst_259 {dimension_numbers = #tpu.dot_dimension_numbers<[1], [0], [0], [1], [0, 0, 1, 1], [], []>} : vector<3x4xf32>, vector<4x384xf32>, vector<3x384xf32> -> vector<3x384xf32>
    %294 = arith.addf %288, %293 : vector<3x384xf32>
    %c0_260 = arith.constant 0 : index
    %c0_261 = arith.constant 0 : index
    %295 = vector.load %arg3[%c0_260, %c0_261] : memref<3x1xf32, #tpu.memory_space<vmem>>, vector<3x1xf32>
    %296 = vector.broadcast %295 : vector<3x1xf32> to vector<3x384xf32>
    %297 = arith.addf %294, %296 : vector<3x384xf32>
    %cst_262 = arith.constant 0.000000e+00 : f32
    %298 = vector.broadcast %cst_262 : f32 to vector<3x384xf32>
    %299 = arith.maximumf %297, %298 : vector<3x384xf32>
    %c0_263 = arith.constant 0 : index
    %c0_264 = arith.constant 0 : index
    %300 = vector.load %arg4[%c0_263, %c0_264] : memref<1x3xf32, #tpu.memory_space<vmem>>, vector<1x3xf32>
    %cst_265 = arith.constant dense<0.000000e+00> : vector<1x384xf32>
    %301 = tpu.matmul %300, %299, %cst_265 {dimension_numbers = #tpu.dot_dimension_numbers<[1], [0], [0], [1], [0, 0, 1, 1], [], []>} : vector<1x3xf32>, vector<3x384xf32>, vector<1x384xf32> -> vector<1x384xf32>
    %c0_266 = arith.constant 0 : index
    %302 = memref.load %arg5[%c0_266] : memref<1xf32, #tpu.memory_space<smem>>
    %303 = vector.broadcast %302 : f32 to vector<1x384xf32>
    %304 = arith.addf %301, %303 : vector<1x384xf32>
    %cst_267 = arith.constant 0.000000e+00 : f32
    %305 = vector.broadcast %cst_267 : f32 to vector<1x384xf32>
    %306 = arith.subf %305, %304 : vector<1x384xf32>
    %307 = math.exp %306 : vector<1x384xf32>
    %cst_268 = arith.constant 1.000000e+00 : f32
    %308 = vector.broadcast %cst_268 : f32 to vector<1x384xf32>
    %309 = arith.addf %308, %307 : vector<1x384xf32>
    %cst_269 = arith.constant 1.000000e+00 : f32
    %310 = vector.broadcast %cst_269 : f32 to vector<1x384xf32>
    %311 = arith.divf %310, %309 : vector<1x384xf32>
    %c0_270 = arith.constant 0 : index
    %c0_271 = arith.constant 0 : index
    %c75_272 = arith.constant 75 : index
    %312 = vector.load %arg1[%c0_270, %c0_271, %c75_272] : memref<1x4x552xf32, #tpu.memory_space<vmem>>, vector<1x4x384xf32>
    %313 = vector.shape_cast %312 : vector<1x4x384xf32> to vector<4x384xf32>
    %314 = vector.broadcast %311 : vector<1x384xf32> to vector<4x384xf32>
    %315 = arith.mulf %313, %314 : vector<4x384xf32>
    %c0_273 = arith.constant 0 : index
    %c0_274 = arith.constant 0 : index
    %c0_275 = arith.constant 0 : index
    %316 = vector.load %arg6[%c0_273, %c0_274, %c0_275] : memref<1x4x384xf32, #tpu.memory_space<vmem>>, vector<1x4x384xf32>
    %317 = vector.shape_cast %316 : vector<1x4x384xf32> to vector<4x384xf32>
    %318 = vector.shape_cast %315 : vector<4x384xf32> to vector<1x4x384xf32>
    tpu.vector_store %arg6[%c0_273, %c0_274, %c0_275], %318 {strides = array<i32>} : memref<1x4x384xf32, #tpu.memory_space<vmem>>, vector<1x4x384xf32>,
    return
  }
  func.func @transform_0(%arg0: i32) -> (i32, i32, i32) {
    %c0_i32 = arith.constant 0 : i32
    %c0_i32_0 = arith.constant 0 : i32
    %c0_i32_1 = arith.constant 0 : i32
    return %arg0, %c0_i32, %c0_i32_0 : i32, i32, i32
  }
  func.func @transform_1(%arg0: i32) -> (i32, i32, i32) {
    %c0_i32 = arith.constant 0 : i32
    %c0_i32_0 = arith.constant 0 : i32
    %c0_i32_1 = arith.constant 0 : i32
    %c0_i32_2 = arith.constant 0 : i32
    return %c0_i32, %c0_i32_0, %c0_i32_1 : i32, i32, i32
  }
  func.func @transform_2(%arg0: i32) -> (i32, i32) {
    %c0_i32 = arith.constant 0 : i32
    %c0_i32_0 = arith.constant 0 : i32
    %c0_i32_1 = arith.constant 0 : i32
    return %c0_i32, %c0_i32_0 : i32, i32
  }
  func.func @transform_3(%arg0: i32) -> (i32, i32) {
    %c0_i32 = arith.constant 0 : i32
    %c0_i32_0 = arith.constant 0 : i32
    %c0_i32_1 = arith.constant 0 : i32
    return %c0_i32, %c0_i32_0 : i32, i32
  }
  func.func @transform_4(%arg0: i32) -> i32 {
    %c0_i32 = arith.constant 0 : i32
    %c0_i32_0 = arith.constant 0 : i32
    return %c0_i32 : i32
  }
  func.func @transform_5(%arg0: i32) -> (i32, i32, i32) {
    %c0_i32 = arith.constant 0 : i32
    %c0_i32_0 = arith.constant 0 : i32
    %c0_i32_1 = arith.constant 0 : i32
    return %arg0, %c0_i32, %c0_i32_0 : i32, i32, i32
  }
}

</mosaic_0001>

<bundles_post_ra>
// kernel: tpu_custom_call.1
= control target key start
LH: loop header
LB: loop body
LE: loop exit
PB: predicated region body
PF: predicated region fallthrough
CT: control target
= control target key end

     0   :  { %s11801_s0 = inlined_call_operand.vmem [shape: f32[2,4,552], index: 0, kind: input, shape index: {}]   ;;  %s11802_s1 = inlined_call_operand.vmem [shape: f32[49,3,4], index: 1, kind: input, shape index: {}]   ;;  %s11803_s2 = inlined_call_operand.vmem [shape: f32[3,1], index: 2, kind: input, shape index: {}]   ;;  %s11804_s3 = inlined_call_operand.vmem [shape: f32[1,3], index: 3, kind: input, shape index: {}]   ;;  %s11805_s4 = inlined_call_operand.<no memory space> [shape: f32[1], index: 4, kind: input, shape index: {}]   ;;  %s11806_s5 = inlined_call_operand.hbm [shape: f32[2,4,384], index: 5, kind: output, shape index: {}]  }
   0x1   :  { %10 = sst [smem:[#allocation2]] %s11805_s4 }
   0x2   :  { %11 = vsyncpa [#allocation4], 0 }
   0x3   :  { %13 = vsyncpa [#allocation4 + $0x1], 0  ;;  %s9999_s20 = smov 0   ;;  %s10001_s21 = smov 0  }
   0x4   :  { %s10003_s22 = smov 0   ;;  %s10005_s23 = smov 0  }
   0x5 LB: > { %s10020_s4 = sadd.s32 4294967295, %s9912_s23   ;;  %s8984_s24 = sadd.s32 4294967294, %s9912_s23   ;;  %s9912_s23 = sphi %s10005_s23, %s11858_s23   ;;  %s9908_s22 = sphi %s10003_s22, %s11857_s22   ;;  %s9904_s21 = sphi %s10001_s21, %s11856_s21   ;;  %s9900_s20 = sphi %s9999_s20, %s11855_s20  }
   0x6   : > { %s10024_s25 = sadd.s32 1, %s9912_s23   ;;  %s136_s26 = sadd.s32 1, %s9908_s22 }
   0x7   : > { %s133_s27 = ssub.s32 %s9912_s23, %s10024_s25  ;;  %p146_p0 = scmp.ne.s32.totalorder %s9908_s22, %s9904_s21 }
   0x8   : > { %p134_p1 = scmp.eq.s32.totalorder %s133_s27, 0  ;;  %p147_p2 = scmp.eq.s32.totalorder %s10020_s4, 1 }
   0x9   : > { %p152_p3 = scmp.ne.s32.totalorder %s9904_s21, %s9900_s20  ;;  %p153_p4 = scmp.eq.s32.totalorder %s8984_s24, 1 }
   0xa   : > { %s10035_s28 = scalar_select %p134_p1, %s9908_s22, %s136_s26  }
   0xb   : > { %p10037_p5 = por %p147_p2, %p146_p0  ;;  %p10041_p6 = por %p153_p4, %p152_p3 }
   0xc   : > { %p8987_p7 = scmp.ge.s32.totalorder %s9912_s23, 1  ;;  %p191_p8 = scmp.lt.s32.totalorder %s9912_s23, 3 }
   0xe   : > { %p192_p9 = pnand %p8987_p7, %p191_p8 }
  0x10   : > { %195 = sbr.rel (%p192_p9) target bundleno = 1265 (0x4f1), region = 40 }
  0x17   : > { %p219_p10 = scmp.lt.s32.totalorder %s10020_s4, 1  ;;  %v11826_v0 = vmov 0.0   ;;  %s9915_s11 = smov 127   ;;  %vm242_vm0 = vcmask 1039360   ;;  %vm250_vm1 = vcmask 1043456   ;;  %vm246_vm2 = vcmask 31744  }
  0x18   : > { %321 = vmatprep.mubr.f32.mxu0 %v11826_v0  ;;  %9390 = vmatprep.subr.mxu1 %v11826_v0  ;;  %s9916_s12 = smov 126   ;;  %s9917_s13 = smov 125   ;;  %v10195_v9 = vld [vmem:[%s11802_s1 + $0x4] sm:$0x7]  ;;  %vm565_vm3 = vcmask 1031168   ;;  %vm738_vm4 = vcmask 1022976  }
  0x19   : > { %s220_s6 = scalar_select %p219_p10, %s10020_s4, 1  ;;  %v10225_v16 = vld [vmem:[%s11802_s1] sm:$0x7]  ;;  %vm911_vm5 = vcmask 1014784   ;;  %vm9939_vm6 = vmmov 0   ;;  %vm1084_vm7 = vcmask 1006592  }
  0x1a   : > { %s9918_s14 = smov 124   ;;  %s9919_s15 = smov 123   ;;  %9392 = vmatprep.mubr.msk.f32.mxu1 %vm9939_vm6, %v11826_v0  ;;  %v10250_v23 = vld [vmem:[%s11802_s1 + $0x8] sm:$0x7]  ;;  %v10277_v31 = vld [vmem:[%s11802_s1 + $0xc] sm:$0x7] }
  0x1b   : > { %s9737_s7 = smul.u32 20, %s220_s6  ;;  %s9920_s16 = smov 122   ;;  %vm1257_vm8 = vcmask 998400   ;;  %v10302_v38 = vld [vmem:[%s11802_s1 + $0x10] sm:$0x7]  ;;  %vm1430_vm9 = vcmask 850944  }
  0x1c   : > { %s9921_s17 = smov 104   ;;  %s9922_s18 = smov 103   ;;  %v10325_v45 = vld [vmem:[%s11802_s1 + $0x14] sm:$0x7]  ;;  %v10348_v52 = vld [vmem:[%s11802_s1 + $0x18] sm:$0x7] }
  0x1d   : > { %s10054_s10 = scalar_lea.vmem %s11801_s0, %s9737_s7  ;;  %s9923_s19 = smov 102   ;;  %vm1603_vm10 = vcmask 842752   ;;  %v10373_v59 = vld [vmem:[%s11802_s1 + $0x1c] sm:$0x7]  ;;  %vm1776_vm11 = vcmask 834560   ;;  %vm1949_vm12 = vcmask 826368  }
  0x1e   : > { %v10057_v1 = vld [vmem:[%s10054_s10] sm:$0xff]  ;;  %v10068_v3 = vld [vmem:[%s10054_s10 + $0x8] sm:$0xff]  ;;  %s9924_s24 = smov 101   ;;  %s9925_s26 = smov 100   ;;  %vm2122_vm13 = vcmask 818176   ;;  %vm11819_vm14 = vcmask 809984  }
  0x1f   : > { %234 = vrot.lane.b32.xlu1 %v10057_v1, %s9915_s11  ;;  %v10063_v2 = vcombine.high %v10057_v1, %v10057_v1  ;;  %s9926_s27 = smov 99   ;;  %s11808_s6 = smov 98   ;;  %v10267_v28 = vcombine.high %v10068_v3, %v10068_v3  ;;  %vm11820_vm15 = vcmask 801792  }
  0x20   : > { %s11807_s7 = smov 80   ;;  %s11810_s8 = smov 79  }
  0x21   : > { %236 = vrot.lane.b32.xlu0 %v10063_v2, %s9915_s11  ;;  %s11809_s9 = smov 78  }
  0x23   : > { %557 = vrot.lane.b32.xlu1 %v10057_v1, %s9916_s12 }
  0x25   : > { %238 = vrot.lane.b32.xlu0 %v10068_v3, %s9915_s11 }
  0x27   : > { %559 = vrot.lane.b32.xlu1 %v10063_v2, %s9916_s12 }
  0x29   : > { %561 = vrot.lane.b32.xlu0 %v10068_v3, %s9916_s12 }
  0x2b   : > { %734 = vrot.lane.b32.xlu1 %v10068_v3, %s9917_s13 }
  0x2d   : > { %732 = vrot.lane.b32.xlu0 %v10063_v2, %s9917_s13 }
  0x2f   : > { %905 = vrot.lane.b32.xlu1 %v10063_v2, %s9918_s14 }
  0x31   : > { %730 = vrot.lane.b32.xlu0 %v10057_v1, %s9917_s13 }
  0x33   : > { %903 = vrot.lane.b32.xlu1 %v10057_v1, %s9918_s14 }
  0x35   : > { %907 = vrot.lane.b32.xlu0 %v10068_v3, %s9918_s14 }
  0x37   : > { %1080 = vrot.lane.b32.xlu1 %v10068_v3, %s9919_s15 }
  0x39   : > { %1078 = vrot.lane.b32.xlu0 %v10063_v2, %s9919_s15 }
  0x3b   : > { %1251 = vrot.lane.b32.xlu1 %v10063_v2, %s9920_s16 }
  0x3d   : > { %1076 = vrot.lane.b32.xlu0 %v10057_v1, %s9919_s15 }
  0x3f   : > { %1249 = vrot.lane.b32.xlu1 %v10057_v1, %s9920_s16 }
  0x41   : > { %1253 = vrot.lane.b32.xlu0 %v10068_v3, %s9920_s16 }
  0x43   : > { %1426 = vrot.lane.b32.xlu1 %v10068_v3, %s9921_s17 }
  0x45   : > { %1424 = vrot.lane.b32.xlu0 %v10063_v2, %s9921_s17 }
  0x47   : > { %1597 = vrot.lane.b32.xlu1 %v10063_v2, %s9922_s18 }
  0x49   : > { %1422 = vrot.lane.b32.xlu0 %v10057_v1, %s9921_s17 }
  0x4b   : > { %1595 = vrot.lane.b32.xlu1 %v10057_v1, %s9922_s18 }
  0x4d   : > { %1599 = vrot.lane.b32.xlu0 %v10068_v3, %s9922_s18 }
  0x4f   : > { %1772 = vrot.lane.b32.xlu1 %v10068_v3, %s9923_s19 }
  0x51   : > { %1770 = vrot.lane.b32.xlu0 %v10063_v2, %s9923_s19 }
  0x53   : > { %1943 = vrot.lane.b32.xlu1 %v10063_v2, %s9924_s24 }
  0x55   : > { %1768 = vrot.lane.b32.xlu0 %v10057_v1, %s9923_s19 }
  0x57   : > { %1941 = vrot.lane.b32.xlu1 %v10057_v1, %s9924_s24 }
  0x59   : > { %1945 = vrot.lane.b32.xlu0 %v10068_v3, %s9924_s24 }
  0x5b   : > { %2118 = vrot.lane.b32.xlu1 %v10068_v3, %s9925_s26 }
  0x5d   : > { %2116 = vrot.lane.b32.xlu0 %v10063_v2, %s9925_s26 }
  0x5f   : > { %2289 = vrot.lane.b32.xlu1 %v10063_v2, %s9926_s27 }
  0x61   : > { %2114 = vrot.lane.b32.xlu0 %v10057_v1, %s9925_s26 }
  0x63   : > { %2287 = vrot.lane.b32.xlu1 %v10057_v1, %s9926_s27 }
  0x65   : > { %2291 = vrot.lane.b32.xlu0 %v10068_v3, %s9926_s27 }
  0x67   : > { %2464 = vrot.lane.b32.xlu1 %v10068_v3, %s11808_s6 }
  0x69   : > { %2462 = vrot.lane.b32.xlu0 %v10063_v2, %s11808_s6 }
  0x6b   : > { %2635 = vrot.lane.b32.xlu1 %v10063_v2, %s11807_s7 }
  0x6d   : > { %2460 = vrot.lane.b32.xlu0 %v10057_v1, %s11808_s6  ;;  %s11811_s6 = smov 76  }
  0x6f   : > { %2633 = vrot.lane.b32.xlu1 %v10057_v1, %s11807_s7 }
  0x71   : > { %2637 = vrot.lane.b32.xlu0 %v10068_v3, %s11807_s7  ;;  %s11814_s7 = smov 77  }
  0x73   : > { %2810 = vrot.lane.b32.xlu1 %v10068_v3, %s11810_s8 }
  0x75   : > { %2808 = vrot.lane.b32.xlu0 %v10063_v2, %s11810_s8 }
  0x77   : > { %2981 = vrot.lane.b32.xlu1 %v10063_v2, %s11809_s9 }
  0x79   : > { %2806 = vrot.lane.b32.xlu0 %v10057_v1, %s11810_s8  ;;  %s11815_s8 = smov 74  }
  0x7b   : > { %2979 = vrot.lane.b32.xlu1 %v10057_v1, %s11809_s9 }
  0x7d   : > { %2983 = vrot.lane.b32.xlu0 %v10068_v3, %s11809_s9  ;;  %s11812_s9 = smov 75  }
  0x7f   : > { %3156 = vrot.lane.b32.xlu1 %v10068_v3, %s11814_s7 }
  0x81   : > { %3154 = vrot.lane.b32.xlu0 %v10063_v2, %s11814_s7 }
  0x83   : > { %3327 = vrot.lane.b32.xlu1 %v10063_v2, %s11811_s6 }
  0x85   : > { %3152 = vrot.lane.b32.xlu0 %v10057_v1, %s11814_s7  ;;  %s9938_s7 = smov 53  }
  0x87   : > { %3325 = vrot.lane.b32.xlu1 %v10057_v1, %s11811_s6 }
  0x89   : > { %3329 = vrot.lane.b32.xlu0 %v10068_v3, %s11811_s6  ;;  %s11816_s6 = smov 56  }
  0x8b   : > { %3502 = vrot.lane.b32.xlu1 %v10068_v3, %s11812_s9 }
  0x8d   : > { %3500 = vrot.lane.b32.xlu0 %v10063_v2, %s11812_s9 }
  0x8f   : > { %3673 = vrot.lane.b32.xlu1 %v10063_v2, %s11815_s8 }
  0x91   : > { %v235_v4 = vpop.permute.xlu1 %234  ;;  %3498 = vrot.lane.b32.xlu0 %v10057_v1, %s11812_s9  ;;  %s9941_s9 = smov 51  }
  0x93   : > { %3671 = vrot.lane.b32.xlu1 %v10057_v1, %s11815_s8  ;;  %v237_v5 = vpop.permute.xlu0 %236 }
  0x94   : > { %v243_v11 = vsel %vm242_vm0, %v235_v4, %v237_v5 }
  0x95   : > { %v558_v6 = vpop.permute.xlu1 %557  ;;  %3675 = vrot.lane.b32.xlu0 %v10068_v3, %s11815_s8  ;;  %s11817_s8 = smov 55  }
  0x97   : > { %3848 = vrot.lane.b32.xlu1 %v10068_v3, %s11816_s6  ;;  %v10188_v7 = vpop.permute.xlu0 %238 }
  0x98   : > { %v244_v8 = vsel %vm242_vm0, %v237_v5, %v10188_v7 }
  0x99   : > { %v560_v10 = vpop.permute.xlu1 %559  ;;  %3846 = vrot.lane.b32.xlu0 %v10063_v2, %s11816_s6  ;;  %8990 = vmatprep.subr.msk.mxu0 %vm250_vm1, %v244_v8 }
  0x9a   : > { %8991 = vmatpush1.msk.msra.mxu0 %vm250_vm1, %v243_v11  ;;  %v566_v17 = vsel %vm565_vm3, %v558_v6, %v560_v10  ;;  %v10398_v6 = vld [vmem:[%s11802_s1 + $0x20] sm:$0x7] }
  0x9b   : > { %4019 = vrot.lane.b32.xlu1 %v10063_v2, %s11817_s8  ;;  %8992 = vmatmul.mubr.msk.f32.vlgmr.msra.gmra.mrb[0].mxu0 %vm246_vm2, %v10195_v9  ;;  %v10206_v12 = vpop.permute.xlu0 %561 }
  0x9c   : > { %8995 = vmatprep.subr.msk.mxu0 %vm250_vm1, %v10063_v2  ;;  %472 = vmatprep.mubr.f32.mxu0 %v11826_v0  ;;  %v567_v13 = vsel %vm565_vm3, %v560_v10, %v10206_v12 }
  0x9d   : > { %v10213_v14 = vpop.permute.xlu1 %734  ;;  %3844 = vrot.lane.b32.xlu0 %v10057_v1, %s11816_s6  ;;  %8996 = vmatpush1.msk.msra.mxu0 %vm250_vm1, %v10057_v1  ;;  %s11818_s6 = smov 54  }
  0x9e   : > { %9001 = vmatprep.subr.msk.mxu0 %vm250_vm1, %v567_v13 }
  0x9f   : > { %4017 = vrot.lane.b32.xlu1 %v10057_v1, %s11817_s8  ;;  %v733_v15 = vpop.permute.xlu0 %732 }
  0xa0   : > { %v740_v19 = vsel %vm738_vm4, %v733_v15, %v10213_v14 }
  0xa1   : > { %v906_v18 = vpop.permute.xlu1 %905  ;;  %4021 = vrot.lane.b32.xlu0 %v10068_v3, %s11817_s8  ;;  %s9940_s8 = smov 52  }
  0xa3   : > { %4194 = vrot.lane.b32.xlu1 %v10068_v3, %s11818_s6  ;;  %8997 = vmatmul.mubr.msk.f32.vlgmr.msra.gmra.mrb[0].mxu0 %vm246_vm2, %v10225_v16  ;;  %v731_v20 = vpop.permute.xlu0 %730 }
  0xa4   : > { %9002 = vmatpush1.msk.msra.mxu0 %vm250_vm1, %v566_v17  ;;  %642 = vmatprep.mubr.f32.mxu0 %v11826_v0  ;;  %v739_v24 = vsel %vm738_vm4, %v731_v20, %v733_v15 }
  0xa5   : > { %v904_v21 = vpop.permute.xlu1 %903  ;;  %4192 = vrot.lane.b32.xlu0 %v10063_v2, %s11818_s6  ;;  %9007 = vmatprep.subr.msk.mxu0 %vm250_vm1, %v740_v19 }
  0xa6   : > { %v912_v34 = vsel %vm911_vm5, %v904_v21, %v906_v18 }
  0xa7   : > { %4365 = vrot.lane.b32.xlu1 %v10063_v2, %s9938_s7  ;;  %v10243_v22 = vpop.permute.xlu0 %907 }
  0xa8   : > { %v913_v26 = vsel %vm911_vm5, %v906_v18, %v10243_v22  ;;  %v10425_v18 = vld [vmem:[%s11802_s1 + $0x24] sm:$0x7] }
  0xa9   : > { %v10253_v25 = vpop.permute.xlu1 %1080  ;;  %4190 = vrot.lane.b32.xlu0 %v10057_v1, %s11818_s6  ;;  %s9945_s6 = smov 30  }
  0xab   : > { %4363 = vrot.lane.b32.xlu1 %v10057_v1, %s9938_s7  ;;  %9003 = vmatmul.mubr.msk.f32.vlgmr.msra.gmra.mrb[0].mxu0 %vm246_vm2, %v10250_v23  ;;  %v1079_v27 = vpop.permute.xlu0 %1078 }
  0xac   : > { %9008 = vmatpush1.msk.msra.mxu0 %vm250_vm1, %v739_v24  ;;  %815 = vmatprep.mubr.f32.mxu0 %v11826_v0  ;;  %v1086_v33 = vsel %vm1084_vm7, %v1079_v27, %v10253_v25 }
  0xad   : > { %v1252_v29 = vpop.permute.xlu1 %1251  ;;  %4367 = vrot.lane.b32.xlu0 %v10068_v3, %s9938_s7  ;;  %9013 = vmatprep.subr.msk.mxu0 %vm250_vm1, %v913_v26 }
  0xaf   : > { %4538 = vrot.lane.b32.xlu1 %v10063_v2, %s9940_s8  ;;  %v1077_v30 = vpop.permute.xlu0 %1076 }
  0xb0   : > { %v1085_v41 = vsel %vm1084_vm7, %v1077_v30, %v1079_v27 }
  0xb1   : > { %v1250_v32 = vpop.permute.xlu1 %1249  ;;  %240 = vrot.lane.b32.xlu0 %v10267_v28, %s9915_s11  ;;  %s9942_s11 = smov 50  }
  0xb2   : > { %v1258_v47 = vsel %vm1257_vm8, %v1250_v32, %v1252_v29 }
  0xb3   : > { %4536 = vrot.lane.b32.xlu1 %v10057_v1, %s9940_s8  ;;  %9009 = vmatmul.mubr.msk.f32.vlgmr.msra.gmra.mrb[0].mxu0 %vm246_vm2, %v10277_v31  ;;  %v10288_v35 = vpop.permute.xlu0 %1253 }
  0xb4   : > { %9014 = vmatpush1.msk.msra.mxu0 %vm250_vm1, %v912_v34  ;;  %988 = vmatprep.mubr.f32.mxu0 %v11826_v0  ;;  %v1259_v40 = vsel %vm1257_vm8, %v1252_v29, %v10288_v35  ;;  %v10454_v29 = vld [vmem:[%s11802_s1 + $0x28] sm:$0x7] }
  0xb5   : > { %9019 = vmatprep.subr.msk.mxu0 %vm250_vm1, %v1086_v33  ;;  %v10293_v36 = vpop.permute.xlu1 %1426  ;;  %4540 = vrot.lane.b32.xlu0 %v10068_v3, %s9940_s8 }
  0xb7   : > { %736 = vrot.lane.b32.xlu1 %v10267_v28, %s9917_s13  ;;  %v1425_v37 = vpop.permute.xlu0 %1424  ;;  %s11833_s13 = smov 79  }
  0xb8   : > { %v1432_v49 = vsel %vm1430_vm9, %v1425_v37, %v10293_v36 }
  0xb9   : > { %v1598_v39 = vpop.permute.xlu1 %1597  ;;  %563 = vrot.lane.b32.xlu0 %v10267_v28, %s9916_s12  ;;  %s9948_s12 = smov 27  }
  0xbb   : > { %4713 = vrot.lane.b32.xlu1 %v10068_v3, %s9941_s9  ;;  %9015 = vmatmul.mubr.msk.f32.vlgmr.msra.gmra.mrb[0].mxu0 %vm246_vm2, %v10302_v38  ;;  %v1423_v42 = vpop.permute.xlu0 %1422 }
  0xbc   : > { %9020 = vmatpush1.msk.msra.mxu0 %vm250_vm1, %v1085_v41  ;;  %1161 = vmatprep.mubr.f32.mxu0 %v11826_v0  ;;  %v1431_v54 = vsel %vm1430_vm9, %v1423_v42, %v1425_v37 }
  0xbd   : > { %9025 = vmatprep.subr.msk.mxu0 %vm250_vm1, %v1259_v40  ;;  %v1596_v43 = vpop.permute.xlu1 %1595  ;;  %4711 = vrot.lane.b32.xlu0 %v10063_v2, %s9941_s9  ;;  %v10484_v40 = vld [vmem:[%s11802_s1 + $0x2c] sm:$0x7] }
  0xbe   : > { %v1604_v61 = vsel %vm1603_vm10, %v1596_v43, %v1598_v39 }
  0xbf   : > { %909 = vrot.lane.b32.xlu1 %v10267_v28, %s9918_s14  ;;  %v10320_v44 = vpop.permute.xlu0 %1599  ;;  %s9947_s14 = smov 28  }
  0xc0   : > { %v1605_v56 = vsel %vm1603_vm10, %v1598_v39, %v10320_v44 }
  0xc1   : > { %v10327_v46 = vpop.permute.xlu1 %1772  ;;  %4709 = vrot.lane.b32.xlu0 %v10057_v1, %s9941_s9 }
  0xc3   : > { %4884 = vrot.lane.b32.xlu1 %v10063_v2, %s9942_s11  ;;  %9021 = vmatmul.mubr.msk.f32.vlgmr.msra.gmra.mrb[0].mxu0 %vm246_vm2, %v10325_v45  ;;  %v1771_v48 = vpop.permute.xlu0 %1770 }
  0xc4   : > { %9026 = vmatpush1.msk.msra.mxu0 %vm250_vm1, %v1258_v47  ;;  %1334 = vmatprep.mubr.f32.mxu0 %v11826_v0  ;;  %v1778_v63 = vsel %vm1776_vm11, %v1771_v48, %v10327_v46 }
  0xc5   : > { %9031 = vmatprep.subr.msk.mxu0 %vm250_vm1, %v1432_v49  ;;  %v1944_v50 = vpop.permute.xlu1 %1943  ;;  %1082 = vrot.lane.b32.xlu0 %v10267_v28, %s9919_s15  ;;  %s9943_s15 = smov 32  }
  0xc7   : > { %4882 = vrot.lane.b32.xlu1 %v10057_v1, %s9942_s11  ;;  %v1769_v51 = vpop.permute.xlu0 %1768 }
  0xc8   : > { %v1777_v10 = vsel %vm1776_vm11, %v1769_v51, %v1771_v48 }
  0xc9   : > { %v1942_v53 = vpop.permute.xlu1 %1941  ;;  %4886 = vrot.lane.b32.xlu0 %v10068_v3, %s9942_s11 }
  0xca   : > { %v1950_v20 = vsel %vm1949_vm12, %v1942_v53, %v1944_v50 }
  0xcb   : > { %1428 = vrot.lane.b32.xlu1 %v10267_v28, %s9921_s17  ;;  %9027 = vmatmul.mubr.msk.f32.vlgmr.msra.gmra.mrb[0].mxu0 %vm246_vm2, %v10348_v52  ;;  %v10357_v55 = vpop.permute.xlu0 %1945  ;;  %s9946_s17 = smov 29  }
  0xcc   : > { %9032 = vmatpush1.msk.msra.mxu0 %vm250_vm1, %v1431_v54  ;;  %1507 = vmatprep.mubr.f32.mxu0 %v11826_v0  ;;  %v1951_v13 = vsel %vm1949_vm12, %v1944_v50, %v10357_v55  ;;  %v10515_v50 = vld [vmem:[%s11802_s1 + $0x30] sm:$0x7] }
  0xcd   : > { %9037 = vmatprep.subr.msk.mxu0 %vm250_vm1, %v1605_v56  ;;  %v10364_v57 = vpop.permute.xlu1 %2118  ;;  %1255 = vrot.lane.b32.xlu0 %v10267_v28, %s9920_s16  ;;  %s9944_s16 = smov 31  }
  0xcf   : > { %5059 = vrot.lane.b32.xlu1 %v10068_v3, %s9943_s15  ;;  %v2117_v58 = vpop.permute.xlu0 %2116 }
  0xd0   : > { %v2124_v24 = vsel %vm2122_vm13, %v2117_v58, %v10364_v57 }
  0xd1   : > { %v10375_v60 = vpop.permute.xlu1 %2289  ;;  %5057 = vrot.lane.b32.xlu0 %v10063_v2, %s9943_s15 }
  0xd3   : > { %1601 = vrot.lane.b32.xlu1 %v10267_v28, %s9922_s18  ;;  %9033 = vmatmul.mubr.msk.f32.vlgmr.msra.gmra.mrb[0].mxu0 %vm246_vm2, %v10373_v59  ;;  %v2115_v62 = vpop.permute.xlu0 %2114  ;;  %s11839_s18 = smov 76  }
  0xd4   : > { %9038 = vmatpush1.msk.msra.mxu0 %vm250_vm1, %v1604_v61  ;;  %1680 = vmatprep.mubr.f32.mxu0 %v11826_v0  ;;  %v2123_v32 = vsel %vm2122_vm13, %v2115_v62, %v2117_v58  ;;  %v10546_v61 = vld [vmem:[%s11802_s1 + $0x34] sm:$0x7] }
  0xd5   : > { %9043 = vmatprep.subr.msk.mxu0 %vm250_vm1, %v1778_v63  ;;  %v2288_v4 = vpop.permute.xlu1 %2287  ;;  %5055 = vrot.lane.b32.xlu0 %v10057_v1, %s9943_s15 }
  0xd6   : > { %v2296_v42 = vsel %vm11819_vm14, %v2288_v4, %v10375_v60 }
  0xd7   : > { %5230 = vrot.lane.b32.xlu1 %v10063_v2, %s9944_s16  ;;  %v10393_v5 = vpop.permute.xlu0 %2291 }
  0xd8   : > { %v2297_v34 = vsel %vm11819_vm14, %v10375_v60, %v10393_v5  ;;  %vm11821_vm14 = vcmask 654336  }
  0xd9   : > { %v10400_v8 = vpop.permute.xlu1 %2464  ;;  %1774 = vrot.lane.b32.xlu0 %v10267_v28, %s9923_s19  ;;  %s11834_s19 = smov 80  }
  0xdb   : > { %5228 = vrot.lane.b32.xlu1 %v10057_v1, %s9944_s16  ;;  %9039 = vmatmul.mubr.msk.f32.vlgmr.msra.gmra.mrb[0].mxu0 %vm246_vm2, %v10398_v6  ;;  %v10409_v11 = vpop.permute.xlu0 %2462 }
  0xdc   : > { %9044 = vmatpush1.msk.msra.mxu0 %vm250_vm1, %v1777_v10  ;;  %1853 = vmatprep.mubr.f32.mxu0 %v11826_v0  ;;  %v2470_v47 = vsel %vm11820_vm15, %v10409_v11, %v10400_v8 }
  0xdd   : > { %9049 = vmatprep.subr.msk.mxu0 %vm250_vm1, %v1951_v13  ;;  %v10416_v15 = vpop.permute.xlu1 %2635  ;;  %5232 = vrot.lane.b32.xlu0 %v10068_v3, %s9944_s16 }
  0xdf   : > { %2120 = vrot.lane.b32.xlu1 %v10267_v28, %s9925_s26  ;;  %v2461_v17 = vpop.permute.xlu0 %2460  ;;  %s11844_s26 = smov 55  }
  0xe0   : > { %v2469_v53 = vsel %vm11820_vm15, %v2461_v17, %v10409_v11  ;;  %vm11822_vm15 = vcmask 646144  }
  0xe1   : > { %v10427_v19 = vpop.permute.xlu1 %2633  ;;  %1947 = vrot.lane.b32.xlu0 %v10267_v28, %s9924_s24  ;;  %s11838_s24 = smov 75  }
  0xe2   : > { %v2642_v63 = vsel %vm11821_vm14, %v10427_v19, %v10416_v15 }
  0xe3   : > { %5405 = vrot.lane.b32.xlu1 %v10068_v3, %s9945_s6  ;;  %9045 = vmatmul.mubr.msk.f32.vlgmr.msra.gmra.mrb[0].mxu0 %vm246_vm2, %v10425_v18  ;;  %v10436_v21 = vpop.permute.xlu0 %2637 }
  0xe4   : > { %9050 = vmatpush1.msk.msra.mxu0 %vm250_vm1, %v1950_v20  ;;  %2026 = vmatprep.mubr.f32.mxu0 %v11826_v0  ;;  %v2643_v56 = vsel %vm11821_vm14, %v10416_v15, %v10436_v21  ;;  %v10578_v15 = vld [vmem:[%s11802_s1 + $0x38] sm:$0x7]  ;;  %vm11823_vm14 = vcmask 637952  }
  0xe5   : > { %9055 = vmatprep.subr.msk.mxu0 %vm250_vm1, %v2124_v24  ;;  %v10443_v26 = vpop.permute.xlu1 %2810  ;;  %5403 = vrot.lane.b32.xlu0 %v10063_v2, %s9945_s6 }
  0xe7   : > { %2293 = vrot.lane.b32.xlu1 %v10267_v28, %s9926_s27  ;;  %v10449_v27 = vpop.permute.xlu0 %2808  ;;  %s11832_s27 = smov 98  }
  0xe8   : > { %v2816_v10 = vsel %vm11822_vm15, %v10449_v27, %v10443_v26 }
  0xe9   : > { %v10456_v30 = vpop.permute.xlu1 %2981  ;;  %5401 = vrot.lane.b32.xlu0 %v10057_v1, %s9945_s6 }
  0xeb   : > { %5576 = vrot.lane.b32.xlu1 %v10063_v2, %s9946_s17  ;;  %9051 = vmatmul.mubr.msk.f32.vlgmr.msra.gmra.mrb[0].mxu0 %vm246_vm2, %v10454_v29  ;;  %v10465_v33 = vpop.permute.xlu0 %2806 }
  0xec   : > { %9056 = vmatpush1.msk.msra.mxu0 %vm250_vm1, %v2123_v32  ;;  %2199 = vmatprep.mubr.f32.mxu0 %v11826_v0  ;;  %v2815_v19 = vsel %vm11822_vm15, %v10465_v33, %v10449_v27  ;;  %v10610_v33 = vld [vmem:[%s11802_s1 + $0x3c] sm:$0x7]  ;;  %vm11825_vm15 = vcmask 629760  }
  0xed   : > { %9061 = vmatprep.subr.msk.mxu0 %vm250_vm1, %v2297_v34  ;;  %v10473_v37 = vpop.permute.xlu1 %2979  ;;  %2466 = vrot.lane.b32.xlu0 %v10267_v28, %s11832_s27  ;;  %s11835_s27 = smov 78  }
  0xef   : > { %5574 = vrot.lane.b32.xlu1 %v10057_v1, %s9946_s17  ;;  %v10479_v39 = vpop.permute.xlu0 %2983 }
  0xf0   : > { %v2989_v24 = vsel %vm11823_vm14, %v10456_v30, %v10479_v39 }
  0xf1   : > { %v10486_v41 = vpop.permute.xlu1 %3156  ;;  %5578 = vrot.lane.b32.xlu0 %v10068_v3, %s9946_s17 }
  0xf3   : > { %2812 = vrot.lane.b32.xlu1 %v10267_v28, %s11833_s13  ;;  %9057 = vmatmul.mubr.msk.f32.vlgmr.msra.gmra.mrb[0].mxu0 %vm246_vm2, %v10484_v40  ;;  %v10496_v43 = vpop.permute.xlu0 %3154  ;;  %s11824_s13 = smov 26  }
  0xf4   : > { %9062 = vmatpush1.msk.msra.mxu0 %vm250_vm1, %v2296_v42  ;;  %2372 = vmatprep.mubr.f32.mxu0 %v11826_v0  ;;  %v2988_v42 = vsel %vm11823_vm14, %v10473_v37, %v10456_v30  ;;  %v10642_v37 = vld [vmem:[%s11802_s1 + $0x40] sm:$0x7]  ;;  %vm3333_vm14 = vcmask 621568  }
  0xf5   : > { %9067 = vmatprep.subr.msk.mxu0 %vm250_vm1, %v2470_v47  ;;  %v10504_v48 = vpop.permute.xlu1 %3327  ;;  %2639 = vrot.lane.b32.xlu0 %v10267_v28, %s11834_s19  ;;  %s11837_s19 = smov 77   ;;  %11842 = vst [vmem:[#allocation7_spill] sm:$0xff] %v10642_v37 }
  0xf7   : > { %5751 = vrot.lane.b32.xlu1 %v10068_v3, %s9947_s14  ;;  %v10510_v49 = vpop.permute.xlu0 %3152 }
  0xf9   : > { %v10517_v51 = vpop.permute.xlu1 %3325  ;;  %5749 = vrot.lane.b32.xlu0 %v10063_v2, %s9947_s14 }
  0xfb   : > { %2985 = vrot.lane.b32.xlu1 %v10267_v28, %s11835_s27  ;;  %9063 = vmatmul.mubr.msk.f32.vlgmr.msra.gmra.mrb[0].mxu0 %vm246_vm2, %v10515_v50  ;;  %v10527_v54 = vpop.permute.xlu0 %3329  ;;  %s9951_s27 = smov 7  }
  0xfc   : > { %11836 = vst [vmem:[#allocation6_spill] sm:$0xff] %v10527_v54  ;;  %9068 = vmatpush1.msk.msra.mxu0 %vm250_vm1, %v2469_v53  ;;  %2545 = vmatprep.mubr.f32.mxu0 %v11826_v0  ;;  %v3162_v53 = vsel %vm11825_vm15, %v10496_v43, %v10486_v41 }
  0xfd   : > { %9073 = vmatprep.subr.msk.mxu0 %vm250_vm1, %v2643_v56  ;;  %v10535_v58 = vpop.permute.xlu1 %3502  ;;  %5747 = vrot.lane.b32.xlu0 %v10057_v1, %s9947_s14 }
  0xff   : > { %5922 = vrot.lane.b32.xlu1 %v10063_v2, %s9948_s12  ;;  %v10541_v60 = vpop.permute.xlu0 %3500 }
 0x101   : > { %v10548_v62 = vpop.permute.xlu1 %3673  ;;  %3158 = vrot.lane.b32.xlu0 %v10267_v28, %s11837_s19  ;;  %s11840_s19 = smov 74  }
 0x103   : > { %5920 = vrot.lane.b32.xlu1 %v10057_v1, %s9948_s12  ;;  %9069 = vmatmul.mubr.msk.f32.vlgmr.msra.gmra.mrb[0].mxu0 %vm246_vm2, %v10546_v61  ;;  %v10559_v4 = vpop.permute.xlu0 %3498 }
 0x104   : > { %9074 = vmatpush1.msk.msra.mxu0 %vm250_vm1, %v2642_v63  ;;  %2718 = vmatprep.mubr.f32.mxu0 %v11826_v0  ;;  %v10649_v63 = vld [vmem:[%s10054_s10] sm:$0xff] }
 0x105   : > { %9079 = vmatprep.subr.msk.mxu0 %vm250_vm1, %v2816_v10  ;;  %v10567_v11 = vpop.permute.xlu1 %3671  ;;  %5924 = vrot.lane.b32.xlu0 %v10068_v3, %s9948_s12  ;;  %v3161_v10 = vsel %vm11825_vm15, %v10510_v49, %v10496_v43  ;;  %v10675_v49 = vcombine.high %v10649_v63, %v10649_v63  ;;  %vm3506_vm15 = vcmask 613376  }
 0x107   : > { %3504 = vrot.lane.b32.xlu1 %v10267_v28, %s11838_s24  ;;  %v10573_v13 = vpop.permute.xlu0 %3675 }
 0x109   : > { %v10580_v17 = vpop.permute.xlu1 %3848  ;;  %3331 = vrot.lane.b32.xlu0 %v10267_v28, %s11839_s18  ;;  %s9950_s18 = smov 8  }
 0x10b   : > { %6097 = vrot.lane.b32.xlu1 %v10068_v3, %s11824_s13  ;;  %9075 = vmatmul.mubr.msk.f32.vlgmr.msra.gmra.mrb[0].mxu0 %vm246_vm2, %v10578_v15  ;;  %v10591_v20 = vpop.permute.xlu0 %3846 }
 0x10c   : > { %9080 = vmatpush1.msk.msra.mxu0 %vm250_vm1, %v2815_v19  ;;  %2891 = vmatprep.mubr.f32.mxu0 %v11826_v0  ;;  %v10665_v19 = vld [vmem:[%s10054_s10 + $0x8] sm:$0xff] }
 0x10d   : > { %9085 = vmatprep.subr.msk.mxu0 %vm250_vm1, %v2989_v24  ;;  %v10599_v27 = vpop.permute.xlu1 %4019  ;;  %6095 = vrot.lane.b32.xlu0 %v10063_v2, %s11824_s13 }
 0x10f   : > { %3677 = vrot.lane.b32.xlu1 %v10267_v28, %s11840_s19  ;;  %v10605_v32 = vpop.permute.xlu0 %3844  ;;  %s11841_s19 = smov 56  }
 0x111   : > { %v10612_v34 = vpop.permute.xlu1 %4017  ;;  %6093 = vrot.lane.b32.xlu0 %v10057_v1, %s11824_s13  ;;  %s9952_s13 = smov 6  }
 0x113   : > { %6268 = vrot.lane.b32.xlu1 %v10063_v2, %s9950_s18  ;;  %9081 = vmatmul.mubr.msk.f32.vlgmr.msra.gmra.mrb[0].mxu0 %vm246_vm2, %v10610_v33  ;;  %v10623_v47 = vpop.permute.xlu0 %4021 }
 0x114   : > { %9086 = vmatpush1.msk.msra.mxu0 %vm250_vm1, %v2988_v42  ;;  %3064 = vmatprep.mubr.f32.mxu0 %v11826_v0  ;;  %v10684_v42 = vld [vmem:[%s11802_s1 + $0x44] sm:$0x7] }
 0x115   : > { %9091 = vmatprep.subr.msk.mxu0 %vm250_vm1, %v3162_v53  ;;  %v10631_v30 = vpop.permute.xlu1 %4194  ;;  %3850 = vrot.lane.b32.xlu0 %v10267_v28, %s11841_s19  ;;  %s11843_s19 = smov 54  }
 0x117   : > { %6266 = vrot.lane.b32.xlu1 %v10057_v1, %s9950_s18  ;;  %v10637_v2 = vpop.permute.xlu0 %4192 }
 0x119   : > { %v10644_v56 = vpop.permute.xlu1 %4365  ;;  %6270 = vrot.lane.b32.xlu0 %v10068_v3, %s9950_s18  ;;  %v3335_v3 = vsel %vm3333_vm14, %v10504_v48, %v10527_v54 }
 0x11b   : > { %4196 = vrot.lane.b32.xlu1 %v10267_v28, %s11843_s19  ;;  %9087 = vmatmul.mubr.msk.f32.vlgmr.msra.gmra.mrb[0].mxu0 %vm246_vm2, %v10642_v37  ;;  %v10658_v1 = vpop.permute.xlu0 %4190  ;;  %v11845_v37 = vmov 0.0   ;;  %s9954_s19 = smov 4  }
 0x11c   : > { %9092 = vmatpush1.msk.msra.mxu0 %vm250_vm1, %v3161_v10  ;;  %3237 = vmatprep.mubr.f32.mxu0 %v11826_v0  ;;  %v3334_v10 = vsel %vm3333_vm14, %v10517_v51, %v10504_v48  ;;  %v3508_v0 = vsel %vm3506_vm15, %v10541_v60, %v10535_v58  ;;  %v225_v51 = vld [vmem:[%s10054_s10 + $0x8] sm:$0xf] }
 0x11d   : > { %9097 = vmatprep.subr.msk.mxu0 %vm250_vm1, %v3335_v3  ;;  %v10669_v43 = vpop.permute.xlu1 %4363  ;;  %4023 = vrot.lane.b32.xlu0 %v10267_v28, %s11844_s26  ;;  %s9957_s26 = smov 112  }
 0x11f   : > { %6443 = vrot.lane.b32.xlu1 %v10665_v19, %s9951_s27  ;;  %v10679_v24 = vpop.permute.xlu0 %4367 }
 0x121   : > { %v10686_v53 = vpop.permute.xlu1 %4538  ;;  %6441 = vrot.lane.b32.xlu0 %v10675_v49, %s9951_s27 }
 0x123   : > { %4369 = vrot.lane.b32.xlu1 %v10267_v28, %s9938_s7  ;;  %9093 = vmatmul.mubr.msk.f32.vlgmr.msra.gmra.mrb[0].mxu0 %vm246_vm2, %v10684_v42  ;;  %v241_v3 = vpop.permute.xlu0 %240 }
 0x124   : > { %9098 = vmatpush1.msk.msra.mxu0 %vm250_vm1, %v3334_v10  ;;  %v245_v54 = vsel %vm242_vm0, %v10188_v7, %v241_v3  ;;  %3410 = vmatprep.mubr.f32.mxu0 %v11845_v37  ;;  %vm3679_vm0 = vcmask 605184   ;;  %v3507_v10 = vsel %vm3506_vm15, %v10559_v4, %v10541_v60 }
 0x125   : > { %9103 = vmatprep.subr.msk.mxu0 %vm250_vm1, %v3508_v0  ;;  %v10705_v48 = vpop.permute.xlu1 %4536  ;;  %6439 = vrot.lane.b32.xlu0 %v10649_v63, %s9951_s27 }
 0x126   : > { %9391 = vmatpush3.msk.msra.mxu1 %vm250_vm1, %v245_v54  ;;  %v10726_v54 = vld [vmem:[%s11802_s1 + $0x48] sm:$0x7] }
 0x127   : > { %6614 = vrot.lane.b32.xlu1 %v10675_v49, %s9952_s13  ;;  %9393 = vmatmul.mubr.msk.f32.vlgmr.msra.gmra.mrb[0].mxu1 %vm246_vm2, %v10195_v9  ;;  %v10715_v7 = vpop.permute.xlu0 %4540 }
 0x128   : > { %9395 = vmatprep.subr.mxu1 %v11845_v37  ;;  %9397 = vmatprep.mubr.msk.f32.mxu1 %vm9939_vm6, %v11845_v37 }
 0x129   : > { %v737_v0 = vpop.permute.xlu1 %736  ;;  %4542 = vrot.lane.b32.xlu0 %v10267_v28, %s9940_s8  ;;  %9396 = vmatpush3.msk.msra.mxu1 %vm250_vm1, %v225_v51  ;;  %s11847_s8 = smov 26  }
 0x12a   : > { %9400 = vmatprep.subr.mxu1 %v11845_v37  ;;  %v741_v60 = vsel %vm738_vm4, %v10213_v14, %v737_v0  ;;  %v3680_v0 = vsel %vm3679_vm0, %v10567_v11, %v10548_v62  ;;  %vm4025_vm4 = vcmask 449536  }
 0x12b   : > { %6612 = vrot.lane.b32.xlu1 %v10649_v63, %s9952_s13  ;;  %9398 = vmatmul.mubr.msk.f32.vlgmr.msra.gmra.mrb[2].mxu1 %vm246_vm2, %v10225_v16  ;;  %v564_v9 = vpop.permute.xlu0 %563  ;;  %v3681_v16 = vsel %vm3679_vm0, %v10548_v62, %v10573_v13 }
 0x12c   : > { %9099 = vmatmul.mubr.msk.f32.vlgmr.msra.gmra.mrb[0].mxu0 %vm246_vm2, %v10726_v54  ;;  %v568_v3 = vsel %vm565_vm3, %v10206_v12, %v564_v9  ;;  %9402 = vmatprep.mubr.msk.f32.mxu1 %vm9939_vm6, %v11845_v37  ;;  %v10768_v9 = vld [vmem:[%s11802_s1 + $0x4c] sm:$0x7]  ;;  %vm3852_vm3 = vcmask 457728  }
 0x12d   : > { %9104 = vmatpush1.msk.msra.mxu0 %vm250_vm1, %v3507_v10  ;;  %v10746_v51 = vpop.permute.xlu1 %4713  ;;  %6616 = vrot.lane.b32.xlu0 %v10665_v19, %s9952_s13 }
 0x12e   : > { %9109 = vmatprep.subr.msk.mxu0 %vm250_vm1, %v3681_v16  ;;  %9401 = vmatpush3.msk.msra.mxu1 %vm250_vm1, %v568_v3  ;;  %v10812_v3 = vld [vmem:[%s11802_s1 + $0x50] sm:$0x7]  ;;  %v4027_v16 = vsel %vm4025_vm4, %v10599_v27, %v10623_v47 }
 0x12f   : > { %9405 = vmatprep.subr.mxu1 %v11845_v37  ;;  %4888 = vrot.lane.b32.xlu1 %v10267_v28, %s9942_s11  ;;  %v10755_v12 = vpop.permute.xlu0 %4711  ;;  %s9953_s11 = smov 5  }
 0x130   : > { %9403 = vmatmul.mubr.msk.f32.vlgmr.msra.gmra.mrb[4].mxu1 %vm246_vm2, %v10250_v23  ;;  %3583 = vmatprep.mubr.f32.mxu0 %v11845_v37 }
 0x131   : > { %9406 = vmatpush3.msk.msra.mxu1 %vm250_vm1, %v741_v60  ;;  %v910_v4 = vpop.permute.xlu1 %909  ;;  %4715 = vrot.lane.b32.xlu0 %v10267_v28, %s9941_s9  ;;  %s9958_s9 = smov 111  }
 0x132   : > { %v914_v14 = vsel %vm911_vm5, %v10243_v22, %v910_v4  ;;  %9407 = vmatprep.mubr.msk.f32.mxu1 %vm9939_vm6, %v11845_v37  ;;  %9410 = vmatprep.subr.mxu1 %v11845_v37  ;;  %v3854_v22 = vsel %vm3852_vm3, %v10591_v20, %v10580_v17  ;;  %v10850_v4 = vld [vmem:[%s11802_s1 + $0x54] sm:$0x7]  ;;  %vm4198_vm5 = vcmask 441344  }
 0x133   : > { %6789 = vrot.lane.b32.xlu1 %v10665_v19, %s9953_s11  ;;  %v10777_v23 = vpop.permute.xlu0 %4709 }
 0x134   : > { %9408 = vmatmul.mubr.msk.f32.vlgmr.msra.gmra.mrb[6].mxu1 %vm246_vm2, %v10277_v31  ;;  %9105 = vmatmul.mubr.msk.f32.vlgmr.msra.gmra.mrb[0].mxu0 %vm246_vm2, %v10768_v9 }
 0x135   : > { %9411 = vmatpush3.msk.msra.mxu1 %vm250_vm1, %v914_v14  ;;  %9110 = vmatpush1.msk.msra.mxu0 %vm250_vm1, %v3680_v0  ;;  %v10791_v10 = vpop.permute.xlu1 %4884  ;;  %v4026_v0 = vsel %vm4025_vm4, %v10612_v34, %v10599_v27 }
 0x136   : > { %9115 = vmatprep.subr.msk.mxu0 %vm250_vm1, %v3854_v22  ;;  %6787 = vrot.lane.b32.xlu0 %v10675_v49, %s9953_s11 }
 0x137   : > { %5061 = vrot.lane.b32.xlu1 %v10267_v28, %s9943_s15  ;;  %v1083_v31 = vpop.permute.xlu0 %1082  ;;  %9412 = vmatprep.mubr.msk.f32.mxu1 %vm9939_vm6, %v11845_v37  ;;  %s9738_s15 = smul.u32 192, %s10020_s4 }
 0x138   : > { %v1087_v62 = vsel %vm1084_vm7, %v10253_v25, %v1083_v31  ;;  %9415 = vmatprep.subr.mxu1 %v11845_v37  ;;  %9413 = vmatmul.mubr.msk.f32.vlgmr.msra.gmra.mrb[8].mxu1 %vm246_vm2, %v10302_v38  ;;  %v3853_v38 = vsel %vm3852_vm3, %v10605_v32, %v10591_v20  ;;  %vm4371_vm7 = vcmask 433152   ;;  %v4199_v31 = vsel %vm4198_vm5, %v10658_v1, %v10637_v2 }
 0x139   : > { %v10805_v11 = vpop.permute.xlu1 %4882  ;;  %9416 = vmatpush3.msk.msra.mxu1 %vm250_vm1, %v1087_v62  ;;  %3756 = vmatprep.mubr.f32.mxu0 %v11845_v37  ;;  %v4372_v1 = vsel %vm4371_vm7, %v10669_v43, %v10644_v56  ;;  %v10974_v43 = vld [vmem:[%s10054_s10 + $0xc] sm:$0xff] }
 0x13a   : > { %6785 = vrot.lane.b32.xlu0 %v10649_v63, %s9953_s11  ;;  %9417 = vmatprep.mubr.msk.f32.mxu1 %vm9939_vm6, %v11845_v37 }
 0x13b   : > { %6960 = vrot.lane.b32.xlu1 %v10675_v49, %s9954_s19  ;;  %v10820_v25 = vpop.permute.xlu0 %4886  ;;  %9420 = vmatprep.subr.mxu1 %v11845_v37 }
 0x13c   : > { %9111 = vmatmul.mubr.msk.f32.vlgmr.msra.gmra.mrb[0].mxu0 %vm246_vm2, %v10812_v3  ;;  %9418 = vmatmul.mubr.msk.f32.vlgmr.msra.gmra.mrb[10].mxu1 %vm246_vm2, %v10325_v45 }
 0x13d   : > { %9116 = vmatpush1.msk.msra.mxu0 %vm250_vm1, %v3853_v38  ;;  %v1429_v60 = vpop.permute.xlu1 %1428  ;;  %9422 = vmatprep.mubr.msk.f32.mxu1 %vm9939_vm6, %v11845_v37  ;;  %v4373_v38 = vsel %vm4371_vm7, %v10644_v56, %v10679_v24  ;;  %v10966_v56 = vld [vmem:[%s10054_s10 + $0x4] sm:$0xff] }
 0x13e   : > { %9121 = vmatprep.subr.msk.mxu0 %vm250_vm1, %v4027_v16  ;;  %5234 = vrot.lane.b32.xlu0 %v10267_v28, %s9944_s16  ;;  %v1433_v14 = vsel %vm1430_vm9, %v10293_v36, %v1429_v60  ;;  %v4200_v36 = vsel %vm4198_vm5, %v10637_v2, %v10631_v30  ;;  %s9955_s16 = smov 3   ;;  %v10934_v2 = vld [vmem:[%s11802_s1 + $0x5c] sm:$0x7]  ;;  %vm4717_vm9 = vcmask 416768  }
 0x13f   : > { %6958 = vrot.lane.b32.xlu1 %v10649_v63, %s9954_s19  ;;  %v1256_v20 = vpop.permute.xlu0 %1255  ;;  %3929 = vmatprep.mubr.f32.mxu0 %v11845_v37 }
 0x140   : > { %v1260_v45 = vsel %vm1257_vm8, %v10288_v35, %v1256_v20  ;;  %vm4544_vm8 = vcmask 424960  }
 0x141   : > { %v10844_v32 = vpop.permute.xlu1 %5059  ;;  %9421 = vmatpush3.msk.msra.mxu1 %vm250_vm1, %v1260_v45  ;;  %v4546_v60 = vsel %vm4544_vm8, %v10686_v53, %v10715_v7 }
 0x142   : > { %6962 = vrot.lane.b32.xlu0 %v10665_v19, %s9954_s19  ;;  %9425 = vmatprep.subr.mxu1 %v11845_v37 }
 0x143   : > { %5580 = vrot.lane.b32.xlu1 %v10267_v28, %s9946_s17  ;;  %9423 = vmatmul.mubr.msk.f32.vlgmr.msra.gmra.mrb[12].mxu1 %vm246_vm2, %v10348_v52  ;;  %v10861_v35 = vpop.permute.xlu0 %5057  ;;  %s9961_s17 = smov 108  }
 0x144   : > { %9426 = vmatpush3.msk.msra.mxu1 %vm250_vm1, %v1433_v14  ;;  %9117 = vmatmul.mubr.msk.f32.vlgmr.msra.gmra.mrb[0].mxu0 %vm246_vm2, %v10850_v4  ;;  %v10982_v14 = vld [vmem:[%s11802_s1 + $0x60] sm:$0x7] }
 0x145   : > { %9122 = vmatpush1.msk.msra.mxu0 %vm250_vm1, %v4026_v0  ;;  %v1602_v22 = vpop.permute.xlu1 %1601  ;;  %9427 = vmatprep.mubr.msk.f32.mxu1 %vm9939_vm6, %v11845_v37  ;;  %v10995_v0 = vcombine.high %v10665_v19, %v10665_v19 }
 0x146   : > { %9127 = vmatprep.subr.msk.mxu0 %vm250_vm1, %v4200_v36  ;;  %v1606_v52 = vsel %vm1603_vm10, %v10320_v44, %v1602_v22  ;;  %5407 = vrot.lane.b32.xlu0 %v10267_v28, %s9945_s6  ;;  %v10894_v44 = vld [vmem:[%s11802_s1 + $0x58] sm:$0x7]  ;;  %s9956_s6 = smov 2   ;;  %vm11846_vm10 = vcmask 809984   ;;  %v11034_v22 = vld [vmem:[%s11802_s1 + $0x64] sm:$0x7] }
 0x147   : > { %9430 = vmatprep.subr.mxu1 %v11845_v37  ;;  %7134 = vrot.lane.b32.xlu1 %v10665_v19, %s9955_s16  ;;  %v10883_v27 = vpop.permute.xlu0 %5055 }
 0x148   : > { %9428 = vmatmul.mubr.msk.f32.vlgmr.msra.gmra.mrb[14].mxu1 %vm246_vm2, %v10373_v59  ;;  %4102 = vmatprep.mubr.f32.mxu0 %v11845_v37 }
 0x149   : > { %9431 = vmatpush3.msk.msra.mxu1 %vm250_vm1, %v1606_v52  ;;  %v10889_v34 = vpop.permute.xlu1 %5230  ;;  %9432 = vmatprep.mubr.msk.f32.mxu1 %vm9939_vm6, %v11845_v37 }
 0x14a   : > { %7132 = vrot.lane.b32.xlu0 %v10675_v49, %s9955_s16  ;;  %9435 = vmatprep.subr.mxu1 %v11845_v37 }
 0x14b   : > { %5753 = vrot.lane.b32.xlu1 %v10267_v28, %s9947_s14  ;;  %v1775_v59 = vpop.permute.xlu0 %1774 }
 0x14c   : > { %9123 = vmatmul.mubr.msk.f32.vlgmr.msra.gmra.mrb[0].mxu0 %vm246_vm2, %v10894_v44  ;;  %v1779_v62 = vsel %vm1776_vm11, %v10327_v46, %v1775_v59  ;;  %9433 = vmatmul.mubr.msk.f32.vlgmr.msra.gmra.mrb[16].mxu1 %vm246_vm2, %v10398_v6  ;;  %vm11848_vm11 = vcmask 801792  }
 0x14d   : > { %9128 = vmatpush1.msk.msra.mxu0 %vm250_vm1, %v4199_v31  ;;  %v10916_v16 = vpop.permute.xlu1 %5228  ;;  %9436 = vmatpush3.msk.msra.mxu1 %vm250_vm1, %v1779_v62  ;;  %v11072_v31 = vld [vmem:[%s11802_s1 + $0x68] sm:$0x7] }
 0x14e   : > { %9133 = vmatprep.subr.msk.mxu0 %vm250_vm1, %v4373_v38  ;;  %7130 = vrot.lane.b32.xlu0 %v10649_v63, %s9955_s16 }
 0x14f   : > { %7305 = vrot.lane.b32.xlu1 %v10675_v49, %s9956_s6  ;;  %v10924_v46 = vpop.permute.xlu0 %5232  ;;  %9437 = vmatprep.mubr.msk.f32.mxu1 %vm9939_vm6, %v11845_v37 }
 0x150   : > { %4275 = vmatprep.mubr.f32.mxu0 %v11845_v37  ;;  %9438 = vmatmul.mubr.msk.f32.vlgmr.msra.gmra.mrb[18].mxu1 %vm246_vm2, %v10425_v18 }
 0x151   : > { %v2121_v6 = vpop.permute.xlu1 %2120  ;;  %9440 = vmatprep.subr.mxu1 %v11845_v37  ;;  %9442 = vmatprep.mubr.msk.f32.mxu1 %vm9939_vm6, %v11845_v37 }
 0x152   : > { %5926 = vrot.lane.b32.xlu0 %v10267_v28, %s9948_s12 }
 0x153   : > { %7303 = vrot.lane.b32.xlu1 %v10649_v63, %s9956_s6  ;;  %v1948_v18 = vpop.permute.xlu0 %1947  ;;  %v2125_v63 = vsel %vm2122_vm13, %v10364_v57, %v2121_v6  ;;  %vm11849_vm13 = vcmask 654336  }
 0x154   : > { %9129 = vmatmul.mubr.msk.f32.vlgmr.msra.gmra.mrb[0].mxu0 %vm246_vm2, %v10934_v2  ;;  %v1952_v49 = vsel %vm1949_vm12, %v10357_v55, %v1948_v18  ;;  %vm4890_vm12 = vcmask 408576  }
 0x155   : > { %9134 = vmatpush1.msk.msra.mxu0 %vm250_vm1, %v4372_v1  ;;  %v10954_v20 = vpop.permute.xlu1 %5405  ;;  %9441 = vmatpush3.msk.msra.mxu1 %vm250_vm1, %v1952_v49  ;;  %v4892_v52 = vsel %vm4890_vm12, %v10791_v10, %v10820_v25  ;;  %v4891_v38 = vsel %vm4890_vm12, %v10805_v11, %v10791_v10  ;;  %v11853_v49 = vld [vmem:[#allocation7_spill] sm:$0xff] }
 0x156   : > { %9139 = vmatprep.subr.msk.mxu0 %vm250_vm1, %v4546_v60  ;;  %7307 = vrot.lane.b32.xlu0 %v10665_v19, %s9956_s6 }
 0x157   : > { %9445 = vmatprep.subr.mxu1 %v11845_v37  ;;  %6272 = vrot.lane.b32.xlu1 %v10267_v28, %s9950_s18  ;;  %v10963_v55 = vpop.permute.xlu0 %5403 }
 0x158   : > { %9443 = vmatmul.mubr.msk.f32.vlgmr.msra.gmra.mrb[20].mxu1 %vm246_vm2, %v10454_v29  ;;  %4448 = vmatprep.mubr.f32.mxu0 %v11845_v37  ;;  %v10991_v29 = vcombine.high %v10966_v56, %v10966_v56 }
 0x159   : > { %9446 = vmatpush3.msk.msra.mxu1 %vm250_vm1, %v2125_v63  ;;  %v2294_v45 = vpop.permute.xlu1 %2293  ;;  %9447 = vmatprep.mubr.msk.f32.mxu1 %vm9939_vm6, %v11845_v37 }
 0x15a   : > { %v2298_v57 = vsel %vm11846_vm10, %v10393_v5, %v2294_v45  ;;  %6099 = vrot.lane.b32.xlu0 %v10267_v28, %s11847_s8  ;;  %9450 = vmatprep.subr.mxu1 %v11845_v37  ;;  %v4545_v28 = vsel %vm4544_vm8, %v10705_v48, %v10686_v53  ;;  %v4719_v5 = vsel %vm4717_vm9, %v10755_v12, %v10746_v51  ;;  %vm5063_vm10 = vcmask 261120  }
 0x15b   : > { %7480 = vrot.lane.b32.xlu1 %v10974_v43, %s9957_s26  ;;  %v10999_v36 = vpop.permute.xlu0 %5401  ;;  %v5064_v18 = vsel %vm5063_vm10, %v10883_v27, %v10861_v35  ;;  %v11156_v27 = vld [vmem:[%s11802_s1 + $0x70] sm:$0x7] }
 0x15c   : > { %9448 = vmatmul.mubr.msk.f32.vlgmr.msra.gmra.mrb[22].mxu1 %vm246_vm2, %v10484_v40  ;;  %9135 = vmatmul.mubr.msk.f32.vlgmr.msra.gmra.mrb[0].mxu0 %vm246_vm2, %v10982_v14 }
 0x15d   : > { %9451 = vmatpush3.msk.msra.mxu1 %vm250_vm1, %v2298_v57  ;;  %9140 = vmatpush1.msk.msra.mxu0 %vm250_vm1, %v4545_v28  ;;  %v11013_v19 = vpop.permute.xlu1 %5576  ;;  %v11170_v57 = vcombine.high %v10974_v43, %v10974_v43  ;;  %v11854_v28 = vld [vmem:[#allocation6_spill] sm:$0xff] }
 0x15e   : > { %9145 = vmatprep.subr.msk.mxu0 %vm250_vm1, %v4719_v5  ;;  %7478 = vrot.lane.b32.xlu0 %v10991_v29, %s9957_s26 }
 0x15f   : > { %6445 = vrot.lane.b32.xlu1 %v10995_v0, %s9951_s27  ;;  %v2467_v40 = vpop.permute.xlu0 %2466  ;;  %9452 = vmatprep.mubr.msk.f32.mxu1 %vm9939_vm6, %v11845_v37 }
 0x160   : > { %v2471_v53 = vsel %vm11848_vm11, %v10400_v8, %v2467_v40  ;;  %9455 = vmatprep.subr.mxu1 %v11845_v37  ;;  %9453 = vmatmul.mubr.msk.f32.vlgmr.msra.gmra.mrb[24].mxu1 %vm246_vm2, %v10515_v50  ;;  %v4718_v50 = vsel %vm4717_vm9, %v10777_v23, %v10755_v12  ;;  %vm11850_vm11 = vcmask 646144  }
 0x161   : > { %v11027_v48 = vpop.permute.xlu1 %5574  ;;  %9456 = vmatpush3.msk.msra.mxu1 %vm250_vm1, %v2471_v53  ;;  %4621 = vmatprep.mubr.f32.mxu0 %v11845_v37 }
 0x162   : > { %7476 = vrot.lane.b32.xlu0 %v10966_v56, %s9957_s26  ;;  %9457 = vmatprep.mubr.msk.f32.mxu1 %vm9939_vm6, %v11845_v37 }
 0x163   : > { %7651 = vrot.lane.b32.xlu1 %v10991_v29, %s9958_s9  ;;  %v11042_v8 = vpop.permute.xlu0 %5578  ;;  %9460 = vmatprep.subr.mxu1 %v11845_v37 }
 0x164   : > { %9141 = vmatmul.mubr.msk.f32.vlgmr.msra.gmra.mrb[0].mxu0 %vm246_vm2, %v11034_v22  ;;  %9458 = vmatmul.mubr.msk.f32.vlgmr.msra.gmra.mrb[26].mxu1 %vm246_vm2, %v10546_v61 }
 0x165   : > { %9146 = vmatpush1.msk.msra.mxu0 %vm250_vm1, %v4718_v50  ;;  %v2813_v59 = vpop.permute.xlu1 %2812  ;;  %9462 = vmatprep.mubr.msk.f32.mxu1 %vm9939_vm6, %v11845_v37 }
 0x166   : > { %9151 = vmatprep.subr.msk.mxu0 %vm250_vm1, %v4892_v52  ;;  %6618 = vrot.lane.b32.xlu0 %v10995_v0, %s9952_s13  ;;  %v2817_v62 = vsel %vm11850_vm11, %v10443_v26, %v2813_v59  ;;  %v5065_v26 = vsel %vm5063_vm10, %v10861_v35, %v10844_v32  ;;  %s9959_s13 = smov 110   ;;  %vm5236_vm11 = vcmask 252928  }
 0x167   : > { %7649 = vrot.lane.b32.xlu1 %v10966_v56, %s9958_s9  ;;  %v2640_v12 = vpop.permute.xlu0 %2639  ;;  %4794 = vmatprep.mubr.f32.mxu0 %v11845_v37  ;;  %v5238_v60 = vsel %vm5236_vm11, %v10889_v34, %v10924_v46  ;;  %v5237_v45 = vsel %vm5236_vm11, %v10916_v16, %v10889_v34 }
 0x168   : > { %v2644_v61 = vsel %vm11849_vm13, %v10436_v21, %v2640_v12  ;;  %vm11851_vm13 = vcmask 637952  }
 0x169   : > { %v11066_v23 = vpop.permute.xlu1 %5751  ;;  %9461 = vmatpush3.msk.msra.mxu1 %vm250_vm1, %v2644_v61 }
 0x16a   : > { %7653 = vrot.lane.b32.xlu0 %v10974_v43, %s9958_s9  ;;  %9465 = vmatprep.subr.mxu1 %v11845_v37 }
 0x16b   : > { %6964 = vrot.lane.b32.xlu1 %v10995_v0, %s9954_s19  ;;  %9463 = vmatmul.mubr.msk.f32.vlgmr.msra.gmra.mrb[28].mxu1 %vm246_vm2, %v10578_v15  ;;  %v11083_v21 = vpop.permute.xlu0 %5749 }
 0x16c   : > { %9466 = vmatpush3.msk.msra.mxu1 %vm250_vm1, %v2817_v62  ;;  %9147 = vmatmul.mubr.msk.f32.vlgmr.msra.gmra.mrb[0].mxu0 %vm246_vm2, %v11072_v31 }
 0x16d   : > { %9152 = vmatpush1.msk.msra.mxu0 %vm250_vm1, %v4891_v38  ;;  %v2986_v6 = vpop.permute.xlu1 %2985  ;;  %9467 = vmatprep.mubr.msk.f32.mxu1 %vm9939_vm6, %v11845_v37  ;;  %v11285_v38 = vld [vmem:[%s11802_s1 + $0x7c] sm:$0x7] }
 0x16e   : > { %9157 = vmatprep.subr.msk.mxu0 %vm250_vm1, %v5065_v26  ;;  %v2990_v15 = vsel %vm11851_vm13, %v10479_v39, %v2986_v6  ;;  %6791 = vrot.lane.b32.xlu0 %v10995_v0, %s9953_s11  ;;  %v11116_v39 = vld [vmem:[%s11802_s1 + $0x6c] sm:$0x7]  ;;  %vm11852_vm13 = vcmask 629760   ;;  %s9960_s11 = smov 109  }
 0x16f   : > { %9470 = vmatprep.subr.mxu1 %v11845_v37  ;;  %7826 = vrot.lane.b32.xlu1 %v10974_v43, %s9959_s13  ;;  %v11105_v10 = vpop.permute.xlu0 %5747 }
 0x170   : > { %9468 = vmatmul.mubr.msk.f32.vlgmr.msra.gmra.mrb[30].mxu1 %vm246_vm2, %v10610_v33  ;;  %4967 = vmatprep.mubr.f32.mxu0 %v11845_v37 }
 0x171   : > { %9471 = vmatpush3.msk.msra.mxu1 %vm250_vm1, %v2990_v15  ;;  %v11111_v11 = vpop.permute.xlu1 %5922  ;;  %9472 = vmatprep.mubr.msk.f32.mxu1 %vm9939_vm6, %v11845_v37 }
 0x172   : > { %7824 = vrot.lane.b32.xlu0 %v10991_v29, %s9959_s13  ;;  %9475 = vmatprep.subr.mxu1 %v11845_v37 }
 0x173   : > { %7136 = vrot.lane.b32.xlu1 %v10995_v0, %s9955_s16  ;;  %v3159_v33 = vpop.permute.xlu0 %3158  ;;  %s9965_s16 = smov [#allocation3]  }
 0x174   : > { %9153 = vmatmul.mubr.msk.f32.vlgmr.msra.gmra.mrb[0].mxu0 %vm246_vm2, %v11116_v39  ;;  %v3163_v1 = vsel %vm11852_vm13, %v10486_v41, %v3159_v33  ;;  %9473 = vmatmul.mubr.msk.f32.vlgmr.msra.gmra.mrb[32].mxu1 %vm246_vm2, %v11853_v49  ;;  %vm5409_vm13 = vcmask 244736   ;;  %s9854_s18 = sshll.u32 %s9965_s16, 4  ;;  %s9855_s18 = int_to_ptr.vmem [resolvable:$false] %s9854_s18 }
 0x175   : > { %9158 = vmatpush1.msk.msra.mxu0 %vm250_vm1, %v5064_v18  ;;  %v11138_v63 = vpop.permute.xlu1 %5920  ;;  %9476 = vmatpush3.msk.msra.mxu1 %vm250_vm1, %v3163_v1  ;;  %v11361_v18 = vld [vmem:[%s11802_s1 + $0x84] sm:$0x7] }
 0x176   : > { %9163 = vmatprep.subr.msk.mxu0 %vm250_vm1, %v5238_v60  ;;  %7822 = vrot.lane.b32.xlu0 %v10966_v56, %s9959_s13 }
 0x177   : > { %7997 = vrot.lane.b32.xlu1 %v10991_v29, %s9960_s11  ;;  %v11146_v41 = vpop.permute.xlu0 %5924  ;;  %9477 = vmatprep.mubr.msk.f32.mxu1 %vm9939_vm6, %v11845_v37 }
 0x178   : > { %9478 = vmatmul.mubr.msk.f32.vlgmr.msra.gmra.mrb[34].mxu1 %vm246_vm2, %v10684_v42  ;;  %5140 = vmatprep.mubr.f32.mxu0 %v11845_v37 }
 0x179   : > { %v3505_v35 = vpop.permute.xlu1 %3504  ;;  %9480 = vmatprep.subr.mxu1 %v11845_v37  ;;  %9482 = vmatprep.mubr.msk.f32.mxu1 %vm9939_vm6, %v11845_v37 }
 0x17a   : > { %7309 = vrot.lane.b32.xlu0 %v10995_v0, %s9956_s6  ;;  %v5411_v0 = vsel %vm5409_vm13, %v10963_v55, %v10954_v20  ;;  %v3509_v34 = vsel %vm3506_vm15, %v10535_v58, %v3505_v35  ;;  %s9856_s6 = scalar_lea.vmem %s9855_s18, 384 }
 0x17b   : > { %7995 = vrot.lane.b32.xlu1 %v10966_v56, %s9960_s11  ;;  %v3332_v42 = vpop.permute.xlu0 %3331 }
 0x17c   : > { %9159 = vmatmul.mubr.msk.f32.vlgmr.msra.gmra.mrb[0].mxu0 %vm246_vm2, %v11156_v27  ;;  %v3336_v5 = vsel %vm3333_vm14, %v11854_v28, %v3332_v42  ;;  %vm5582_vm14 = vcmask 236544  }
 0x17d   : > { %9164 = vmatpush1.msk.msra.mxu0 %vm250_vm1, %v5237_v45  ;;  %v11180_v40 = vpop.permute.xlu1 %6097  ;;  %9481 = vmatpush3.msk.msra.mxu1 %vm250_vm1, %v3336_v5  ;;  %v5583_v12 = vsel %vm5582_vm14, %v11027_v48, %v11013_v19 }
 0x17e   : > { %9169 = vmatprep.subr.msk.mxu0 %vm250_vm1, %v5411_v0  ;;  %7999 = vrot.lane.b32.xlu0 %v10974_v43, %s9960_s11  ;;  %v11428_v0 = vld [vmem:[%s11802_s1 + $0x8c] sm:$0x7] }
 0x17f   : > { %9483 = vmatmul.mubr.msk.f32.vlgmr.msra.gmra.mrb[36].mxu1 %vm246_vm2, %v10726_v54  ;;  %9485 = vmatprep.subr.mxu1 %v11845_v37  ;;  %v11191_v16 = vpop.permute.xlu0 %6095  ;;  %v11207_v54 = vld [vmem:[%s11802_s1 + $0x74] sm:$0x7] }
 0x180   : > { %7655 = vrot.lane.b32.xlu1 %v11170_v57, %s9958_s9  ;;  %9486 = vmatpush3.msk.msra.mxu1 %vm250_vm1, %v3509_v34  ;;  %s9962_s9 = smov 107  }
 0x181   : > { %v3678_v53 = vpop.permute.xlu1 %3677  ;;  %9487 = vmatprep.mubr.msk.f32.mxu1 %vm9939_vm6, %v11845_v37  ;;  %9490 = vmatprep.subr.mxu1 %v11845_v37 }
 0x182   : > { %v3682_v58 = vsel %vm3679_vm0, %v10573_v13, %v3678_v53  ;;  %7482 = vrot.lane.b32.xlu0 %v11170_v57, %s9957_s26  ;;  %5313 = vmatprep.mubr.f32.mxu0 %v11845_v37  ;;  %v5410_v13 = vsel %vm5409_vm13, %v10999_v36, %v10963_v55  ;;  %vm5755_vm0 = vcmask 228352  }
 0x183   : > { %9488 = vmatmul.mubr.msk.f32.vlgmr.msra.gmra.mrb[38].mxu1 %vm246_vm2, %v10768_v9  ;;  %v11211_v50 = vpop.permute.xlu0 %6093  ;;  %v5584_v9 = vsel %vm5582_vm14, %v11013_v19, %v11042_v8 }
 0x184   : > { %8172 = vrot.lane.b32.xlu1 %v10974_v43, %s9961_s17  ;;  %9491 = vmatpush3.msk.msra.mxu1 %vm250_vm1, %v3682_v58 }
 0x185   : > { %9165 = vmatmul.mubr.msk.f32.vlgmr.msra.gmra.mrb[0].mxu0 %vm246_vm2, %v11207_v54  ;;  %v11221_v52 = vpop.permute.xlu1 %6268  ;;  %9492 = vmatprep.mubr.msk.f32.mxu1 %vm9939_vm6, %v11845_v37 }
 0x186   : > { %9170 = vmatpush1.msk.msra.mxu0 %vm250_vm1, %v5410_v13  ;;  %8170 = vrot.lane.b32.xlu0 %v10991_v29, %s9961_s17 }
 0x187   : > { %9175 = vmatprep.subr.msk.mxu0 %vm250_vm1, %v5584_v9  ;;  %9493 = vmatmul.mubr.msk.f32.vlgmr.msra.gmra.mrb[40].mxu1 %vm246_vm2, %v10812_v3  ;;  %v3851_v55 = vpop.permute.xlu0 %3850  ;;  %v11250_v3 = vld [vmem:[%s11802_s1 + $0x78] sm:$0x7] }
 0x188   : > { %7828 = vrot.lane.b32.xlu1 %v11170_v57, %s9959_s13  ;;  %v3855_v36 = vsel %vm3852_vm3, %v10580_v17, %v3851_v55  ;;  %9495 = vmatprep.subr.mxu1 %v11845_v37  ;;  %vm5928_vm3 = vcmask 220160   ;;  %s9963_s13 = smov 106  }
 0x189   : > { %v11239_v59 = vpop.permute.xlu1 %6266  ;;  %9496 = vmatpush3.msk.msra.mxu1 %vm250_vm1, %v3855_v36  ;;  %9497 = vmatprep.mubr.msk.f32.mxu1 %vm9939_vm6, %v11845_v37 }
 0x18a   : > { %8168 = vrot.lane.b32.xlu0 %v10966_v56, %s9961_s17  ;;  %5486 = vmatprep.mubr.f32.mxu0 %v11845_v37 }
 0x18b   : > { %9498 = vmatmul.mubr.msk.f32.vlgmr.msra.gmra.mrb[42].mxu1 %vm246_vm2, %v10850_v4  ;;  %v11254_v17 = vpop.permute.xlu0 %6270  ;;  %9500 = vmatprep.subr.mxu1 %v11845_v37  ;;  %v5757_v4 = vsel %vm5755_vm0, %v11083_v21, %v11066_v23 }
 0x18c   : > { %8343 = vrot.lane.b32.xlu1 %v10991_v29, %s9962_s9  ;;  %9502 = vmatprep.mubr.msk.f32.mxu1 %vm9939_vm6, %v11845_v37 }
 0x18d   : > { %9171 = vmatmul.mubr.msk.f32.vlgmr.msra.gmra.mrb[0].mxu0 %vm246_vm2, %v11250_v3  ;;  %v4197_v61 = vpop.permute.xlu1 %4196 }
 0x18e   : > { %9176 = vmatpush1.msk.msra.mxu0 %vm250_vm1, %v5583_v12  ;;  %8001 = vrot.lane.b32.xlu0 %v11170_v57, %s9960_s11 }
 0x18f   : > { %9181 = vmatprep.subr.msk.mxu0 %vm250_vm1, %v5757_v4  ;;  %v4024_v62 = vpop.permute.xlu0 %4023  ;;  %5659 = vmatprep.mubr.f32.mxu0 %v11845_v37 }
 0x190   : > { %v4028_v19 = vsel %vm4025_vm4, %v10623_v47, %v4024_v62  ;;  %8341 = vrot.lane.b32.xlu1 %v10966_v56, %s9962_s9  ;;  %v4201_v47 = vsel %vm4198_vm5, %v10631_v30, %v4197_v61  ;;  %v5930_v30 = vsel %vm5928_vm3, %v11111_v11, %v11146_v41  ;;  %vm6101_vm4 = vcmask 211968  }
 0x191   : > { %v11276_v48 = vpop.permute.xlu1 %6443  ;;  %9501 = vmatpush3.msk.msra.mxu1 %vm250_vm1, %v4028_v19  ;;  %vm6274_vm5 = vcmask 64512   ;;  %v6102_v1 = vsel %vm6101_vm4, %v11211_v50, %v11191_v16  ;;  %v11456_v50 = vld [vmem:[%s11802_s1 + $0x90] sm:$0x7] }
 0x192   : > { %8345 = vrot.lane.b32.xlu0 %v10974_v43, %s9962_s9  ;;  %9503 = vmatmul.mubr.msk.f32.vlgmr.msra.gmra.mrb[44].mxu1 %vm246_vm2, %v10894_v44  ;;  %v5756_v44 = vsel %vm5755_vm0, %v11105_v10, %v11083_v21  ;;  %v6276_v60 = vsel %vm6274_vm5, %v11221_v52, %v11254_v17 }
 0x193   : > { %9505 = vmatprep.subr.mxu1 %v11845_v37  ;;  %v11290_v26 = vpop.permute.xlu0 %6441  ;;  %9507 = vmatprep.mubr.msk.f32.mxu1 %vm9939_vm6, %v11845_v37 }
 0x194   : > { %9506 = vmatpush3.msk.msra.mxu1 %vm250_vm1, %v4201_v47  ;;  %8347 = vrot.lane.b32.xlu1 %v11170_v57, %s9962_s9  ;;  %s8692_s9 = sld [smem:[#allocation2]] }
 0x195   : > { %9177 = vmatmul.mubr.msk.f32.vlgmr.msra.gmra.mrb[0].mxu0 %vm246_vm2, %v11285_v38  ;;  %v4370_v6 = vpop.permute.xlu1 %4369  ;;  %9510 = vmatprep.subr.mxu1 %v11845_v37 }
 0x196   : > { %9182 = vmatpush1.msk.msra.mxu0 %vm250_vm1, %v5756_v44  ;;  %v4374_v15 = vsel %vm4371_vm7, %v10679_v24, %v4370_v6  ;;  %8174 = vrot.lane.b32.xlu0 %v11170_v57, %s9961_s17  ;;  %v11326_v24 = vld [vmem:[%s11802_s1 + $0x80] sm:$0x7] }
 0x197   : > { %9187 = vmatprep.subr.msk.mxu0 %vm250_vm1, %v5930_v30  ;;  %9508 = vmatmul.mubr.msk.f32.vlgmr.msra.gmra.mrb[46].mxu1 %vm246_vm2, %v10934_v2  ;;  %v11313_v21 = vpop.permute.xlu0 %6439 }
 0x198   : > { %9511 = vmatpush3.msk.msra.mxu1 %vm250_vm1, %v4374_v15  ;;  %8518 = vrot.lane.b32.xlu1 %v10974_v43, %s9963_s13 }
 0x199   : > { %v11317_v10 = vpop.permute.xlu1 %6614  ;;  %9512 = vmatprep.mubr.msk.f32.mxu1 %vm9939_vm6, %v11845_v37  ;;  %5832 = vmatprep.mubr.f32.mxu0 %v11845_v37 }
 0x19a   : > { %8516 = vrot.lane.b32.xlu0 %v10991_v29, %s9963_s13  ;;  %9515 = vmatprep.subr.mxu1 %v11845_v37  ;;  %v5929_v29 = vsel %vm5928_vm3, %v11138_v63, %v11111_v11 }
 0x19b   : > { %9513 = vmatmul.mubr.msk.f32.vlgmr.msra.gmra.mrb[48].mxu1 %vm246_vm2, %v10982_v14  ;;  %v4543_v2 = vpop.permute.xlu0 %4542 }
 0x19c   : > { %v4547_v43 = vsel %vm4544_vm8, %v10715_v7, %v4543_v2  ;;  %8520 = vrot.lane.b32.xlu1 %v11170_v57, %s9963_s13  ;;  %9517 = vmatprep.mubr.msk.f32.mxu1 %vm9939_vm6, %v11845_v37  ;;  %v6103_v7 = vsel %vm6101_vm4, %v11191_v16, %v11180_v40  ;;  %vm6447_vm8 = vcmask 56320  }
 0x19d   : > { %9183 = vmatmul.mubr.msk.f32.vlgmr.msra.gmra.mrb[0].mxu0 %vm246_vm2, %v11326_v24  ;;  %v11341_v33 = vpop.permute.xlu1 %6612  ;;  %9516 = vmatpush3.msk.msra.mxu1 %vm250_vm1, %v4547_v43  ;;  %v6449_v45 = vsel %vm6447_vm8, %v11290_v26, %v11276_v48 }
 0x19e   : > { %9188 = vmatpush1.msk.msra.mxu0 %vm250_vm1, %v5929_v29  ;;  %8514 = vrot.lane.b32.xlu0 %v10966_v56, %s9963_s13 }
 0x19f   : > { %9193 = vmatprep.subr.msk.mxu0 %vm250_vm1, %v6103_v7  ;;  %9518 = vmatmul.mubr.msk.f32.vlgmr.msra.gmra.mrb[50].mxu1 %vm246_vm2, %v11034_v22  ;;  %v11352_v14 = vpop.permute.xlu0 %6616 }
 0x1a0   : > { %6005 = vmatprep.mubr.f32.mxu0 %v11845_v37  ;;  %9520 = vmatprep.subr.mxu1 %v11845_v37 }
 0x1a1   : > { %v4889_v11 = vpop.permute.xlu1 %4888  ;;  %9522 = vmatprep.mubr.msk.f32.mxu1 %vm9939_vm6, %v11845_v37 }
 0x1a3   : > { %v4716_v56 = vpop.permute.xlu0 %4715 }
 0x1a4   : > { %v4720_v22 = vsel %vm4717_vm9, %v10746_v51, %v4716_v56  ;;  %v4893_v51 = vsel %vm4890_vm12, %v10820_v25, %v4889_v11  ;;  %v11397_v25 = vld [vmem:[%s11802_s1 + $0x88] sm:$0x7]  ;;  %vm6620_vm9 = vcmask 48128   ;;  %vm6793_vm12 = vcmask 39936   ;;  %v9228_v11 = vld [vmem:[%s11802_s1 + $0xa0] sm:$0x7] }
 0x1a5   : > { %9189 = vmatmul.mubr.msk.f32.vlgmr.msra.gmra.mrb[0].mxu0 %vm246_vm2, %v11361_v18  ;;  %v11370_v49 = vpop.permute.xlu1 %6789  ;;  %9521 = vmatpush3.msk.msra.mxu1 %vm250_vm1, %v4720_v22  ;;  %v6622_v16 = vsel %vm6620_vm9, %v11317_v10, %v11352_v14 }
 0x1a6   : > { %9194 = vmatpush1.msk.msra.mxu0 %vm250_vm1, %v6102_v1  ;;  %9523 = vmatmul.mubr.msk.f32.vlgmr.msra.gmra.mrb[52].mxu1 %vm246_vm2, %v11072_v31 }
 0x1a7   : > { %9199 = vmatprep.subr.msk.mxu0 %vm250_vm1, %v6276_v60  ;;  %9525 = vmatprep.subr.mxu1 %v11845_v37 }
 0x1a8   : > { %9526 = vmatpush3.msk.msra.mxu1 %vm250_vm1, %v4893_v51  ;;  %v11384_v63 = vpop.permute.xlu0 %6787  ;;  %9527 = vmatprep.mubr.msk.f32.mxu1 %vm9939_vm6, %v11845_v37 }
 0x1a9   : > { %v5062_v35 = vpop.permute.xlu1 %5061  ;;  %9530 = vmatprep.subr.mxu1 %v11845_v37  ;;  %6178 = vmatprep.mubr.f32.mxu0 %v11845_v37  ;;  %v6795_v9 = vsel %vm6793_vm12, %v11384_v63, %v11370_v49 }
 0x1aa   : > { %v5066_v31 = vsel %vm5063_vm10, %v10844_v32, %v5062_v35  ;;  %9528 = vmatmul.mubr.msk.f32.vlgmr.msra.gmra.mrb[54].mxu1 %vm246_vm2, %v11116_v39  ;;  %v6275_v32 = vsel %vm6274_vm5, %v11239_v59, %v11221_v52  ;;  %v6621_v52 = vsel %vm6620_vm9, %v11341_v33, %v11317_v10  ;;  %vm7138_vm10 = vcmask 23552  }
 0x1ab   : > { %9531 = vmatpush3.msk.msra.mxu1 %vm250_vm1, %v5066_v31  ;;  %9532 = vmatprep.mubr.msk.f32.mxu1 %vm9939_vm6, %v11845_v37 }
 0x1ac   : > { %v6786_v42 = vpop.permute.xlu0 %6785  ;;  %9535 = vmatprep.subr.mxu1 %v11845_v37 }
 0x1ad   : > { %9195 = vmatmul.mubr.msk.f32.vlgmr.msra.gmra.mrb[0].mxu0 %vm246_vm2, %v11397_v25  ;;  %v11408_v39 = vpop.permute.xlu1 %6960  ;;  %v6794_v12 = vsel %vm6793_vm12, %v6786_v42, %v11384_v63  ;;  %v9234_v63 = vld [vmem:[%s11802_s1 + $0xa4] sm:$0x7] }
 0x1ae   : > { %9200 = vmatpush1.msk.msra.mxu0 %vm250_vm1, %v6275_v32  ;;  %9533 = vmatmul.mubr.msk.f32.vlgmr.msra.gmra.mrb[56].mxu1 %vm246_vm2, %v11156_v27 }
 0x1af   : > { %9205 = vmatprep.subr.msk.mxu0 %vm250_vm1, %v6449_v45  ;;  %9537 = vmatprep.mubr.msk.f32.mxu1 %vm9939_vm6, %v11845_v37 }
 0x1b0   : > { %v5235_v57 = vpop.permute.xlu0 %5234  ;;  %6351 = vmatprep.mubr.f32.mxu0 %v11845_v37 }
 0x1b1   : > { %v5239_v28 = vsel %vm5236_vm11, %v10924_v46, %v5235_v57  ;;  %v11422_v5 = vpop.permute.xlu1 %6958  ;;  %v6448_v46 = vsel %vm6447_vm8, %v11313_v21, %v11290_v26  ;;  %vm7311_vm11 = vcmask 15360  }
 0x1b2   : > { %9536 = vmatpush3.msk.msra.mxu1 %vm250_vm1, %v5239_v28  ;;  %v6966_v26 = vsel %vm246_vm2, %v11422_v5, %v11408_v39  ;;  %v9964_v28 = vmov 0   ;;  %v9240_v5 = vld [vmem:[%s11802_s1 + $0xa8] sm:$0x7] }
 0x1b3   : > { %9538 = vmatmul.mubr.msk.f32.vlgmr.msra.gmra.mrb[58].mxu1 %vm246_vm2, %v11207_v54  ;;  %9540 = vmatprep.subr.mxu1 %v11845_v37 }
 0x1b4   : > { %v11433_v27 = vpop.permute.xlu0 %6962  ;;  %9542 = vmatprep.mubr.msk.f32.mxu1 %vm9939_vm6, %v11845_v37  ;;  %9829 = vset.pattern.permute.xlu0 %v9964_v28 }
 0x1b5   : > { %9201 = vmatmul.mubr.msk.f32.vlgmr.msra.gmra.mrb[0].mxu0 %vm246_vm2, %v11428_v0  ;;  %v5581_v34 = vpop.permute.xlu1 %5580  ;;  %v6967_v62 = vsel %vm246_vm2, %v11408_v39, %v11433_v27  ;;  %v8679_v39 = vld [vmem:[%s11803_s2] sm:$0x7] }
 0x1b6   : > { %9206 = vmatpush1.msk.msra.mxu0 %vm250_vm1, %v6448_v46  ;;  %6524 = vmatprep.mubr.f32.mxu0 %v11845_v37  ;;  %v5585_v13 = vsel %vm5582_vm14, %v11042_v8, %v5581_v34  ;;  %vm7657_vm14 = vcmask 908288  }
 0x1b7   : > { %9211 = vmatprep.subr.msk.mxu0 %vm250_vm1, %v6622_v16  ;;  %8682 = vperm.xlu0 %9829, %v8679_v39  }
 0x1b8   : > { %v5408_v53 = vpop.permute.xlu0 %5407 }
 0x1b9   : > { %v5412_v58 = vsel %vm5409_vm13, %v10954_v20, %v5408_v53  ;;  %v11450_v54 = vpop.permute.xlu1 %7134  ;;  %vm7484_vm13 = vcmask 916480  }
 0x1ba   : > { %9541 = vmatpush3.msk.msra.mxu1 %vm250_vm1, %v5412_v58 }
 0x1bb   : > { %9543 = vmatmul.mubr.msk.f32.vlgmr.msra.gmra.mrb[60].mxu1 %vm246_vm2, %v11250_v3  ;;  %9545 = vmatprep.subr.mxu1 %v11845_v37 }
 0x1bc   : > { %9546 = vmatpush3.msk.msra.mxu1 %vm250_vm1, %v5585_v13  ;;  %v11464_v20 = vpop.permute.xlu0 %7132  ;;  %9547 = vmatprep.mubr.msk.f32.mxu1 %vm9939_vm6, %v11845_v37 }
 0x1bd   : > { %9207 = vmatmul.mubr.msk.f32.vlgmr.msra.gmra.mrb[0].mxu0 %vm246_vm2, %v11456_v50  ;;  %v5754_v8 = vpop.permute.xlu1 %5753  ;;  %9550 = vmatprep.subr.mxu1 %v11845_v37  ;;  %v7140_v30 = vsel %vm7138_vm10, %v11464_v20, %v11450_v54 }
 0x1be   : > { %9212 = vmatpush1.msk.msra.mxu0 %vm250_vm1, %v6621_v52  ;;  %v5758_v55 = vsel %vm5755_vm0, %v11066_v23, %v5754_v8  ;;  %6697 = vmatprep.mubr.f32.mxu0 %v11845_v37  ;;  %v9210_v23 = vld [vmem:[%s11802_s1 + $0x94] sm:$0x7]  ;;  %vm7830_vm0 = vcmask 900096  }
 0x1bf   : > { %9217 = vmatprep.subr.msk.mxu0 %vm250_vm1, %v6795_v9  ;;  %9548 = vmatmul.mubr.msk.f32.vlgmr.msra.gmra.mrb[62].mxu1 %vm246_vm2, %v11285_v38  ;;  %v9216_v38 = vld [vmem:[%s11802_s1 + $0x98] sm:$0x7] }
 0x1c0   : > { %9551 = vmatpush3.msk.msra.mxu1 %vm250_vm1, %v5758_v55  ;;  %v7131_v36 = vpop.permute.xlu0 %7130  ;;  %9552 = vmatprep.mubr.msk.f32.mxu1 %vm9939_vm6, %v11845_v37 }
 0x1c1   : > { %v11487_v59 = vpop.permute.xlu1 %7305  ;;  %9555 = vmatprep.subr.mxu1 %v11845_v37  ;;  %v7139_v2 = vsel %vm7138_vm10, %v7131_v36, %v11464_v20 }
 0x1c3   : > { %9553 = vmatmul.mubr.msk.f32.vlgmr.msra.gmra.mrb[64].mxu1 %vm246_vm2, %v11326_v24 }
 0x1c4   : > { %v5927_v3 = vpop.permute.xlu0 %5926  ;;  %9557 = vmatprep.mubr.msk.f32.mxu1 %vm9939_vm6, %v11845_v37 }
 0x1c5   : > { %9213 = vmatmul.mubr.msk.f32.vlgmr.msra.gmra.mrb[0].mxu0 %vm246_vm2, %v9210_v23  ;;  %v5931_v61 = vsel %vm5928_vm3, %v11146_v41, %v5927_v3  ;;  %v7304_v4 = vpop.permute.xlu1 %7303  ;;  %vm8003_vm3 = vcmask 891904  }
 0x1c6   : > { %9218 = vmatpush1.msk.msra.mxu0 %vm250_vm1, %v6794_v12  ;;  %9556 = vmatpush3.msk.msra.mxu1 %vm250_vm1, %v5931_v61 }
 0x1c7   : > { %9223 = vmatprep.subr.msk.mxu0 %vm250_vm1, %v6967_v62  ;;  %9558 = vmatmul.mubr.msk.f32.vlgmr.msra.gmra.mrb[66].mxu1 %vm246_vm2, %v11361_v18 }
 0x1c8   : > { %v11510_v19 = vpop.permute.xlu0 %7307  ;;  %6870 = vmatprep.mubr.f32.mxu0 %v11845_v37  ;;  %9560 = vmatprep.subr.mxu1 %v11845_v37 }
 0x1c9   : > { %v6273_v41 = vpop.permute.xlu1 %6272  ;;  %9562 = vmatprep.mubr.msk.f32.mxu1 %vm9939_vm6, %v11845_v37  ;;  %v7313_v43 = vsel %vm7311_vm11, %v11487_v59, %v11510_v19 }
 0x1ca   : > { %v6277_v15 = vsel %vm6274_vm5, %v11254_v17, %v6273_v41  ;;  %v9222_v17 = vld [vmem:[%s11802_s1 + $0x9c] sm:$0x7]  ;;  %vm8349_vm5 = vcmask 875520  }
 0x1cc   : > { %v6100_v47 = vpop.permute.xlu0 %6099 }
 0x1cd   : > { %9219 = vmatmul.mubr.msk.f32.vlgmr.msra.gmra.mrb[0].mxu0 %vm246_vm2, %v9216_v38  ;;  %v6104_v44 = vsel %vm6101_vm4, %v11180_v40, %v6100_v47  ;;  %v11525_v6 = vpop.permute.xlu1 %7480  ;;  %vm8176_vm4 = vcmask 883712  }
 0x1ce   : > { %9224 = vmatpush1.msk.msra.mxu0 %vm250_vm1, %v6966_v26  ;;  %9561 = vmatpush3.msk.msra.mxu1 %vm250_vm1, %v6104_v44  ;;  %v9258_v44 = vld [vmem:[%s11802_s1 + $0xb4] sm:$0x7] }
 0x1cf   : > { %9229 = vmatprep.subr.msk.mxu0 %vm250_vm1, %v7140_v30  ;;  %9563 = vmatmul.mubr.msk.f32.vlgmr.msra.gmra.mrb[68].mxu1 %vm246_vm2, %v11397_v25 }
 0x1d0   : > { %9565 = vmatprep.subr.mxu1 %v11845_v37  ;;  %v7479_v40 = vpop.permute.xlu0 %7478  ;;  %9567 = vmatprep.mubr.msk.f32.mxu1 %vm9939_vm6, %v11845_v37 }
 0x1d1   : > { %9566 = vmatpush3.msk.msra.mxu1 %vm250_vm1, %v6277_v15  ;;  %v6446_v21 = vpop.permute.xlu1 %6445  ;;  %7042 = vmatprep.mubr.f32.mxu0 %v11845_v37  ;;  %v7486_v22 = vsel %vm7484_vm13, %v7479_v40, %v11525_v6 }
 0x1d2   : > { %v6450_v10 = vsel %vm6447_vm8, %v11276_v48, %v6446_v21  ;;  %9570 = vmatprep.subr.mxu1 %v11845_v37  ;;  %vm8522_vm8 = vcmask 867328  }
 0x1d3   : > { %9568 = vmatmul.mubr.msk.f32.vlgmr.msra.gmra.mrb[70].mxu1 %vm246_vm2, %v11428_v0 }
 0x1d4   : > { %9571 = vmatpush3.msk.msra.mxu1 %vm250_vm1, %v6450_v10  ;;  %v7477_v24 = vpop.permute.xlu0 %7476  ;;  %9572 = vmatprep.mubr.msk.f32.mxu1 %vm9939_vm6, %v11845_v37 }
 0x1d5   : > { %9225 = vmatmul.mubr.msk.f32.vlgmr.msra.gmra.mrb[0].mxu0 %vm246_vm2, %v9222_v17  ;;  %v11556_v48 = vpop.permute.xlu1 %7651  ;;  %9575 = vmatprep.subr.mxu1 %v11845_v37  ;;  %v7485_v25 = vsel %vm7484_vm13, %v7477_v24, %v7479_v40 }
 0x1d6   : > { %9230 = vmatpush1.msk.msra.mxu0 %vm250_vm1, %v7139_v2  ;;  %7215 = vmatprep.mubr.f32.mxu0 %v11845_v37 }
 0x1d7   : > { %9235 = vmatprep.subr.msk.mxu0 %vm250_vm1, %v7313_v43  ;;  %9573 = vmatmul.mubr.msk.f32.vlgmr.msra.gmra.mrb[72].mxu1 %vm246_vm2, %v11456_v50 }
 0x1d8   : > { %v6619_v29 = vpop.permute.xlu0 %6618  ;;  %9577 = vmatprep.mubr.msk.f32.mxu1 %vm9939_vm6, %v11845_v37 }
 0x1d9   : > { %v6623_v33 = vsel %vm6620_vm9, %v11352_v14, %v6619_v29  ;;  %v7650_v7 = vpop.permute.xlu1 %7649  ;;  %v7312_v14 = vsel %vm7311_vm11, %v7304_v4, %v11487_v59  ;;  %v9252_v59 = vld [vmem:[%s11802_s1 + $0xb0] sm:$0x7]  ;;  %v9264_v29 = vld [vmem:[%s11802_s1 + $0xb8] sm:$0x7] }
 0x1da   : > { %9576 = vmatpush3.msk.msra.mxu1 %vm250_vm1, %v6623_v33  ;;  %v7658_v46 = vsel %vm7657_vm14, %v7650_v7, %v11556_v48 }
 0x1db   : > { %9578 = vmatmul.mubr.msk.f32.vlgmr.msra.gmra.mrb[74].mxu1 %vm246_vm2, %v9210_v23  ;;  %9580 = vmatprep.subr.mxu1 %v11845_v37 }
 0x1dc   : > { %v11577_v18 = vpop.permute.xlu0 %7653  ;;  %9582 = vmatprep.mubr.msk.f32.mxu1 %vm9939_vm6, %v11845_v37 }
 0x1dd   : > { %9231 = vmatmul.mubr.msk.f32.vlgmr.msra.gmra.mrb[0].mxu0 %vm246_vm2, %v9228_v11  ;;  %v6965_v56 = vpop.permute.xlu1 %6964  ;;  %v7659_v31 = vsel %vm7657_vm14, %v11556_v48, %v11577_v18 }
 0x1de   : > { %9236 = vmatpush1.msk.msra.mxu0 %vm250_vm1, %v7312_v14  ;;  %7388 = vmatprep.mubr.f32.mxu0 %v11845_v37  ;;  %v6968_v35 = vsel %vm246_vm2, %v11433_v27, %v6965_v56 }
 0x1df   : > { %9241 = vmatprep.subr.msk.mxu0 %vm250_vm1, %v7486_v22 }
 0x1e0   : > { %v6792_v1 = vpop.permute.xlu0 %6791 }
 0x1e1   : > { %v6796_v60 = vsel %vm6793_vm12, %v11370_v49, %v6792_v1  ;;  %v11591_v51 = vpop.permute.xlu1 %7826 }
 0x1e2   : > { %9581 = vmatpush3.msk.msra.mxu1 %vm250_vm1, %v6796_v60  ;;  %v9270_v60 = vld [vmem:[%s11802_s1 + $0xbc] sm:$0x7] }
 0x1e3   : > { %9583 = vmatmul.mubr.msk.f32.vlgmr.msra.gmra.mrb[76].mxu1 %vm246_vm2, %v9216_v38  ;;  %9585 = vmatprep.subr.mxu1 %v11845_v37 }
 0x1e4   : > { %9586 = vmatpush3.msk.msra.mxu1 %vm250_vm1, %v6968_v35  ;;  %v7825_v49 = vpop.permute.xlu0 %7824  ;;  %9587 = vmatprep.mubr.msk.f32.mxu1 %vm9939_vm6, %v11845_v37 }
 0x1e5   : > { %9237 = vmatmul.mubr.msk.f32.vlgmr.msra.gmra.mrb[0].mxu0 %vm246_vm2, %v9234_v63  ;;  %v7137_v42 = vpop.permute.xlu1 %7136  ;;  %9590 = vmatprep.subr.mxu1 %v11845_v37  ;;  %v7832_v0 = vsel %vm7830_vm0, %v7825_v49, %v11591_v51 }
 0x1e6   : > { %9242 = vmatpush1.msk.msra.mxu0 %vm250_vm1, %v7485_v25  ;;  %v7141_v32 = vsel %vm7138_vm10, %v11450_v54, %v7137_v42  ;;  %7561 = vmatprep.mubr.f32.mxu0 %v11845_v37  ;;  %v9246_v54 = vld [vmem:[%s11802_s1 + $0xac] sm:$0x7] }
 0x1e7   : > { %9247 = vmatprep.subr.msk.mxu0 %vm250_vm1, %v7659_v31  ;;  %9588 = vmatmul.mubr.msk.f32.vlgmr.msra.gmra.mrb[78].mxu1 %vm246_vm2, %v9222_v17 }
 0x1e8   : > { %9591 = vmatpush3.msk.msra.mxu1 %vm250_vm1, %v7141_v32  ;;  %v7823_v45 = vpop.permute.xlu0 %7822  ;;  %9592 = vmatprep.mubr.msk.f32.mxu1 %vm9939_vm6, %v11845_v37  ;;  %v9276_v32 = vld [vmem:[%s11802_s1 + $0xc0] sm:$0x7] }
 0x1e9   : > { %v7998_v57 = vpop.permute.xlu1 %7997  ;;  %9595 = vmatprep.subr.mxu1 %v11845_v37  ;;  %v7831_v20 = vsel %vm7830_vm0, %v7823_v45, %v7825_v49 }
 0x1eb   : > { %9593 = vmatmul.mubr.msk.f32.vlgmr.msra.gmra.mrb[80].mxu1 %vm246_vm2, %v9228_v11 }
 0x1ec   : > { %v7310_v27 = vpop.permute.xlu0 %7309  ;;  %9597 = vmatprep.mubr.msk.f32.mxu1 %vm9939_vm6, %v11845_v37 }
 0x1ed   : > { %9243 = vmatmul.mubr.msk.f32.vlgmr.msra.gmra.mrb[0].mxu0 %vm246_vm2, %v9240_v5  ;;  %v7314_v34 = vsel %vm7311_vm11, %v11510_v19, %v7310_v27  ;;  %v7996_v16 = vpop.permute.xlu1 %7995 }
 0x1ee   : > { %9248 = vmatpush1.msk.msra.mxu0 %vm250_vm1, %v7658_v46  ;;  %9596 = vmatpush3.msk.msra.mxu1 %vm250_vm1, %v7314_v34  ;;  %v8004_v62 = vsel %vm8003_vm3, %v7996_v16, %v7998_v57 }
 0x1ef   : > { %9253 = vmatprep.subr.msk.mxu0 %vm250_vm1, %v7832_v0  ;;  %9598 = vmatmul.mubr.msk.f32.vlgmr.msra.gmra.mrb[82].mxu1 %vm246_vm2, %v9234_v63 }
 0x1f0   : > { %v8000_v53 = vpop.permute.xlu0 %7999  ;;  %7734 = vmatprep.mubr.f32.mxu0 %v11845_v37  ;;  %9600 = vmatprep.subr.mxu1 %v11845_v37 }
 0x1f1   : > { %9602 = vmatprep.mubr.msk.f32.mxu1 %vm9939_vm6, %v11845_v37  ;;  %v8005_v50 = vsel %vm8003_vm3, %v7998_v57, %v8000_v53 }
 0x1f2   : > { %v7656_v58 = vpop.permute.xlu1 %7655 }
 0x1f3   : > { %v7660_v9 = vsel %vm7657_vm14, %v11577_v18, %v7656_v58 }
 0x1f4   : > { %v7483_v13 = vpop.permute.xlu0 %7482 }
 0x1f5   : > { %9249 = vmatmul.mubr.msk.f32.vlgmr.msra.gmra.mrb[0].mxu0 %vm246_vm2, %v9246_v54  ;;  %v7487_v52 = vsel %vm7484_vm13, %v11525_v6, %v7483_v13 }
 0x1f6   : > { %9254 = vmatpush1.msk.msra.mxu0 %vm250_vm1, %v7831_v20  ;;  %v8173_v8 = vpop.permute.xlu1 %8172  ;;  %9601 = vmatpush3.msk.msra.mxu1 %vm250_vm1, %v7487_v52 }
 0x1f7   : > { %9259 = vmatprep.subr.msk.mxu0 %vm250_vm1, %v8005_v50  ;;  %9603 = vmatmul.mubr.msk.f32.vlgmr.msra.gmra.mrb[84].mxu1 %vm246_vm2, %v9240_v5 }
 0x1f8   : > { %9605 = vmatprep.subr.mxu1 %v11845_v37  ;;  %v8171_v55 = vpop.permute.xlu0 %8170  ;;  %9607 = vmatprep.mubr.msk.f32.mxu1 %vm9939_vm6, %v11845_v37 }
 0x1f9   : > { %9606 = vmatpush3.msk.msra.mxu1 %vm250_vm1, %v7660_v9  ;;  %7907 = vmatprep.mubr.f32.mxu0 %v11845_v37  ;;  %v8178_v61 = vsel %vm8176_vm4, %v8171_v55, %v8173_v8 }
 0x1fa   : > { %v7829_v36 = vpop.permute.xlu1 %7828  ;;  %9610 = vmatprep.subr.mxu1 %v11845_v37  ;;  %v394_v23 = vpop.f32.mrb[0].mxu1 }
 0x1fb   : > { %v7833_v3 = vsel %vm7830_vm0, %v11591_v51, %v7829_v36  ;;  %9608 = vmatmul.mubr.msk.f32.vlgmr.msra.gmra.mrb[86].mxu1 %vm246_vm2, %v9246_v54  ;;  %v9394_v12 = vpop.f32.mrb[1].mxu1 }
 0x1fc   : > { %9611 = vmatpush3.msk.msra.mxu1 %vm250_vm1, %v7833_v3  ;;  %v8169_v4 = vpop.permute.xlu0 %8168  ;;  %9612 = vmatprep.mubr.msk.f32.mxu1 %vm9939_vm6, %v11845_v37 }
 0x1fd   : > { %9255 = vmatmul.mubr.msk.f32.vlgmr.msra.gmra.mrb[0].mxu0 %vm246_vm2, %v9252_v59  ;;  %9615 = vmatprep.subr.mxu1 %v11845_v37  ;;  %v8177_v15 = vsel %vm8176_vm4, %v8169_v4, %v8171_v55 }
 0x1fe   : > { %9260 = vmatpush1.msk.msra.mxu0 %vm250_vm1, %v8004_v62  ;;  %v8344_v19 = vpop.permute.xlu1 %8343  ;;  %8080 = vmatprep.mubr.f32.mxu0 %v11845_v37  ;;  %v545_v41 = vpop.f32.mrb[2].mxu1 }
 0x1ff   : > { %9613 = vmatmul.mubr.msk.f32.vlgmr.msra.gmra.mrb[88].mxu1 %vm246_vm2, %v9252_v59  ;;  %9265 = vmatprep.subr.msk.mxu0 %vm250_vm1, %v8178_v61  ;;  %v546_v38 = vadd.f32 %v545_v41, %v394_v23  ;;  %v9399_v47 = vpop.f32.mrb[3].mxu1 }
 0x200   : > { %v8002_v26 = vpop.permute.xlu0 %8001  ;;  %9617 = vmatprep.mubr.msk.f32.mxu1 %vm9939_vm6, %v11845_v37 }
 0x201   : > { %v8006_v6 = vsel %vm8003_vm3, %v8000_v53, %v8002_v26 }
 0x202   : > { %9616 = vmatpush3.msk.msra.mxu1 %vm250_vm1, %v8006_v6  ;;  %v8342_v30 = vpop.permute.xlu1 %8341 }
 0x203   : > { %9618 = vmatmul.mubr.msk.f32.vlgmr.msra.gmra.mrb[90].mxu1 %vm246_vm2, %v9258_v44  ;;  %9620 = vmatprep.subr.mxu1 %v11845_v37  ;;  %v715_v40 = vpop.f32.mrb[4].mxu1  ;;  %v8350_v56 = vsel %vm8349_vm5, %v8342_v30, %v8344_v19 }
 0x204   : > { %v8346_v21 = vpop.permute.xlu0 %8345  ;;  %9622 = vmatprep.mubr.msk.f32.mxu1 %vm9939_vm6, %v11845_v37  ;;  %v721_v10 = vadd.f32 %v715_v40, %v546_v38  ;;  %v9404_v17 = vpop.f32.mrb[5].mxu1 }
 0x205   : > { %9261 = vmatmul.mubr.msk.f32.vlgmr.msra.gmra.mrb[0].mxu0 %vm246_vm2, %v9258_v44  ;;  %v8351_v24 = vsel %vm8349_vm5, %v8344_v19, %v8346_v21 }
 0x206   : > { %9266 = vmatpush1.msk.msra.mxu0 %vm250_vm1, %v8177_v15  ;;  %v8348_v2 = vpop.permute.xlu1 %8347  ;;  %8253 = vmatprep.mubr.f32.mxu0 %v11845_v37 }
 0x207   : > { %9271 = vmatprep.subr.msk.mxu0 %vm250_vm1, %v8351_v24  ;;  %v888_v48 = vpop.f32.mrb[6].mxu1  ;;  %v8352_v11 = vsel %vm8349_vm5, %v8346_v21, %v8348_v2 }
 0x208   : > { %v8175_v43 = vpop.permute.xlu0 %8174  ;;  %v894_v33 = vadd.f32 %v888_v48, %v721_v10  ;;  %v9409_v7 = vpop.f32.mrb[7].mxu1 }
 0x209   : > { %v8179_v18 = vsel %vm8176_vm4, %v8173_v8, %v8175_v43 }
 0x20a   : > { %9621 = vmatpush3.msk.msra.mxu1 %vm250_vm1, %v8179_v18  ;;  %v8519_v14 = vpop.permute.xlu1 %8518 }
 0x20b   : > { %9623 = vmatmul.mubr.msk.f32.vlgmr.msra.gmra.mrb[92].mxu1 %vm246_vm2, %v9264_v29  ;;  %9625 = vmatprep.subr.mxu1 %v11845_v37  ;;  %v1061_v22 = vpop.f32.mrb[8].mxu1 }
 0x20c   : > { %9626 = vmatpush3.msk.msra.mxu1 %vm250_vm1, %v8352_v11  ;;  %v8517_v1 = vpop.permute.xlu0 %8516  ;;  %9627 = vmatprep.mubr.msk.f32.mxu1 %vm9939_vm6, %v11845_v37  ;;  %v1067_v51 = vadd.f32 %v1061_v22, %v894_v33  ;;  %v9414_v63 = vpop.f32.mrb[9].mxu1 }
 0x20d   : > { %9267 = vmatmul.mubr.msk.f32.vlgmr.msra.gmra.mrb[0].mxu0 %vm246_vm2, %v9264_v29  ;;  %v8524_v35 = vsel %vm8522_vm8, %v8517_v1, %v8519_v14  ;;  %9630 = vmatprep.subr.mxu1 %v11845_v37 }
 0x20e   : > { %9272 = vmatpush1.msk.msra.mxu0 %vm250_vm1, %v8350_v56  ;;  %v8521_v31 = vpop.permute.xlu1 %8520  ;;  %8426 = vmatprep.mubr.f32.mxu0 %v11845_v37 }
 0x20f   : > { %9628 = vmatmul.mubr.msk.f32.vlgmr.msra.gmra.mrb[94].mxu1 %vm246_vm2, %v9270_v60  ;;  %v8525_v49 = vsel %vm8522_vm8, %v8519_v14, %v8521_v31  ;;  %9277 = vmatprep.subr.msk.mxu0 %vm250_vm1, %v8524_v35  ;;  %v1234_v25 = vpop.f32.mrb[10].mxu1 }
 0x210   : > { %v8515_v42 = vpop.permute.xlu0 %8514  ;;  %9631 = vmatpush3.msk.msra.mxu1 %vm250_vm1, %v8525_v49  ;;  %9632 = vmatprep.mubr.msk.f32.mxu1 %vm9939_vm6, %v11845_v37  ;;  %v1240_v39 = vadd.f32 %v1234_v25, %v1067_v51  ;;  %v9419_v45 = vpop.f32.mrb[11].mxu1 }
 0x211   : > { %9635 = vmatprep.subr.mxu1 %v11845_v37  ;;  %v8523_v57 = vsel %vm8522_vm8, %v8515_v42, %v8517_v1 }
 0x213   : > { %9633 = vmatmul.mubr.msk.f32.vlgmr.msra.gmra.mrb[96].mxu1 %vm246_vm2, %v9276_v32 }
 0x214   : > { %9637 = vmatprep.mubr.msk.f32.mxu1 %vm9939_vm6, %v11845_v37 }
 0x215   : > { %9273 = vmatmul.mubr.msk.f32.vlgmr.msra.gmra.mrb[0].mxu0 %vm246_vm2, %v9270_v60 }
 0x216   : > { %9278 = vmatpush1.msk.msra.mxu0 %vm250_vm1, %v8523_v57  ;;  %8599 = vmatprep.mubr.f32.mxu0 %v11845_v37  ;;  %v1407_v28 = vpop.f32.mrb[12].mxu1 }
 0x217   : > { %v1413_v5 = vadd.f32 %v1407_v28, %v1240_v39  ;;  %v9424_v0 = vpop.f32.mrb[13].mxu1 }
 0x21b   : > { %v1580_v27 = vpop.f32.mrb[14].mxu1 }
 0x21c   : > { %v1586_v46 = vadd.f32 %v1580_v27, %v1413_v5  ;;  %v9429_v34 = vpop.f32.mrb[15].mxu1 }
 0x21d   : > { %9279 = vmatmul.mubr.msk.f32.vlgmr.msra.gmra.mrb[0].mxu0 %vm246_vm2, %v9276_v32  ;;  %vm8697_vm2 = vcmask 1042432  }
 0x21e   : > { %8771 = vmatprep.mubr.f32.mxu0 %v11845_v37 }
 0x21f   : > { %v1753_v16 = vpop.f32.mrb[16].mxu1 }
 0x220   : > { %v1759_v53 = vadd.f32 %v1753_v16, %v1586_v46  ;;  %v9434_v58 = vpop.f32.mrb[17].mxu1 }
 0x223   : > { %v1926_v54 = vpop.f32.mrb[18].mxu1 }
 0x224   : > { %v1932_v50 = vadd.f32 %v1926_v54, %v1759_v53  ;;  %v9439_v13 = vpop.f32.mrb[19].mxu1 }
 0x22b   : > { %v2099_v20 = vpop.f32.mrb[20].mxu1 }
 0x22c   : > { %v2105_v52 = vadd.f32 %v2099_v20, %v1932_v50  ;;  %v9444_v8 = vpop.f32.mrb[21].mxu1 }
 0x22f   : > { %v2272_v9 = vpop.f32.mrb[22].mxu1 }
 0x230   : > { %v2278_v55 = vadd.f32 %v2272_v9, %v2105_v52  ;;  %v9449_v36 = vpop.f32.mrb[23].mxu1 }
 0x233   : > { %v2445_v59 = vpop.f32.mrb[24].mxu1 }
 0x234   : > { %v2451_v23 = vadd.f32 %v2445_v59, %v2278_v55  ;;  %v9454_v3 = vpop.f32.mrb[25].mxu1 }
 0x237   : > { %v2618_v12 = vpop.f32.mrb[26].mxu1 }
 0x238   : > { %v2624_v61 = vadd.f32 %v2618_v12, %v2451_v23  ;;  %v9459_v4 = vpop.f32.mrb[27].mxu1 }
 0x23e   : > { %v2791_v62 = vpop.f32.mrb[28].mxu1 }
 0x23f   : > { %v2797_v37 = vadd.f32 %v2791_v62, %v2624_v61  ;;  %v9464_v19 = vpop.f32.mrb[29].mxu1 }
 0x243   : > { %v2964_v41 = vpop.f32.mrb[30].mxu1 }
 0x244   : > { %v2970_v38 = vadd.f32 %v2964_v41, %v2797_v37  ;;  %v9469_v47 = vpop.f32.mrb[31].mxu1 }
 0x247   : > { %v3137_v26 = vpop.f32.mrb[32].mxu1 }
 0x248   : > { %v3143_v44 = vadd.f32 %v3137_v26, %v2970_v38  ;;  %v9474_v6 = vpop.f32.mrb[33].mxu1 }
 0x24b   : > { %v3310_v30 = vpop.f32.mrb[34].mxu1 }
 0x24c   : > { %v3316_v15 = vadd.f32 %v3310_v30, %v3143_v44  ;;  %v9479_v40 = vpop.f32.mrb[35].mxu1 }
 0x252   : > { %v3483_v21 = vpop.f32.mrb[36].mxu1 }
 0x253   : > { %v3489_v10 = vadd.f32 %v3483_v21, %v3316_v15  ;;  %v9484_v17 = vpop.f32.mrb[37].mxu1 }
 0x256   : > { %v3656_v24 = vpop.f32.mrb[38].mxu1 }
 0x257   : > { %v3662_v2 = vadd.f32 %v3656_v24, %v3489_v10  ;;  %v9489_v48 = vpop.f32.mrb[39].mxu1 }
 0x25a   : > { %v3829_v43 = vpop.f32.mrb[40].mxu1 }
 0x25b   : > { %v3835_v29 = vadd.f32 %v3829_v43, %v3662_v2  ;;  %v9494_v33 = vpop.f32.mrb[41].mxu1 }
 0x25e   : > { %v4002_v7 = vpop.f32.mrb[42].mxu1 }
 0x25f   : > { %v4008_v11 = vadd.f32 %v4002_v7, %v3835_v29  ;;  %v9499_v18 = vpop.f32.mrb[43].mxu1 }
 0x265   : > { %v4175_v14 = vpop.f32.mrb[44].mxu1 }
 0x266   : > { %v4181_v56 = vadd.f32 %v4175_v14, %v4008_v11  ;;  %v9504_v22 = vpop.f32.mrb[45].mxu1 }
 0x26a   : > { %v4348_v1 = vpop.f32.mrb[46].mxu1 }
 0x26b   : > { %v4354_v60 = vadd.f32 %v4348_v1, %v4181_v56  ;;  %v9509_v51 = vpop.f32.mrb[47].mxu1 }
 0x26e   : > { %v4521_v63 = vpop.f32.mrb[48].mxu1 }
 0x26f   : > { %v4527_v35 = vadd.f32 %v4521_v63, %v4354_v60  ;;  %v9514_v31 = vpop.f32.mrb[49].mxu1 }
 0x272   : > { %v4694_v49 = vpop.f32.mrb[50].mxu1 }
 0x273   : > { %v4700_v25 = vadd.f32 %v4694_v49, %v4527_v35  ;;  %v9519_v42 = vpop.f32.mrb[51].mxu1 }
 0x279   : > { %v4867_v32 = vpop.f32.mrb[52].mxu1 }
 0x27a   : > { %v4873_v39 = vadd.f32 %v4867_v32, %v4700_v25  ;;  %v9524_v45 = vpop.f32.mrb[53].mxu1 }
 0x27d   : > { %v5040_v57 = vpop.f32.mrb[54].mxu1 }
 0x27e   : > { %v5046_v28 = vadd.f32 %v5040_v57, %v4873_v39  ;;  %v9529_v5 = vpop.f32.mrb[55].mxu1  ;;  %v8683_v57 = vpop.permute.xlu0 %8682 }
 0x281   : > { %v5213_v0 = vpop.f32.mrb[56].mxu1 }
 0x282   : > { %v5219_v27 = vadd.f32 %v5213_v0, %v5046_v28  ;;  %v9534_v46 = vpop.f32.mrb[57].mxu1 }
 0x283   : > { %v8691_v46 = vld [vmem:[%s11804_s3] sm:$0x1] }
 0x286   : > { %v5386_v34 = vpop.f32.mrb[58].mxu1 }
 0x287   : > { %v5392_v16 = vadd.f32 %v5386_v34, %v5219_v27  ;;  %v9539_v53 = vpop.f32.mrb[59].mxu1 }
 0x28e   : > { %v5559_v58 = vpop.f32.mrb[60].mxu1 }
 0x28f   : > { %v5565_v54 = vadd.f32 %v5559_v58, %v5392_v16  ;;  %v9544_v50 = vpop.f32.mrb[61].mxu1 }
 0x292   : > { %v5732_v13 = vpop.f32.mrb[62].mxu1 }
 0x293   : > { %v5738_v20 = vadd.f32 %v5732_v13, %v5565_v54  ;;  %v9549_v52 = vpop.f32.mrb[63].mxu1 }
 0x294   : > { %v8693_v52 = vstv %s8692_s9 }
 0x296   : > { %v5905_v8 = vpop.f32.mrb[64].mxu1 }
 0x297   : > { %v5911_v9 = vadd.f32 %v5905_v8, %v5738_v20  ;;  %v9554_v55 = vpop.f32.mrb[65].mxu1 }
 0x29a   : > { %v6078_v36 = vpop.f32.mrb[66].mxu1 }
 0x29b   : > { %v6084_v59 = vadd.f32 %v6078_v36, %v5911_v9  ;;  %v9559_v23 = vpop.f32.mrb[67].mxu1 }
 0x2a2   : > { %v6251_v3 = vpop.f32.mrb[68].mxu1 }
 0x2a3   : > { %v6257_v12 = vadd.f32 %v6251_v3, %v6084_v59  ;;  %v9564_v61 = vpop.f32.mrb[69].mxu1 }
 0x2a6   : > { %v6424_v4 = vpop.f32.mrb[70].mxu1 }
 0x2a7   : > { %v6430_v62 = vadd.f32 %v6424_v4, %v6257_v12  ;;  %v9569_v37 = vpop.f32.mrb[71].mxu1 }
 0x2aa   : > { %v6597_v19 = vpop.f32.mrb[72].mxu1 }
 0x2ab   : > { %v6603_v41 = vadd.f32 %v6597_v19, %v6430_v62  ;;  %v9574_v38 = vpop.f32.mrb[73].mxu1 }
 0x2ae   : > { %v6770_v47 = vpop.f32.mrb[74].mxu1 }
 0x2af   : > { %v6776_v26 = vadd.f32 %v6770_v47, %v6603_v41  ;;  %v9579_v44 = vpop.f32.mrb[75].mxu1 }
 0x2b0   : > { %v8866_v44 = vlaneseq }
 0x2b6   : > { %v6943_v6 = vpop.f32.mrb[76].mxu1 }
 0x2b7   : > { %v6949_v30 = vadd.f32 %v6943_v6, %v6776_v26  ;;  %v9584_v15 = vpop.f32.mrb[77].mxu1  ;;  %v8867_v6 = vshrl.u32 %v8866_v44, 7 }
 0x2ba   : > { %v7115_v40 = vpop.f32.mrb[78].mxu1 }
 0x2bb   : > { %v7121_v21 = vadd.f32 %v7115_v40, %v6949_v30  ;;  %v9589_v10 = vpop.f32.mrb[79].mxu1  ;;  %v8868_v30 = vsub.s32 0, %v8867_v6 }
 0x2be   : > { %v7288_v17 = vpop.f32.mrb[80].mxu1 }
 0x2bf   : > { %v7294_v24 = vadd.f32 %v7288_v17, %v7121_v21  ;;  %v9594_v2 = vpop.f32.mrb[81].mxu1 }
 0x2c2   : > { %v7461_v48 = vpop.f32.mrb[82].mxu1 }
 0x2c3   : > { %v7467_v43 = vadd.f32 %v7461_v48, %v7294_v24  ;;  %v9599_v29 = vpop.f32.mrb[83].mxu1 }
 0x2ca   : > { %v7634_v33 = vpop.f32.mrb[84].mxu1 }
 0x2cb   : > { %v7640_v7 = vadd.f32 %v7634_v33, %v7467_v43  ;;  %v9604_v11 = vpop.f32.mrb[85].mxu1  ;;  %v9848_v33 = vld [vmem:[%s10054_s10] sm:$0xff] }
 0x2ce   : > { %v7807_v18 = vpop.f32.mrb[86].mxu1 }
 0x2cf   : > { %v7813_v14 = vadd.f32 %v7807_v18, %v7640_v7  ;;  %v9609_v56 = vpop.f32.mrb[87].mxu1 }
 0x2d2   : > { %v7980_v22 = vpop.f32.mrb[88].mxu1 }
 0x2d3   : > { %v7986_v1 = vadd.f32 %v7980_v22, %v7813_v14  ;;  %v9614_v60 = vpop.f32.mrb[89].mxu1  ;;  %v9849_v22 = vld [vmem:[%s10054_s10 + $0x8] sm:$0xff]  ;;  %s11758_s10 = scalar_lea.hbm %s11806_s5, %s9738_s15 }
 0x2d6   : > { %v8153_v51 = vpop.f32.mrb[90].mxu1 }
 0x2d7   : > { %v8159_v63 = vadd.f32 %v8153_v51, %v7986_v1  ;;  %v9619_v35 = vpop.f32.mrb[91].mxu1 }
 0x2de   : > { %v8326_v31 = vpop.f32.mrb[92].mxu1 }
 0x2df   : > { %v8332_v49 = vadd.f32 %v8326_v31, %v8159_v63  ;;  %v9624_v25 = vpop.f32.mrb[93].mxu1 }
 0x2e2   : > { %v8499_v42 = vpop.f32.mrb[94].mxu1 }
 0x2e3   : > { %v8505_v32 = vadd.f32 %v8499_v42, %v8332_v49  ;;  %v9629_v39 = vpop.f32.mrb[95].mxu1 }
 0x2e6   : > { %v8672_v45 = vpop.f32.mrb[96].mxu1 }
 0x2e7   : > { %v8678_v28 = vadd.f32 %v8672_v45, %v8505_v32  ;;  %v9634_v5 = vpop.f32.mrb[97].mxu1 }
 0x2e9   : > { %v8687_v0 = vadd.f32 %v8683_v57, %v8678_v28 }
 0x2eb   : > { %v8690_v27 = vmax.f32 %v8687_v0, 0.0 }
 0x2ed   : > { %9636 = vmatpush3.msk.msra.mxu1 %vm8697_vm2, %v8690_v27 }
 0x2ee   : > { %9638 = vmatmul.mubr.msk.f32.vlgmr.msra.gmra.mrb[98].mxu1 %vm7138_vm10, %v8691_v46 }
 0x2f0   : > { %v8601_v34 = vpop.f32.mrb[0].mxu0 }
 0x2f1   : > { %v8685_v16 = vadd.f32 %v8683_v57, %v8601_v34  ;;  %v8603_v53 = vpop.f32.mrb[1].mxu0 }
 0x2f2   : > { %v8686_v58 = vadd.f32 %v8683_v57, %v8603_v53 }
 0x2f3   : > { %v8688_v50 = vmax.f32 %v8685_v16, 0.0 }
 0x2f4   : > { %v8689_v54 = vmax.f32 %v8686_v58, 0.0 }
 0x2f6   : > { %9282 = vmatprep.subr.msk.mxu0 %vm8697_vm2, %v8689_v54 }
 0x2f7   : > { %9283 = vmatpush1.msk.msra.mxu0 %vm8697_vm2, %v8688_v50 }
 0x2f8   : > { %9284 = vmatmul.mubr.msk.f32.vlgmr.msra.gmra.mrb[2].mxu0 %vm7138_vm10, %v8691_v46 }
 0x3c1   : > { %v8844_v13 = vpop.f32.mrb[98].mxu1 }
 0x3c2   : > { %v9639_v20 = vpop.f32.mrb[99].mxu1  ;;  %v8845_v8 = vadd.f32 %v8844_v13, %v8693_v52 }
 0x3c4   : > { %v8850_v9 = vsub.f32 0.0, %v8845_v8 }
 0x3c6   : > { %v8855_v3 = vmul.f32 1.442695, %v8850_v9 }
 0x3c8   : > { %9836 = vpow2.f32 %v8855_v3 }
 0x3cb   : > { %v8773_v55 = vpop.f32.mrb[2].mxu0 }
 0x3cc   : > { %v8774_v36 = vadd.f32 %v8773_v55, %v8693_v52  ;;  %v8775_v59 = vpop.f32.mrb[3].mxu0 }
 0x3cd   : > { %v8776_v23 = vadd.f32 %v8775_v59, %v8693_v52 }
 0x3ce   : > { %v8848_v12 = vsub.f32 0.0, %v8774_v36 }
 0x3cf   : > { %v8849_v61 = vsub.f32 0.0, %v8776_v23 }
 0x3d0   : > { %v8851_v4 = vmul.f32 1.442695, %v8848_v12 }
 0x3d1   : > { %v8853_v62 = vmul.f32 1.442695, %v8849_v61 }
 0x3d2   : > { %9838 = vpow2.f32 %v8851_v4  ;;  %v9837_v37 = vpop.eup %9836 }
 0x3d3   : > { %9840 = vpow2.f32 %v8853_v62  ;;  %v8859_v26 = vadd.f32 1.0, %v9837_v37 }
 0x3dc   : > { %v9839_v19 = vpop.eup %9838 }
 0x3dd   : > { %v9841_v41 = vpop.eup %9840  ;;  %v8857_v38 = vadd.f32 1.0, %v9839_v19 }
 0x3de   : > { %v8858_v47 = vadd.f32 1.0, %v9841_v41 }
 0x3df   : > { %9842 = vrcp.f32 %v8857_v38 }
 0x3e0   : > { %9844 = vrcp.f32 %v8858_v47 }
 0x3e1   : > { %9846 = vrcp.f32 %v8859_v26 }
 0x3e9   : > { %v9843_v15 = vpop.eup %9842 }
 0x3ea   : > { %v9845_v40 = vpop.eup %9844  ;;  %v8869_v21 = vrot.slane %v9843_v15, %v8868_v30 }
 0x3eb   : > { %v8873_v10 = vrot.slane %v9845_v40, %v8868_v30  ;;  %v9847_v17 = vpop.eup %9846 }
 0x3ec   : > { %v8877_v2 = vrot.slane %v9847_v17, %v8868_v30 }
 0x3ed   : > { %v8881_v24 = vcombine.low %v8869_v21, %v8873_v10 }
 0x3ef   : > { %8882 = vrot.lane.b32.xlu1 %v8881_v24, %s11838_s24 }
 0x3f3   : > { %8884 = vrot.lane.b32.xlu1 %v8877_v2, %s11838_s24  ;;  %s216_s24 = sand.u32 1, %s9904_s21  }
 0x3f4   : > { %s9736_s14 = smul.u32 12, %s216_s24  ;;  %s8911_s4 = scalar_lea.sflag [#allocation4], %s216_s24 }
 0x3f6   : > { %s218_s13 = scalar_lea.vmem [#allocation3], %s9736_s14 }
 0x3f7   : > { %s8925_s19 = sshll.u32 %s218_s13, 4  ;;  %s11760_s19 = int_to_ptr.vmem [resolvable:$true] %s8925_s19 }
 0x3f8   : > { %p9857_p0 = scmp.lt.s32.totalorder %s11760_s19, %s9855_s18 }
 0x461   : > { %v8883_v48 = vpop.permute.xlu1 %8882 }
 0x462   : > { %v8886_v43 = vrot.slane %v8883_v48, 4 }
 0x464   : > { %v8888_v29 = vsel %vm3506_vm15, %v8886_v43, %v8883_v48 }
 0x465   : > { %v8893_v7 = vmul.f32 %v9848_v33, %v8888_v29  ;;  %v8885_v11 = vpop.permute.xlu1 %8884 }
 0x466   : > { %v8887_v18 = vrot.slane %v8885_v11, 4 }
 0x467   : > { %8897 = vrot.lane.b32.xlu0 %v8893_v7, %s9938_s7 }
 0x468   : > { %v8889_v14 = vsel %vm250_vm1, %v8886_v43, %v8887_v18 }
 0x469   : > { %v8890_v56 = vsel %vm3506_vm15, %v8889_v14, %v8885_v11 }
 0x46a   : > { %v8894_v1 = vmul.f32 %v9849_v22, %v8890_v56 }
 0x46c   : > { %8899 = vrot.lane.b32.xlu1 %v8894_v1, %s9938_s7  ;;  %s9850_s7 = scalar_lea.vmem %s11760_s19, 192 }
 0x46d   : > { %p9851_p11 = scmp.ne.s32.totalorder %s11760_s19, %s9850_s7  ;;  %p9858_p1 = scmp.lt.s32.totalorder %s9856_s6, %s9850_s7 }
 0x46f   : > { %p9852_p12 = pnand %p9851_p11, %p10037_p5  ;;  %p9859_p2 = por %p9858_p1, %p9857_p0 }
 0x471   : > { %p9853_p13 = pneg %p9852_p12 }
 0x473   : > { %p9860_p3 = pnand %p9859_p2, %p9853_p13 }
 0x4d9   : > { %v8898_v60 = vpop.permute.xlu0 %8897 }
 0x4da   : > { %v8901_v63 = vrot.slane %v8898_v60, 4 }
 0x4de   : > { %v8900_v51 = vpop.permute.xlu1 %8899 }
 0x4df   : > { %v8902_v35 = vrot.slane %v8900_v51, 4 }
 0x4e1   : > { %v8903_v31 = vsel %vm250_vm1, %v8901_v63, %v8902_v35  ;;  %v8905_v49 = vsel %vm4371_vm7, %v8900_v51, %v8902_v35 }
 0x4e2   : > { %8909 = vst [vmem:[%s218_s13 + $0x8] sm:$0xf] %v8905_v49  ;;  %v8904_v25 = vsel %vm4371_vm7, %v8898_v60, %v8903_v31 }
 0x4e3   : > { %8908 = vst [vmem:[%s218_s13] sm:$0xff] %v8904_v25 }
 0x4e4   : > { %9863 = shalt.err (!%p9860_p3)
}
 0x4e5   : > { %s9864_s8 = scalar_lea.hbm %s11758_s10, 192  ;;  %s9868_s27 = scalar_lea.hbm %s11806_s5, 384 }
 0x4e6   : > { %p9865_p4 = scmp.ne.s32.totalorder %s11758_s10, %s9864_s8  ;;  %p9869_p9 = scmp.lt.u32.totalorder %s11758_s10, %s11806_s5 }
 0x4e7   : > { %p9870_p10 = scmp.lt.u32.totalorder %s9868_s27, %s9864_s8  ;;  %p9872_p12 = scmp.lt.u32.totalorder %s9864_s8, %s11758_s10 }
 0x4e8   : > { %p9866_p7 = pnand %p9865_p4, %p10037_p5 }
 0x4e9   : > { %p9871_p11 = por %p9870_p10, %p9869_p9 }
 0x4ea   : > { %p9867_p8 = pneg %p9866_p7 }
 0x4eb   : > { %p9873_p13 = por %p9872_p12, %p9871_p11 }
 0x4ed   : > { %p9874_p0 = pnand %p9873_p13, %p9867_p8 }
 0x4ef   : > { %9877 = shalt.err (!%p9874_p0)
}
 0x4f0   : > { %9739 = dma.vmem_to_hbm [thread:$0]  (%p10037_p5), %s11760_s19, 192, %s11758_s10, %s8911_s4  }
 0x4f1 PF: > { %p9745_p1 = scmp.ge.s32.totalorder %s9912_s23, 2  ;;  %s8937_s14 = sand.u32 1, %s9900_s20  }
 0x4f2   : > { %s8938_s15 = scalar_lea.sflag [#allocation4], %s8937_s14 }
 0x4f3   : > { %p9742_p2 = pnand %p9745_p1, %p10041_p6 }
 0x4f5   : > { %9895 = dma.done.wait (!%p9742_p2), %s8938_s15, 192  }
 0x4f6   : > { %9897 = vsyncadd (!%p9742_p2), %s8938_s15, 4294967104  ;;  %p16_p3 = scmp.ge.s32.totalorder %s10024_s25, 4   ;;  %s11855_s20 = smov %s9904_s21 }
 0x4f7   : > { %s11856_s21 = smov %s9908_s22  ;;  %s11857_s22 = smov %s10035_s28 }
 0x4f8   : > { %s11858_s23 = smov %s10024_s25  ;;  %18 = sbr.rel (!%p16_p3) target bundleno = 5 (0x5), region = 123 }
 0x4ff   :  { %8943 = vsyncpa [#allocation4], 1 }
 0x500   :  { %8945 = vsyncpa [#allocation4 + $0x1], 1 }

</bundles_post_ra>
